<compile_context>
chip_gen: v7x
topology: tpu7x:2x2x1
jax: 0.10.0
libtpu: 0.0.40
codegen_flags: <defaults>
</compile_context>

<pallas_src>
import numpy as np
import jax
import jax.numpy as jnp
from jax.experimental import pallas as pl
from jax.experimental.pallas import tpu as pltpu


# ----------------------------------------------------------------------------
# host-side constant construction (weight folding, scatter / upsample matrices)
# ----------------------------------------------------------------------------
def _round_up(x, m):
    return ((x + m - 1) // m) * m


def _upsample_matrix(n):
    """2x bilinear interpolation matrix (align_corners=False), shape (2n, n)."""
    m = np.zeros((2 * n, n), dtype=np.float32)
    for o in range(2 * n):
        src = max((o + 0.5) / 2.0 - 0.5, 0.0)
        i0 = min(int(np.floor(src)), n - 1)
        i1 = min(i0 + 1, n - 1)
        w1 = src - i0
        m[o, i0] += 1.0 - w1
        m[o, i1] += w1
    return m


def _upsample4_matrix(n):
    """Composition of two 2x bilinear upsamples (== applying 2x twice)."""
    return _upsample_matrix(2 * n) @ _upsample_matrix(n)          # (4n, n)


def _deconv_weight_matrix(wt, scale):
    """ConvTranspose2d(k=4,s=2,p=1) weight (Cin,Cout,4,4) -> subpixel GEMM LHS
    (4*Cout, 9*Cin) with the BN scale folded in.  Row r*Cout+o (r = ry*2+rx = output
    parity) against patch block (a,b) holds wt[c,o,ky,kx] with a=ry+dy, b=rx+dx,
    ky=3-ry-2dy, kx=3-rx-2dx (zero elsewhere)."""
    cin, cout = wt.shape[0], wt.shape[1]
    w = np.zeros((4 * cout, 9 * cin), np.float32)
    for ry in range(2):
        for rx in range(2):
            r = ry * 2 + rx
            for dy in range(2):
                for dx in range(2):
                    a, b = ry + dy, rx + dx
                    ky, kx = 3 - ry - 2 * dy, 3 - rx - 2 * dx
                    blk = (a * 3 + b) * cin
                    w[r * cout:(r + 1) * cout, blk:blk + cin] = wt[:, :, ky, kx].T
    return w * np.tile(scale, 4)[:, None]


def _conv3x3_weight_matrix(wc, scale):
    """Conv2d 3x3 weight (Cout,Cin,3,3) -> (Cout, 9*Cin), block order (dy,dx); BN scale
    folded in."""
    cout, cin = wc.shape[0], wc.shape[1]
    return np.transpose(wc, (0, 2, 3, 1)).reshape(cout, 9 * cin) * scale[:, None]


def _width_scatter(w):
    """Tiny (w+2, 2w+2) 0/1 matrices placing coarse column j at fine column 2j+1 (rx=0)
    / 2j+2 (rx=1).  Columns j >= w (garbage GEMM lanes from row wrap) map to nothing and
    fine columns 0 / 2w+1 stay zero (left/right padding for the next conv)."""
    wp, wpo = w + 2, 2 * w + 2
    s0 = np.zeros((wp, wpo), np.float32)
    s1 = np.zeros((wp, wpo), np.float32)
    for j in range(w):
        s0[j, 2 * j + 1] = 1.0
        s1[j, 2 * j + 2] = 1.0
    return s0, s1


def _bn_fold(gamma, beta, mean, var, conv_bias=None, eps=1e-5):
    scale = gamma / np.sqrt(var + eps)
    b = conv_bias if conv_bias is not None else 0.0
    shift = beta + (b - mean) * scale
    return scale.astype(np.float32), shift.astype(np.float32)


def build_decoder_params(wt1, wt2, wc, bc, bn1, bn2, bn3, in_shape):
    """Fold weights/BN and build all constant matrices for the fused decoder kernel."""
    n, cin, h0, w0 = in_shape
    c1, c2, co = wt1.shape[1], wt2.shape[1], wc.shape[0]

    wp0, m0 = w0 + 2, h0 * (w0 + 2)
    h1, w1 = 2 * h0, 2 * w0
    wp1, m1 = w1 + 2, h1 * (w1 + 2)
    h2, w2 = 2 * h1, 2 * w1
    wp2, m2 = w2 + 2, h2 * (w2 + 2)

    # flat padded activation lengths (row stride wp, +tail so patch shifts are plain
    # static lane slices); rounded to a multiple of 128 for lane-dense access.
    l0 = _round_up(max((h0 + 2) * wp0, 2 * wp0 + 2 + m0), 128)
    l1 = _round_up(max((h1 + 2) * wp1, 2 * wp1 + 2 + m1), 128)
    l2 = _round_up(max((h2 + 2) * wp2, 2 * wp2 + 2 + m2), 128)

    wt1 = np.asarray(wt1, np.float32)
    wt2 = np.asarray(wt2, np.float32)
    wc = np.asarray(wc, np.float32)
    bc = np.asarray(bc, np.float32)

    s1, b1 = _bn_fold(*[np.asarray(a, np.float32) for a in bn1])
    s2, b2 = _bn_fold(*[np.asarray(a, np.float32) for a in bn2])
    s3, b3 = _bn_fold(*[np.asarray(a, np.float32) for a in bn3], conv_bias=bc)

    sw10, sw11 = _width_scatter(w0)
    sw20, sw21 = _width_scatter(w1)

    # fused 4x bilinear upsample; zero rows of uw kill the 2 padded-stride lanes so the
    # upsample consumes the flattened conv3 output rows directly.
    u4w = _upsample4_matrix(w2)                       # (4*w2, w2)
    uw_pad = np.zeros((wp2, 4 * w2), np.float32)
    uw_pad[:w2, :] = u4w.T
    u4h = _upsample4_matrix(h2)                       # (4*h2, h2)
    uh_big = np.zeros((co * 4 * h2, h2 * co), np.float32)
    for c in range(co):
        for i in range(h2):
            uh_big[c * 4 * h2:(c + 1) * 4 * h2, i * co + c] = u4h[:, i]

    bf16 = jnp.bfloat16
    params = dict(
        w1=jnp.asarray(_deconv_weight_matrix(wt1, s1), bf16),     # (4*C1, 9*Cin)
        b1=jnp.asarray(np.tile(b1, 4)[:, None], jnp.float32),     # (4*C1, 1)
        sw10=jnp.asarray(sw10, bf16), sw11=jnp.asarray(sw11, bf16),
        w2=jnp.asarray(_deconv_weight_matrix(wt2, s2), bf16),     # (4*C2, 9*C1)
        b2=jnp.asarray(np.tile(b2, 4)[:, None], jnp.float32),
        sw20=jnp.asarray(sw20, bf16), sw21=jnp.asarray(sw21, bf16),
        w3=jnp.asarray(_conv3x3_weight_matrix(wc, s3), bf16),     # (Co, 9*C2)
        b3=jnp.asarray(b3[:, None], jnp.float32),
        uw=jnp.asarray(uw_pad, bf16),                             # (wp2, 4*w2)
        uh=jnp.asarray(uh_big, bf16),                             # (Co*4*h2, h2*Co)
    )
    dims = dict(n=n, cin=cin, c1=c1, c2=c2, co=co,
                h0=h0, w0=w0, wp0=wp0, m0=m0, l0=l0,
                h1=h1, w1=w1, wp1=wp1, m1=m1, l1=l1,
                h2=h2, w2=w2, wp2=wp2, m2=m2, l2=l2)
    return params, dims


# ----------------------------------------------------------------------------
# Pallas kernel
# ----------------------------------------------------------------------------
def _make_decoder_kernel(d):
    cin, c1, c2, co = d["cin"], d["c1"], d["c2"], d["co"]
    h0, wp0, m0 = d["h0"], d["wp0"], d["m0"]
    h1, wp1, m1, l1 = d["h1"], d["wp1"], d["m1"], d["l1"]
    h2, wp2, m2, l2 = d["h2"], d["wp2"], d["m2"], d["l2"]
    out_h = 4 * h2
    bf16, f32 = jnp.bfloat16, jnp.float32

    def patches(xf, wp, m):
        """(C, L) flat zero-padded activation -> (9C, m) patch matrix (lane slices)."""
        return jnp.concatenate(
            [xf[:, a * wp + b: a * wp + b + m] for a in range(3) for b in range(3)],
            axis=0)

    def deconv_stage(xflat, w_ref, b_ref, sw0_ref, sw1_ref, cout, h, wp_in, m,
                     wp_out, l_out):
        # subpixel GEMM: 4 output parities stacked on sublanes, BN scale folded in LHS
        p = patches(xflat, wp_in, m)                                     # (9*Cprev, m)
        y = jnp.dot(w_ref[...], p, preferred_element_type=f32)          # (4*cout, m)
        y = jnp.maximum(y + b_ref[...], 0.0).astype(bf16)
        # split by horizontal parity rx (parities r=0,2 vs r=1,3); rows -> (ry, c)
        a0 = jnp.concatenate([y[0:cout], y[2 * cout:3 * cout]], axis=0)          # rx=0
        a1 = jnp.concatenate([y[cout:2 * cout], y[3 * cout:4 * cout]], axis=0)   # rx=1
        # pull each coarse image row out of the lane dim -> rows (i, ry, c), i major
        a0 = jnp.concatenate([a0[:, i * wp_in:(i + 1) * wp_in] for i in range(h)],
                             axis=0)                                     # (2*cout*h, wp_in)
        a1 = jnp.concatenate([a1[:, i * wp_in:(i + 1) * wp_in] for i in range(h)],
                             axis=0)
        # tiny width-interleave matmuls: coarse col j -> fine col 2j+1+rx (pads stay 0)
        z = (jnp.dot(a0, sw0_ref[...], preferred_element_type=f32)
             + jnp.dot(a1, sw1_ref[...], preferred_element_type=f32)).astype(bf16)
        # z row-blocks of size cout are already the fine padded rows y = 1..2h in order
        # (i major, ry minor) -> height interleave is free; assemble the flat padded
        # activation with one lane concatenate (top/bottom zero rows + zero tail).
        zrow = jnp.zeros((cout, wp_out), bf16)
        tail = jnp.zeros((cout, l_out - (2 * h + 1) * wp_out), bf16)
        pieces = [zrow] + [z[q * cout:(q + 1) * cout, :] for q in range(2 * h)] + [tail]
        return jnp.concatenate(pieces, axis=1)                            # (cout, l_out)

    def kernel(x0_ref, w1_ref, b1_ref, sw10_ref, sw11_ref,
               w2_ref, b2_ref, sw20_ref, sw21_ref,
               w3_ref, b3_ref, uw_ref, uh_ref, o_ref):
        x0 = x0_ref[0].astype(bf16)                                       # (Cin, L0)

        # -------- deconv1 (4x4,s2,p1) + BN + ReLU -> flat padded (C1, L1) ---------
        x1 = deconv_stage(x0, w1_ref, b1_ref, sw10_ref, sw11_ref,
                          c1, h0, wp0, m0, wp1, l1)

        # -------- deconv2 (4x4,s2,p1) + BN + ReLU -> flat padded (C2, L2) ---------
        x2 = deconv_stage(x1, w2_ref, b2_ref, sw20_ref, sw21_ref,
                          c2, h1, wp1, m1, wp2, l2)

        # -------- conv3x3 (pad 1) + BN + ReLU --------------------------------------
        p2 = patches(x2, wp2, m2)                                         # (9*C2, M2)
        y3 = jnp.dot(w3_ref[...], p2, preferred_element_type=f32)        # (Co, M2)
        y3 = jnp.maximum(y3 + b3_ref[...], 0.0).astype(bf16)

        # -------- fused 4x bilinear upsample (two composed 2x upsamples) -----------
        # pull image rows out of the lane dim: (h2*Co, wp2), rows (iy, c), iy major
        t0 = jnp.concatenate([y3[:, i * wp2:(i + 1) * wp2] for i in range(h2)], axis=0)
        # batched width pass (pad lanes killed by zero rows of uw), then one
        # block-structured height pass covering all channels.
        t1 = jnp.dot(t0, uw_ref[...], preferred_element_type=f32).astype(bf16)
        out = jnp.dot(uh_ref[...], t1, preferred_element_type=f32)       # (Co*out_h, out_w)
        for c in range(co):
            o_ref[0, c] = out[c * out_h:(c + 1) * out_h, :]

    return kernel


def make_decoder_forward(dims, params):
    d = dims
    n, cin, co = d["n"], d["cin"], d["co"]
    c1, c2 = d["c1"], d["c2"]
    h0, w0, wp0, l0 = d["h0"], d["w0"], d["wp0"], d["l0"]
    h2, w2 = d["h2"], d["w2"]
    out_h, out_w = 4 * h2, 4 * w2

    def const_spec(shape):
        nd = len(shape)
        return pl.BlockSpec(shape, lambda i, nd=nd: (0,) * nd)

    in_specs = [
        pl.BlockSpec((1, cin, l0), lambda i: (i, 0, 0)),    # input (per batch element)
        const_spec((4 * c1, 9 * cin)),                      # w1 (BN scale folded)
        const_spec((4 * c1, 1)),                            # b1 (BN shift)
        const_spec((wp0, d["wp1"])),                        # sw10
        const_spec((wp0, d["wp1"])),                        # sw11
        const_spec((4 * c2, 9 * c1)),                       # w2
        const_spec((4 * c2, 1)),                            # b2
        const_spec((d["wp1"], d["wp2"])),                   # sw20
        const_spec((d["wp1"], d["wp2"])),                   # sw21
        const_spec((co, 9 * c2)),                           # w3
        const_spec((co, 1)),                                # b3
        const_spec((d["wp2"], out_w)),                      # uw (width 4x upsample)
        const_spec((co * out_h, h2 * co)),                  # uh (height 4x upsample)
    ]
    out_spec = pl.BlockSpec((1, co, out_h, out_w), lambda i: (i, 0, 0, 0))

    flops = n * (
        2 * (4 * c1) * (9 * cin) * d["m0"]
        + 2 * 2 * (2 * c1 * h0) * wp0 * d["wp1"]
        + 2 * (4 * c2) * (9 * c1) * d["m1"]
        + 2 * 2 * (2 * c2 * d["h1"]) * d["wp1"] * d["wp2"]
        + 2 * co * (9 * c2) * d["m2"]
        + 2 * (h2 * co) * d["wp2"] * out_w
        + 2 * (co * out_h) * (h2 * co) * out_w)
    const_bytes = sum(int(v.size) * v.dtype.itemsize for v in params.values())
    bytes_accessed = (n * cin * l0 * 4) + const_bytes + (n * co * out_h * out_w * 4)

    call = pl.pallas_call(
        _make_decoder_kernel(d),
        out_shape=jax.ShapeDtypeStruct((n, co, out_h, out_w), jnp.float32),
        grid=(n,),
        in_specs=in_specs,
        out_specs=out_spec,
        compiler_params=pltpu.CompilerParams(dimension_semantics=("parallel",)),
        cost_estimate=pl.CostEstimate(flops=int(flops), transcendentals=0,
                                      bytes_accessed=int(bytes_accessed)),
    )

    def forward(x):
        # zero-pad by 1, flatten spatial row-major and pad to a 128-multiple tail so
        # every patch shift inside the kernel is a plain static lane slice.
        xp = jnp.pad(x, ((0, 0), (0, 0), (1, 1), (1, 1)))
        flat = xp.reshape(n, cin, (h0 + 2) * wp0)
        x0 = jnp.pad(flat, ((0, 0), (0, 0), (0, l0 - (h0 + 2) * wp0)))
        return call(x0,
                    params["w1"], params["b1"], params["sw10"], params["sw11"],
                    params["w2"], params["b2"], params["sw20"], params["sw21"],
                    params["w3"], params["b3"], params["uw"], params["uh"])

    return forward


# ----------------------------------------------------------------------------
# Deterministic parameter construction + run
# ----------------------------------------------------------------------------
def make_bn_params(C):
    gamma = 1.0 + 0.1 * np.arange(C, dtype=np.float32)
    beta = 0.05 * np.arange(C, dtype=np.float32) - 0.1
    mean = 0.02 * np.arange(C, dtype=np.float32)
    var = 1.0 + 0.03 * np.arange(C, dtype=np.float32)
    return gamma, beta, mean, var


if __name__ == "__main__":
    # Decoder config: num_deconv=2, num_filters=[8, 8], deconv_kernels=[4, 4]
    in_channels, out_channels = 4, 4
    num_filters = [8, 8]
    N, H0, W0 = 2, 8, 8

    key = jax.random.PRNGKey(0)
    k1, k2, k3, kx = jax.random.split(key, 4)

    # ConvTranspose2d weights: (Cin, Cout, 4, 4), bias=False
    wt1 = 0.1 * jax.random.normal(k1, (in_channels, num_filters[0], 4, 4), jnp.float32)
    wt2 = 0.1 * jax.random.normal(k2, (num_filters[0], num_filters[1], 4, 4), jnp.float32)
    # Conv2d weight: (Cout, Cin, 3, 3), bias initialized to 0 (normal_init(..., bias=0))
    wc = 0.1 * jax.random.normal(k3, (out_channels, num_filters[1], 3, 3), jnp.float32)
    bc = jnp.zeros((out_channels,), jnp.float32)

    params, dims = build_decoder_params(
        wt1, wt2, wc, bc,
        make_bn_params(num_filters[0]),
        make_bn_params(num_filters[1]),
        make_bn_params(out_channels),
        (N, in_channels, H0, W0))

    forward = jax.jit(make_decoder_forward(dims, params))

    # input: NCHW, (2, 4, 8, 8)  ->  output (2, 4, 128, 128)
    x = jax.random.normal(kx, (N, in_channels, H0, W0), jnp.float32)

    out = forward(x)
    jax.block_until_ready(out)
    assert out.shape == (N, out_channels, 16 * H0, 16 * W0), out.shape
    print("KERNEL_OK")
</pallas_src>

<mosaic_0001>
module attributes {stable_mosaic.version = 11 : i64} {
  func.func @kernel(%arg0: i32, %arg1: memref<1x4x128xf32, #tpu.memory_space<vmem>>, %arg2: memref<32x36xbf16, #tpu.memory_space<vmem>>, %arg3: memref<32x1xf32, #tpu.memory_space<vmem>>, %arg4: memref<10x18xbf16, #tpu.memory_space<vmem>>, %arg5: memref<10x18xbf16, #tpu.memory_space<vmem>>, %arg6: memref<32x72xbf16, #tpu.memory_space<vmem>>, %arg7: memref<32x1xf32, #tpu.memory_space<vmem>>, %arg8: memref<18x34xbf16, #tpu.memory_space<vmem>>, %arg9: memref<18x34xbf16, #tpu.memory_space<vmem>>, %arg10: memref<4x72xbf16, #tpu.memory_space<vmem>>, %arg11: memref<4x1xf32, #tpu.memory_space<vmem>>, %arg12: memref<34x128xbf16, #tpu.memory_space<vmem>>, %arg13: memref<512x128xbf16, #tpu.memory_space<vmem>>, %arg14: memref<1x4x128x128xf32, #tpu.memory_space<vmem>>) attributes {dimension_semantics = [#tpu.dimension_semantics<parallel>], iteration_bounds = array<i64: 2>, scalar_prefetch = 0 : i64, scratch_operands = 0 : i64, tpu.core_type = #tpu.core_type<tc>, window_params = [{transform_indices = @transform_0, window_bounds = array<i64: 1, 4, 128>}, {pipeline_mode = #tpu.pipeline_mode<synchronous>, transform_indices = @transform_1, window_bounds = array<i64: 32, 36>}, {pipeline_mode = #tpu.pipeline_mode<synchronous>, transform_indices = @transform_2, window_bounds = array<i64: 32, 1>}, {pipeline_mode = #tpu.pipeline_mode<synchronous>, transform_indices = @transform_3, window_bounds = array<i64: 10, 18>}, {pipeline_mode = #tpu.pipeline_mode<synchronous>, transform_indices = @transform_4, window_bounds = array<i64: 10, 18>}, {pipeline_mode = #tpu.pipeline_mode<synchronous>, transform_indices = @transform_5, window_bounds = array<i64: 32, 72>}, {pipeline_mode = #tpu.pipeline_mode<synchronous>, transform_indices = @transform_6, window_bounds = array<i64: 32, 1>}, {pipeline_mode = #tpu.pipeline_mode<synchronous>, transform_indices = @transform_7, window_bounds = array<i64: 18, 34>}, {pipeline_mode = #tpu.pipeline_mode<synchronous>, transform_indices = @transform_8, window_bounds = array<i64: 18, 34>}, {pipeline_mode = #tpu.pipeline_mode<synchronous>, transform_indices = @transform_9, window_bounds = array<i64: 4, 72>}, {pipeline_mode = #tpu.pipeline_mode<synchronous>, transform_indices = @transform_10, window_bounds = array<i64: 4, 1>}, {pipeline_mode = #tpu.pipeline_mode<synchronous>, transform_indices = @transform_11, window_bounds = array<i64: 34, 128>}, {pipeline_mode = #tpu.pipeline_mode<synchronous>, transform_indices = @transform_12, window_bounds = array<i64: 512, 128>}, {transform_indices = @transform_13, window_bounds = array<i64: 1, 4, 128, 128>}]} {
    %c0 = arith.constant 0 : index
    %c0_0 = arith.constant 0 : index
    %c0_1 = arith.constant 0 : index
    %0 = vector.load %arg1[%c0, %c0_0, %c0_1] : memref<1x4x128xf32, #tpu.memory_space<vmem>>, vector<1x4x128xf32>
    %1 = vector.shape_cast %0 : vector<1x4x128xf32> to vector<4x128xf32>
    %2 = arith.truncf %1 : vector<4x128xf32> to vector<4x128xbf16>
    %3 = vector.extract_strided_slice %2 {offsets = [0, 0], sizes = [4, 80], strides = [1, 1]} : vector<4x128xbf16> to vector<4x80xbf16>
    %4 = vector.extract_strided_slice %2 {offsets = [0, 1], sizes = [4, 80], strides = [1, 1]} : vector<4x128xbf16> to vector<4x80xbf16>
    %5 = vector.extract_strided_slice %2 {offsets = [0, 2], sizes = [4, 80], strides = [1, 1]} : vector<4x128xbf16> to vector<4x80xbf16>
    %6 = vector.extract_strided_slice %2 {offsets = [0, 10], sizes = [4, 80], strides = [1, 1]} : vector<4x128xbf16> to vector<4x80xbf16>
    %7 = vector.extract_strided_slice %2 {offsets = [0, 11], sizes = [4, 80], strides = [1, 1]} : vector<4x128xbf16> to vector<4x80xbf16>
    %8 = vector.extract_strided_slice %2 {offsets = [0, 12], sizes = [4, 80], strides = [1, 1]} : vector<4x128xbf16> to vector<4x80xbf16>
    %9 = vector.extract_strided_slice %2 {offsets = [0, 20], sizes = [4, 80], strides = [1, 1]} : vector<4x128xbf16> to vector<4x80xbf16>
    %10 = vector.extract_strided_slice %2 {offsets = [0, 21], sizes = [4, 80], strides = [1, 1]} : vector<4x128xbf16> to vector<4x80xbf16>
    %11 = vector.extract_strided_slice %2 {offsets = [0, 22], sizes = [4, 80], strides = [1, 1]} : vector<4x128xbf16> to vector<4x80xbf16>
    %12 = tpu.concatenate %3, %4, %5, %6, %7, %8, %9, %10, %11 in 0 : vector<4x80xbf16>, vector<4x80xbf16>, vector<4x80xbf16>, vector<4x80xbf16>, vector<4x80xbf16>, vector<4x80xbf16>, vector<4x80xbf16>, vector<4x80xbf16>, vector<4x80xbf16> -> vector<36x80xbf16>
    %c0_2 = arith.constant 0 : index
    %c0_3 = arith.constant 0 : index
    %13 = vector.load %arg2[%c0_2, %c0_3] : memref<32x36xbf16, #tpu.memory_space<vmem>>, vector<32x36xbf16>
    %cst = arith.constant dense<0.000000e+00> : vector<32x80xf32>
    %14 = tpu.matmul %13, %12, %cst {dimension_numbers = #tpu.dot_dimension_numbers<[1], [0], [0], [1], [0, 0, 1, 1], [], []>} : vector<32x36xbf16>, vector<36x80xbf16>, vector<32x80xf32> -> vector<32x80xf32>
    %c0_4 = arith.constant 0 : index
    %c0_5 = arith.constant 0 : index
    %15 = vector.load %arg3[%c0_4, %c0_5] : memref<32x1xf32, #tpu.memory_space<vmem>>, vector<32x1xf32>
    %16 = vector.broadcast %15 : vector<32x1xf32> to vector<32x80xf32>
    %17 = arith.addf %14, %16 : vector<32x80xf32>
    %cst_6 = arith.constant 0.000000e+00 : f32
    %18 = vector.broadcast %cst_6 : f32 to vector<32x80xf32>
    %19 = arith.maximumf %17, %18 : vector<32x80xf32>
    %20 = arith.truncf %19 : vector<32x80xf32> to vector<32x80xbf16>
    %21 = vector.extract_strided_slice %20 {offsets = [0, 0], sizes = [8, 80], strides = [1, 1]} : vector<32x80xbf16> to vector<8x80xbf16>
    %22 = vector.extract_strided_slice %20 {offsets = [16, 0], sizes = [8, 80], strides = [1, 1]} : vector<32x80xbf16> to vector<8x80xbf16>
    %23 = tpu.concatenate %21, %22 in 0 : vector<8x80xbf16>, vector<8x80xbf16> -> vector<16x80xbf16>
    %24 = vector.extract_strided_slice %20 {offsets = [8, 0], sizes = [8, 80], strides = [1, 1]} : vector<32x80xbf16> to vector<8x80xbf16>
    %25 = vector.extract_strided_slice %20 {offsets = [24, 0], sizes = [8, 80], strides = [1, 1]} : vector<32x80xbf16> to vector<8x80xbf16>
    %26 = tpu.concatenate %24, %25 in 0 : vector<8x80xbf16>, vector<8x80xbf16> -> vector<16x80xbf16>
    %27 = vector.extract_strided_slice %23 {offsets = [0, 0], sizes = [16, 10], strides = [1, 1]} : vector<16x80xbf16> to vector<16x10xbf16>
    %28 = vector.extract_strided_slice %23 {offsets = [0, 10], sizes = [16, 10], strides = [1, 1]} : vector<16x80xbf16> to vector<16x10xbf16>
    %29 = vector.extract_strided_slice %23 {offsets = [0, 20], sizes = [16, 10], strides = [1, 1]} : vector<16x80xbf16> to vector<16x10xbf16>
    %30 = vector.extract_strided_slice %23 {offsets = [0, 30], sizes = [16, 10], strides = [1, 1]} : vector<16x80xbf16> to vector<16x10xbf16>
    %31 = vector.extract_strided_slice %23 {offsets = [0, 40], sizes = [16, 10], strides = [1, 1]} : vector<16x80xbf16> to vector<16x10xbf16>
    %32 = vector.extract_strided_slice %23 {offsets = [0, 50], sizes = [16, 10], strides = [1, 1]} : vector<16x80xbf16> to vector<16x10xbf16>
    %33 = vector.extract_strided_slice %23 {offsets = [0, 60], sizes = [16, 10], strides = [1, 1]} : vector<16x80xbf16> to vector<16x10xbf16>
    %34 = vector.extract_strided_slice %23 {offsets = [0, 70], sizes = [16, 10], strides = [1, 1]} : vector<16x80xbf16> to vector<16x10xbf16>
    %35 = tpu.concatenate %27, %28, %29, %30, %31, %32, %33, %34 in 0 : vector<16x10xbf16>, vector<16x10xbf16>, vector<16x10xbf16>, vector<16x10xbf16>, vector<16x10xbf16>, vector<16x10xbf16>, vector<16x10xbf16>, vector<16x10xbf16> -> vector<128x10xbf16>
    %36 = vector.extract_strided_slice %26 {offsets = [0, 0], sizes = [16, 10], strides = [1, 1]} : vector<16x80xbf16> to vector<16x10xbf16>
    %37 = vector.extract_strided_slice %26 {offsets = [0, 10], sizes = [16, 10], strides = [1, 1]} : vector<16x80xbf16> to vector<16x10xbf16>
    %38 = vector.extract_strided_slice %26 {offsets = [0, 20], sizes = [16, 10], strides = [1, 1]} : vector<16x80xbf16> to vector<16x10xbf16>
    %39 = vector.extract_strided_slice %26 {offsets = [0, 30], sizes = [16, 10], strides = [1, 1]} : vector<16x80xbf16> to vector<16x10xbf16>
    %40 = vector.extract_strided_slice %26 {offsets = [0, 40], sizes = [16, 10], strides = [1, 1]} : vector<16x80xbf16> to vector<16x10xbf16>
    %41 = vector.extract_strided_slice %26 {offsets = [0, 50], sizes = [16, 10], strides = [1, 1]} : vector<16x80xbf16> to vector<16x10xbf16>
    %42 = vector.extract_strided_slice %26 {offsets = [0, 60], sizes = [16, 10], strides = [1, 1]} : vector<16x80xbf16> to vector<16x10xbf16>
    %43 = vector.extract_strided_slice %26 {offsets = [0, 70], sizes = [16, 10], strides = [1, 1]} : vector<16x80xbf16> to vector<16x10xbf16>
    %44 = tpu.concatenate %36, %37, %38, %39, %40, %41, %42, %43 in 0 : vector<16x10xbf16>, vector<16x10xbf16>, vector<16x10xbf16>, vector<16x10xbf16>, vector<16x10xbf16>, vector<16x10xbf16>, vector<16x10xbf16>, vector<16x10xbf16> -> vector<128x10xbf16>
    %c0_7 = arith.constant 0 : index
    %c0_8 = arith.constant 0 : index
    %45 = vector.load %arg4[%c0_7, %c0_8] : memref<10x18xbf16, #tpu.memory_space<vmem>>, vector<10x18xbf16>
    %cst_9 = arith.constant dense<0.000000e+00> : vector<128x18xf32>
    %46 = tpu.matmul %35, %45, %cst_9 {dimension_numbers = #tpu.dot_dimension_numbers<[1], [0], [0], [1], [0, 0, 1, 1], [], []>} : vector<128x10xbf16>, vector<10x18xbf16>, vector<128x18xf32> -> vector<128x18xf32>
    %c0_10 = arith.constant 0 : index
    %c0_11 = arith.constant 0 : index
    %47 = vector.load %arg5[%c0_10, %c0_11] : memref<10x18xbf16, #tpu.memory_space<vmem>>, vector<10x18xbf16>
    %cst_12 = arith.constant dense<0.000000e+00> : vector<128x18xf32>
    %48 = tpu.matmul %44, %47, %cst_12 {dimension_numbers = #tpu.dot_dimension_numbers<[1], [0], [0], [1], [0, 0, 1, 1], [], []>} : vector<128x10xbf16>, vector<10x18xbf16>, vector<128x18xf32> -> vector<128x18xf32>
    %49 = arith.addf %46, %48 : vector<128x18xf32>
    %50 = arith.truncf %49 : vector<128x18xf32> to vector<128x18xbf16>
    %cst_13 = arith.constant 0.000000e+00 : bf16
    %51 = vector.broadcast %cst_13 : bf16 to vector<8x18xbf16>
    %cst_14 = arith.constant 0.000000e+00 : bf16
    %52 = vector.broadcast %cst_14 : bf16 to vector<8x78xbf16>
    %53 = vector.extract_strided_slice %50 {offsets = [0, 0], sizes = [8, 18], strides = [1, 1]} : vector<128x18xbf16> to vector<8x18xbf16>
    %54 = vector.extract_strided_slice %50 {offsets = [8, 0], sizes = [8, 18], strides = [1, 1]} : vector<128x18xbf16> to vector<8x18xbf16>
    %55 = vector.extract_strided_slice %50 {offsets = [16, 0], sizes = [8, 18], strides = [1, 1]} : vector<128x18xbf16> to vector<8x18xbf16>
    %56 = vector.extract_strided_slice %50 {offsets = [24, 0], sizes = [8, 18], strides = [1, 1]} : vector<128x18xbf16> to vector<8x18xbf16>
    %57 = vector.extract_strided_slice %50 {offsets = [32, 0], sizes = [8, 18], strides = [1, 1]} : vector<128x18xbf16> to vector<8x18xbf16>
    %58 = vector.extract_strided_slice %50 {offsets = [40, 0], sizes = [8, 18], strides = [1, 1]} : vector<128x18xbf16> to vector<8x18xbf16>
    %59 = vector.extract_strided_slice %50 {offsets = [48, 0], sizes = [8, 18], strides = [1, 1]} : vector<128x18xbf16> to vector<8x18xbf16>
    %60 = vector.extract_strided_slice %50 {offsets = [56, 0], sizes = [8, 18], strides = [1, 1]} : vector<128x18xbf16> to vector<8x18xbf16>
    %61 = vector.extract_strided_slice %50 {offsets = [64, 0], sizes = [8, 18], strides = [1, 1]} : vector<128x18xbf16> to vector<8x18xbf16>
    %62 = vector.extract_strided_slice %50 {offsets = [72, 0], sizes = [8, 18], strides = [1, 1]} : vector<128x18xbf16> to vector<8x18xbf16>
    %63 = vector.extract_strided_slice %50 {offsets = [80, 0], sizes = [8, 18], strides = [1, 1]} : vector<128x18xbf16> to vector<8x18xbf16>
    %64 = vector.extract_strided_slice %50 {offsets = [88, 0], sizes = [8, 18], strides = [1, 1]} : vector<128x18xbf16> to vector<8x18xbf16>
    %65 = vector.extract_strided_slice %50 {offsets = [96, 0], sizes = [8, 18], strides = [1, 1]} : vector<128x18xbf16> to vector<8x18xbf16>
    %66 = vector.extract_strided_slice %50 {offsets = [104, 0], sizes = [8, 18], strides = [1, 1]} : vector<128x18xbf16> to vector<8x18xbf16>
    %67 = vector.extract_strided_slice %50 {offsets = [112, 0], sizes = [8, 18], strides = [1, 1]} : vector<128x18xbf16> to vector<8x18xbf16>
    %68 = vector.extract_strided_slice %50 {offsets = [120, 0], sizes = [8, 18], strides = [1, 1]} : vector<128x18xbf16> to vector<8x18xbf16>
    %69 = tpu.concatenate %51, %53, %54, %55, %56, %57, %58, %59, %60, %61, %62, %63, %64, %65, %66, %67 in 1 : vector<8x18xbf16>, vector<8x18xbf16>, vector<8x18xbf16>, vector<8x18xbf16>, vector<8x18xbf16>, vector<8x18xbf16>, vector<8x18xbf16>, vector<8x18xbf16>, vector<8x18xbf16>, vector<8x18xbf16>, vector<8x18xbf16>, vector<8x18xbf16>, vector<8x18xbf16>, vector<8x18xbf16>, vector<8x18xbf16>, vector<8x18xbf16> -> vector<8x288xbf16>
    %70 = tpu.concatenate %68, %52 in 1 : vector<8x18xbf16>, vector<8x78xbf16> -> vector<8x96xbf16>
    %71 = tpu.concatenate %69, %70 in 1 : vector<8x288xbf16>, vector<8x96xbf16> -> vector<8x384xbf16>
    %72 = vector.extract_strided_slice %71 {offsets = [0, 0], sizes = [8, 288], strides = [1, 1]} : vector<8x384xbf16> to vector<8x288xbf16>
    %73 = vector.extract_strided_slice %71 {offsets = [0, 1], sizes = [8, 288], strides = [1, 1]} : vector<8x384xbf16> to vector<8x288xbf16>
    %74 = vector.extract_strided_slice %71 {offsets = [0, 2], sizes = [8, 288], strides = [1, 1]} : vector<8x384xbf16> to vector<8x288xbf16>
    %75 = vector.extract_strided_slice %71 {offsets = [0, 18], sizes = [8, 288], strides = [1, 1]} : vector<8x384xbf16> to vector<8x288xbf16>
    %76 = vector.extract_strided_slice %71 {offsets = [0, 19], sizes = [8, 288], strides = [1, 1]} : vector<8x384xbf16> to vector<8x288xbf16>
    %77 = vector.extract_strided_slice %71 {offsets = [0, 20], sizes = [8, 288], strides = [1, 1]} : vector<8x384xbf16> to vector<8x288xbf16>
    %78 = vector.extract_strided_slice %71 {offsets = [0, 36], sizes = [8, 288], strides = [1, 1]} : vector<8x384xbf16> to vector<8x288xbf16>
    %79 = vector.extract_strided_slice %71 {offsets = [0, 37], sizes = [8, 288], strides = [1, 1]} : vector<8x384xbf16> to vector<8x288xbf16>
    %80 = vector.extract_strided_slice %71 {offsets = [0, 38], sizes = [8, 288], strides = [1, 1]} : vector<8x384xbf16> to vector<8x288xbf16>
    %81 = tpu.concatenate %72, %73, %74, %75, %76, %77, %78, %79, %80 in 0 : vector<8x288xbf16>, vector<8x288xbf16>, vector<8x288xbf16>, vector<8x288xbf16>, vector<8x288xbf16>, vector<8x288xbf16>, vector<8x288xbf16>, vector<8x288xbf16>, vector<8x288xbf16> -> vector<72x288xbf16>
    %c0_15 = arith.constant 0 : index
    %c0_16 = arith.constant 0 : index
    %82 = vector.load %arg6[%c0_15, %c0_16] : memref<32x72xbf16, #tpu.memory_space<vmem>>, vector<32x72xbf16>
    %cst_17 = arith.constant dense<0.000000e+00> : vector<32x288xf32>
    %83 = tpu.matmul %82, %81, %cst_17 {dimension_numbers = #tpu.dot_dimension_numbers<[1], [0], [0], [1], [0, 0, 1, 1], [], []>} : vector<32x72xbf16>, vector<72x288xbf16>, vector<32x288xf32> -> vector<32x288xf32>
    %c0_18 = arith.constant 0 : index
    %c0_19 = arith.constant 0 : index
    %84 = vector.load %arg7[%c0_18, %c0_19] : memref<32x1xf32, #tpu.memory_space<vmem>>, vector<32x1xf32>
    %85 = vector.broadcast %84 : vector<32x1xf32> to vector<32x288xf32>
    %86 = arith.addf %83, %85 : vector<32x288xf32>
    %cst_20 = arith.constant 0.000000e+00 : f32
    %87 = vector.broadcast %cst_20 : f32 to vector<32x288xf32>
    %88 = arith.maximumf %86, %87 : vector<32x288xf32>
    %89 = arith.truncf %88 : vector<32x288xf32> to vector<32x288xbf16>
    %90 = vector.extract_strided_slice %89 {offsets = [0, 0], sizes = [8, 288], strides = [1, 1]} : vector<32x288xbf16> to vector<8x288xbf16>
    %91 = vector.extract_strided_slice %89 {offsets = [16, 0], sizes = [8, 288], strides = [1, 1]} : vector<32x288xbf16> to vector<8x288xbf16>
    %92 = tpu.concatenate %90, %91 in 0 : vector<8x288xbf16>, vector<8x288xbf16> -> vector<16x288xbf16>
    %93 = vector.extract_strided_slice %89 {offsets = [8, 0], sizes = [8, 288], strides = [1, 1]} : vector<32x288xbf16> to vector<8x288xbf16>
    %94 = vector.extract_strided_slice %89 {offsets = [24, 0], sizes = [8, 288], strides = [1, 1]} : vector<32x288xbf16> to vector<8x288xbf16>
    %95 = tpu.concatenate %93, %94 in 0 : vector<8x288xbf16>, vector<8x288xbf16> -> vector<16x288xbf16>
    %96 = vector.extract_strided_slice %92 {offsets = [0, 0], sizes = [16, 18], strides = [1, 1]} : vector<16x288xbf16> to vector<16x18xbf16>
    %97 = vector.extract_strided_slice %92 {offsets = [0, 18], sizes = [16, 18], strides = [1, 1]} : vector<16x288xbf16> to vector<16x18xbf16>
    %98 = vector.extract_strided_slice %92 {offsets = [0, 36], sizes = [16, 18], strides = [1, 1]} : vector<16x288xbf16> to vector<16x18xbf16>
    %99 = vector.extract_strided_slice %92 {offsets = [0, 54], sizes = [16, 18], strides = [1, 1]} : vector<16x288xbf16> to vector<16x18xbf16>
    %100 = vector.extract_strided_slice %92 {offsets = [0, 72], sizes = [16, 18], strides = [1, 1]} : vector<16x288xbf16> to vector<16x18xbf16>
    %101 = vector.extract_strided_slice %92 {offsets = [0, 90], sizes = [16, 18], strides = [1, 1]} : vector<16x288xbf16> to vector<16x18xbf16>
    %102 = vector.extract_strided_slice %92 {offsets = [0, 108], sizes = [16, 18], strides = [1, 1]} : vector<16x288xbf16> to vector<16x18xbf16>
    %103 = vector.extract_strided_slice %92 {offsets = [0, 126], sizes = [16, 18], strides = [1, 1]} : vector<16x288xbf16> to vector<16x18xbf16>
    %104 = vector.extract_strided_slice %92 {offsets = [0, 144], sizes = [16, 18], strides = [1, 1]} : vector<16x288xbf16> to vector<16x18xbf16>
    %105 = vector.extract_strided_slice %92 {offsets = [0, 162], sizes = [16, 18], strides = [1, 1]} : vector<16x288xbf16> to vector<16x18xbf16>
    %106 = vector.extract_strided_slice %92 {offsets = [0, 180], sizes = [16, 18], strides = [1, 1]} : vector<16x288xbf16> to vector<16x18xbf16>
    %107 = vector.extract_strided_slice %92 {offsets = [0, 198], sizes = [16, 18], strides = [1, 1]} : vector<16x288xbf16> to vector<16x18xbf16>
    %108 = vector.extract_strided_slice %92 {offsets = [0, 216], sizes = [16, 18], strides = [1, 1]} : vector<16x288xbf16> to vector<16x18xbf16>
    %109 = vector.extract_strided_slice %92 {offsets = [0, 234], sizes = [16, 18], strides = [1, 1]} : vector<16x288xbf16> to vector<16x18xbf16>
    %110 = vector.extract_strided_slice %92 {offsets = [0, 252], sizes = [16, 18], strides = [1, 1]} : vector<16x288xbf16> to vector<16x18xbf16>
    %111 = vector.extract_strided_slice %92 {offsets = [0, 270], sizes = [16, 18], strides = [1, 1]} : vector<16x288xbf16> to vector<16x18xbf16>
    %112 = tpu.concatenate %96, %97, %98, %99, %100, %101, %102, %103, %104, %105, %106, %107, %108, %109, %110, %111 in 0 : vector<16x18xbf16>, vector<16x18xbf16>, vector<16x18xbf16>, vector<16x18xbf16>, vector<16x18xbf16>, vector<16x18xbf16>, vector<16x18xbf16>, vector<16x18xbf16>, vector<16x18xbf16>, vector<16x18xbf16>, vector<16x18xbf16>, vector<16x18xbf16>, vector<16x18xbf16>, vector<16x18xbf16>, vector<16x18xbf16>, vector<16x18xbf16> -> vector<256x18xbf16>
    %113 = vector.extract_strided_slice %95 {offsets = [0, 0], sizes = [16, 18], strides = [1, 1]} : vector<16x288xbf16> to vector<16x18xbf16>
    %114 = vector.extract_strided_slice %95 {offsets = [0, 18], sizes = [16, 18], strides = [1, 1]} : vector<16x288xbf16> to vector<16x18xbf16>
    %115 = vector.extract_strided_slice %95 {offsets = [0, 36], sizes = [16, 18], strides = [1, 1]} : vector<16x288xbf16> to vector<16x18xbf16>
    %116 = vector.extract_strided_slice %95 {offsets = [0, 54], sizes = [16, 18], strides = [1, 1]} : vector<16x288xbf16> to vector<16x18xbf16>
    %117 = vector.extract_strided_slice %95 {offsets = [0, 72], sizes = [16, 18], strides = [1, 1]} : vector<16x288xbf16> to vector<16x18xbf16>
    %118 = vector.extract_strided_slice %95 {offsets = [0, 90], sizes = [16, 18], strides = [1, 1]} : vector<16x288xbf16> to vector<16x18xbf16>
    %119 = vector.extract_strided_slice %95 {offsets = [0, 108], sizes = [16, 18], strides = [1, 1]} : vector<16x288xbf16> to vector<16x18xbf16>
    %120 = vector.extract_strided_slice %95 {offsets = [0, 126], sizes = [16, 18], strides = [1, 1]} : vector<16x288xbf16> to vector<16x18xbf16>
    %121 = vector.extract_strided_slice %95 {offsets = [0, 144], sizes = [16, 18], strides = [1, 1]} : vector<16x288xbf16> to vector<16x18xbf16>
    %122 = vector.extract_strided_slice %95 {offsets = [0, 162], sizes = [16, 18], strides = [1, 1]} : vector<16x288xbf16> to vector<16x18xbf16>
    %123 = vector.extract_strided_slice %95 {offsets = [0, 180], sizes = [16, 18], strides = [1, 1]} : vector<16x288xbf16> to vector<16x18xbf16>
    %124 = vector.extract_strided_slice %95 {offsets = [0, 198], sizes = [16, 18], strides = [1, 1]} : vector<16x288xbf16> to vector<16x18xbf16>
    %125 = vector.extract_strided_slice %95 {offsets = [0, 216], sizes = [16, 18], strides = [1, 1]} : vector<16x288xbf16> to vector<16x18xbf16>
    %126 = vector.extract_strided_slice %95 {offsets = [0, 234], sizes = [16, 18], strides = [1, 1]} : vector<16x288xbf16> to vector<16x18xbf16>
    %127 = vector.extract_strided_slice %95 {offsets = [0, 252], sizes = [16, 18], strides = [1, 1]} : vector<16x288xbf16> to vector<16x18xbf16>
    %128 = vector.extract_strided_slice %95 {offsets = [0, 270], sizes = [16, 18], strides = [1, 1]} : vector<16x288xbf16> to vector<16x18xbf16>
    %129 = tpu.concatenate %113, %114, %115, %116, %117, %118, %119, %120, %121, %122, %123, %124, %125, %126, %127, %128 in 0 : vector<16x18xbf16>, vector<16x18xbf16>, vector<16x18xbf16>, vector<16x18xbf16>, vector<16x18xbf16>, vector<16x18xbf16>, vector<16x18xbf16>, vector<16x18xbf16>, vector<16x18xbf16>, vector<16x18xbf16>, vector<16x18xbf16>, vector<16x18xbf16>, vector<16x18xbf16>, vector<16x18xbf16>, vector<16x18xbf16>, vector<16x18xbf16> -> vector<256x18xbf16>
    %c0_21 = arith.constant 0 : index
    %c0_22 = arith.constant 0 : index
    %130 = vector.load %arg8[%c0_21, %c0_22] : memref<18x34xbf16, #tpu.memory_space<vmem>>, vector<18x34xbf16>
    %cst_23 = arith.constant dense<0.000000e+00> : vector<256x34xf32>
    %131 = tpu.matmul %112, %130, %cst_23 {dimension_numbers = #tpu.dot_dimension_numbers<[1], [0], [0], [1], [0, 0, 1, 1], [], []>} : vector<256x18xbf16>, vector<18x34xbf16>, vector<256x34xf32> -> vector<256x34xf32>
    %c0_24 = arith.constant 0 : index
    %c0_25 = arith.constant 0 : index
    %132 = vector.load %arg9[%c0_24, %c0_25] : memref<18x34xbf16, #tpu.memory_space<vmem>>, vector<18x34xbf16>
    %cst_26 = arith.constant dense<0.000000e+00> : vector<256x34xf32>
    %133 = tpu.matmul %129, %132, %cst_26 {dimension_numbers = #tpu.dot_dimension_numbers<[1], [0], [0], [1], [0, 0, 1, 1], [], []>} : vector<256x18xbf16>, vector<18x34xbf16>, vector<256x34xf32> -> vector<256x34xf32>
    %134 = arith.addf %131, %133 : vector<256x34xf32>
    %135 = arith.truncf %134 : vector<256x34xf32> to vector<256x34xbf16>
    %cst_27 = arith.constant 0.000000e+00 : bf16
    %136 = vector.broadcast %cst_27 : bf16 to vector<8x34xbf16>
    %cst_28 = arith.constant 0.000000e+00 : bf16
    %137 = vector.broadcast %cst_28 : bf16 to vector<8x158xbf16>
    %138 = vector.extract_strided_slice %135 {offsets = [0, 0], sizes = [8, 34], strides = [1, 1]} : vector<256x34xbf16> to vector<8x34xbf16>
    %139 = vector.extract_strided_slice %135 {offsets = [8, 0], sizes = [8, 34], strides = [1, 1]} : vector<256x34xbf16> to vector<8x34xbf16>
    %140 = vector.extract_strided_slice %135 {offsets = [16, 0], sizes = [8, 34], strides = [1, 1]} : vector<256x34xbf16> to vector<8x34xbf16>
    %141 = vector.extract_strided_slice %135 {offsets = [24, 0], sizes = [8, 34], strides = [1, 1]} : vector<256x34xbf16> to vector<8x34xbf16>
    %142 = vector.extract_strided_slice %135 {offsets = [32, 0], sizes = [8, 34], strides = [1, 1]} : vector<256x34xbf16> to vector<8x34xbf16>
    %143 = vector.extract_strided_slice %135 {offsets = [40, 0], sizes = [8, 34], strides = [1, 1]} : vector<256x34xbf16> to vector<8x34xbf16>
    %144 = vector.extract_strided_slice %135 {offsets = [48, 0], sizes = [8, 34], strides = [1, 1]} : vector<256x34xbf16> to vector<8x34xbf16>
    %145 = vector.extract_strided_slice %135 {offsets = [56, 0], sizes = [8, 34], strides = [1, 1]} : vector<256x34xbf16> to vector<8x34xbf16>
    %146 = vector.extract_strided_slice %135 {offsets = [64, 0], sizes = [8, 34], strides = [1, 1]} : vector<256x34xbf16> to vector<8x34xbf16>
    %147 = vector.extract_strided_slice %135 {offsets = [72, 0], sizes = [8, 34], strides = [1, 1]} : vector<256x34xbf16> to vector<8x34xbf16>
    %148 = vector.extract_strided_slice %135 {offsets = [80, 0], sizes = [8, 34], strides = [1, 1]} : vector<256x34xbf16> to vector<8x34xbf16>
    %149 = vector.extract_strided_slice %135 {offsets = [88, 0], sizes = [8, 34], strides = [1, 1]} : vector<256x34xbf16> to vector<8x34xbf16>
    %150 = vector.extract_strided_slice %135 {offsets = [96, 0], sizes = [8, 34], strides = [1, 1]} : vector<256x34xbf16> to vector<8x34xbf16>
    %151 = vector.extract_strided_slice %135 {offsets = [104, 0], sizes = [8, 34], strides = [1, 1]} : vector<256x34xbf16> to vector<8x34xbf16>
    %152 = vector.extract_strided_slice %135 {offsets = [112, 0], sizes = [8, 34], strides = [1, 1]} : vector<256x34xbf16> to vector<8x34xbf16>
    %153 = vector.extract_strided_slice %135 {offsets = [120, 0], sizes = [8, 34], strides = [1, 1]} : vector<256x34xbf16> to vector<8x34xbf16>
    %154 = vector.extract_strided_slice %135 {offsets = [128, 0], sizes = [8, 34], strides = [1, 1]} : vector<256x34xbf16> to vector<8x34xbf16>
    %155 = vector.extract_strided_slice %135 {offsets = [136, 0], sizes = [8, 34], strides = [1, 1]} : vector<256x34xbf16> to vector<8x34xbf16>
    %156 = vector.extract_strided_slice %135 {offsets = [144, 0], sizes = [8, 34], strides = [1, 1]} : vector<256x34xbf16> to vector<8x34xbf16>
    %157 = vector.extract_strided_slice %135 {offsets = [152, 0], sizes = [8, 34], strides = [1, 1]} : vector<256x34xbf16> to vector<8x34xbf16>
    %158 = vector.extract_strided_slice %135 {offsets = [160, 0], sizes = [8, 34], strides = [1, 1]} : vector<256x34xbf16> to vector<8x34xbf16>
    %159 = vector.extract_strided_slice %135 {offsets = [168, 0], sizes = [8, 34], strides = [1, 1]} : vector<256x34xbf16> to vector<8x34xbf16>
    %160 = vector.extract_strided_slice %135 {offsets = [176, 0], sizes = [8, 34], strides = [1, 1]} : vector<256x34xbf16> to vector<8x34xbf16>
    %161 = vector.extract_strided_slice %135 {offsets = [184, 0], sizes = [8, 34], strides = [1, 1]} : vector<256x34xbf16> to vector<8x34xbf16>
    %162 = vector.extract_strided_slice %135 {offsets = [192, 0], sizes = [8, 34], strides = [1, 1]} : vector<256x34xbf16> to vector<8x34xbf16>
    %163 = vector.extract_strided_slice %135 {offsets = [200, 0], sizes = [8, 34], strides = [1, 1]} : vector<256x34xbf16> to vector<8x34xbf16>
    %164 = vector.extract_strided_slice %135 {offsets = [208, 0], sizes = [8, 34], strides = [1, 1]} : vector<256x34xbf16> to vector<8x34xbf16>
    %165 = vector.extract_strided_slice %135 {offsets = [216, 0], sizes = [8, 34], strides = [1, 1]} : vector<256x34xbf16> to vector<8x34xbf16>
    %166 = vector.extract_strided_slice %135 {offsets = [224, 0], sizes = [8, 34], strides = [1, 1]} : vector<256x34xbf16> to vector<8x34xbf16>
    %167 = vector.extract_strided_slice %135 {offsets = [232, 0], sizes = [8, 34], strides = [1, 1]} : vector<256x34xbf16> to vector<8x34xbf16>
    %168 = vector.extract_strided_slice %135 {offsets = [240, 0], sizes = [8, 34], strides = [1, 1]} : vector<256x34xbf16> to vector<8x34xbf16>
    %169 = vector.extract_strided_slice %135 {offsets = [248, 0], sizes = [8, 34], strides = [1, 1]} : vector<256x34xbf16> to vector<8x34xbf16>
    %170 = tpu.concatenate %136, %138, %139, %140, %141, %142, %143, %144, %145, %146, %147, %148, %149, %150, %151, %152 in 1 : vector<8x34xbf16>, vector<8x34xbf16>, vector<8x34xbf16>, vector<8x34xbf16>, vector<8x34xbf16>, vector<8x34xbf16>, vector<8x34xbf16>, vector<8x34xbf16>, vector<8x34xbf16>, vector<8x34xbf16>, vector<8x34xbf16>, vector<8x34xbf16>, vector<8x34xbf16>, vector<8x34xbf16>, vector<8x34xbf16>, vector<8x34xbf16> -> vector<8x544xbf16>
    %171 = tpu.concatenate %153, %154, %155, %156, %157, %158, %159, %160, %161, %162, %163, %164, %165, %166, %167, %168 in 1 : vector<8x34xbf16>, vector<8x34xbf16>, vector<8x34xbf16>, vector<8x34xbf16>, vector<8x34xbf16>, vector<8x34xbf16>, vector<8x34xbf16>, vector<8x34xbf16>, vector<8x34xbf16>, vector<8x34xbf16>, vector<8x34xbf16>, vector<8x34xbf16>, vector<8x34xbf16>, vector<8x34xbf16>, vector<8x34xbf16>, vector<8x34xbf16> -> vector<8x544xbf16>
    %172 = tpu.concatenate %169, %137 in 1 : vector<8x34xbf16>, vector<8x158xbf16> -> vector<8x192xbf16>
    %173 = tpu.concatenate %170, %171, %172 in 1 : vector<8x544xbf16>, vector<8x544xbf16>, vector<8x192xbf16> -> vector<8x1280xbf16>
    %174 = vector.extract_strided_slice %173 {offsets = [0, 0], sizes = [8, 1088], strides = [1, 1]} : vector<8x1280xbf16> to vector<8x1088xbf16>
    %175 = vector.extract_strided_slice %173 {offsets = [0, 1], sizes = [8, 1088], strides = [1, 1]} : vector<8x1280xbf16> to vector<8x1088xbf16>
    %176 = vector.extract_strided_slice %173 {offsets = [0, 2], sizes = [8, 1088], strides = [1, 1]} : vector<8x1280xbf16> to vector<8x1088xbf16>
    %177 = vector.extract_strided_slice %173 {offsets = [0, 34], sizes = [8, 1088], strides = [1, 1]} : vector<8x1280xbf16> to vector<8x1088xbf16>
    %178 = vector.extract_strided_slice %173 {offsets = [0, 35], sizes = [8, 1088], strides = [1, 1]} : vector<8x1280xbf16> to vector<8x1088xbf16>
    %179 = vector.extract_strided_slice %173 {offsets = [0, 36], sizes = [8, 1088], strides = [1, 1]} : vector<8x1280xbf16> to vector<8x1088xbf16>
    %180 = vector.extract_strided_slice %173 {offsets = [0, 68], sizes = [8, 1088], strides = [1, 1]} : vector<8x1280xbf16> to vector<8x1088xbf16>
    %181 = vector.extract_strided_slice %173 {offsets = [0, 69], sizes = [8, 1088], strides = [1, 1]} : vector<8x1280xbf16> to vector<8x1088xbf16>
    %182 = vector.extract_strided_slice %173 {offsets = [0, 70], sizes = [8, 1088], strides = [1, 1]} : vector<8x1280xbf16> to vector<8x1088xbf16>
    %183 = tpu.concatenate %174, %175, %176, %177, %178, %179, %180, %181, %182 in 0 : vector<8x1088xbf16>, vector<8x1088xbf16>, vector<8x1088xbf16>, vector<8x1088xbf16>, vector<8x1088xbf16>, vector<8x1088xbf16>, vector<8x1088xbf16>, vector<8x1088xbf16>, vector<8x1088xbf16> -> vector<72x1088xbf16>
    %c0_29 = arith.constant 0 : index
    %c0_30 = arith.constant 0 : index
    %184 = vector.load %arg10[%c0_29, %c0_30] : memref<4x72xbf16, #tpu.memory_space<vmem>>, vector<4x72xbf16>
    %cst_31 = arith.constant dense<0.000000e+00> : vector<4x1088xf32>
    %185 = tpu.matmul %184, %183, %cst_31 {dimension_numbers = #tpu.dot_dimension_numbers<[1], [0], [0], [1], [0, 0, 1, 1], [], []>} : vector<4x72xbf16>, vector<72x1088xbf16>, vector<4x1088xf32> -> vector<4x1088xf32>
    %c0_32 = arith.constant 0 : index
    %c0_33 = arith.constant 0 : index
    %186 = vector.load %arg11[%c0_32, %c0_33] : memref<4x1xf32, #tpu.memory_space<vmem>>, vector<4x1xf32>
    %187 = vector.broadcast %186 : vector<4x1xf32> to vector<4x1088xf32>
    %188 = arith.addf %185, %187 : vector<4x1088xf32>
    %cst_34 = arith.constant 0.000000e+00 : f32
    %189 = vector.broadcast %cst_34 : f32 to vector<4x1088xf32>
    %190 = arith.maximumf %188, %189 : vector<4x1088xf32>
    %191 = arith.truncf %190 : vector<4x1088xf32> to vector<4x1088xbf16>
    %192 = vector.extract_strided_slice %191 {offsets = [0, 0], sizes = [4, 34], strides = [1, 1]} : vector<4x1088xbf16> to vector<4x34xbf16>
    %193 = vector.extract_strided_slice %191 {offsets = [0, 34], sizes = [4, 34], strides = [1, 1]} : vector<4x1088xbf16> to vector<4x34xbf16>
    %194 = vector.extract_strided_slice %191 {offsets = [0, 68], sizes = [4, 34], strides = [1, 1]} : vector<4x1088xbf16> to vector<4x34xbf16>
    %195 = vector.extract_strided_slice %191 {offsets = [0, 102], sizes = [4, 34], strides = [1, 1]} : vector<4x1088xbf16> to vector<4x34xbf16>
    %196 = vector.extract_strided_slice %191 {offsets = [0, 136], sizes = [4, 34], strides = [1, 1]} : vector<4x1088xbf16> to vector<4x34xbf16>
    %197 = vector.extract_strided_slice %191 {offsets = [0, 170], sizes = [4, 34], strides = [1, 1]} : vector<4x1088xbf16> to vector<4x34xbf16>
    %198 = vector.extract_strided_slice %191 {offsets = [0, 204], sizes = [4, 34], strides = [1, 1]} : vector<4x1088xbf16> to vector<4x34xbf16>
    %199 = vector.extract_strided_slice %191 {offsets = [0, 238], sizes = [4, 34], strides = [1, 1]} : vector<4x1088xbf16> to vector<4x34xbf16>
    %200 = vector.extract_strided_slice %191 {offsets = [0, 272], sizes = [4, 34], strides = [1, 1]} : vector<4x1088xbf16> to vector<4x34xbf16>
    %201 = vector.extract_strided_slice %191 {offsets = [0, 306], sizes = [4, 34], strides = [1, 1]} : vector<4x1088xbf16> to vector<4x34xbf16>
    %202 = vector.extract_strided_slice %191 {offsets = [0, 340], sizes = [4, 34], strides = [1, 1]} : vector<4x1088xbf16> to vector<4x34xbf16>
    %203 = vector.extract_strided_slice %191 {offsets = [0, 374], sizes = [4, 34], strides = [1, 1]} : vector<4x1088xbf16> to vector<4x34xbf16>
    %204 = vector.extract_strided_slice %191 {offsets = [0, 408], sizes = [4, 34], strides = [1, 1]} : vector<4x1088xbf16> to vector<4x34xbf16>
    %205 = vector.extract_strided_slice %191 {offsets = [0, 442], sizes = [4, 34], strides = [1, 1]} : vector<4x1088xbf16> to vector<4x34xbf16>
    %206 = vector.extract_strided_slice %191 {offsets = [0, 476], sizes = [4, 34], strides = [1, 1]} : vector<4x1088xbf16> to vector<4x34xbf16>
    %207 = vector.extract_strided_slice %191 {offsets = [0, 510], sizes = [4, 34], strides = [1, 1]} : vector<4x1088xbf16> to vector<4x34xbf16>
    %208 = vector.extract_strided_slice %191 {offsets = [0, 544], sizes = [4, 34], strides = [1, 1]} : vector<4x1088xbf16> to vector<4x34xbf16>
    %209 = vector.extract_strided_slice %191 {offsets = [0, 578], sizes = [4, 34], strides = [1, 1]} : vector<4x1088xbf16> to vector<4x34xbf16>
    %210 = vector.extract_strided_slice %191 {offsets = [0, 612], sizes = [4, 34], strides = [1, 1]} : vector<4x1088xbf16> to vector<4x34xbf16>
    %211 = vector.extract_strided_slice %191 {offsets = [0, 646], sizes = [4, 34], strides = [1, 1]} : vector<4x1088xbf16> to vector<4x34xbf16>
    %212 = vector.extract_strided_slice %191 {offsets = [0, 680], sizes = [4, 34], strides = [1, 1]} : vector<4x1088xbf16> to vector<4x34xbf16>
    %213 = vector.extract_strided_slice %191 {offsets = [0, 714], sizes = [4, 34], strides = [1, 1]} : vector<4x1088xbf16> to vector<4x34xbf16>
    %214 = vector.extract_strided_slice %191 {offsets = [0, 748], sizes = [4, 34], strides = [1, 1]} : vector<4x1088xbf16> to vector<4x34xbf16>
    %215 = vector.extract_strided_slice %191 {offsets = [0, 782], sizes = [4, 34], strides = [1, 1]} : vector<4x1088xbf16> to vector<4x34xbf16>
    %216 = vector.extract_strided_slice %191 {offsets = [0, 816], sizes = [4, 34], strides = [1, 1]} : vector<4x1088xbf16> to vector<4x34xbf16>
    %217 = vector.extract_strided_slice %191 {offsets = [0, 850], sizes = [4, 34], strides = [1, 1]} : vector<4x1088xbf16> to vector<4x34xbf16>
    %218 = vector.extract_strided_slice %191 {offsets = [0, 884], sizes = [4, 34], strides = [1, 1]} : vector<4x1088xbf16> to vector<4x34xbf16>
    %219 = vector.extract_strided_slice %191 {offsets = [0, 918], sizes = [4, 34], strides = [1, 1]} : vector<4x1088xbf16> to vector<4x34xbf16>
    %220 = vector.extract_strided_slice %191 {offsets = [0, 952], sizes = [4, 34], strides = [1, 1]} : vector<4x1088xbf16> to vector<4x34xbf16>
    %221 = vector.extract_strided_slice %191 {offsets = [0, 986], sizes = [4, 34], strides = [1, 1]} : vector<4x1088xbf16> to vector<4x34xbf16>
    %222 = vector.extract_strided_slice %191 {offsets = [0, 1020], sizes = [4, 34], strides = [1, 1]} : vector<4x1088xbf16> to vector<4x34xbf16>
    %223 = vector.extract_strided_slice %191 {offsets = [0, 1054], sizes = [4, 34], strides = [1, 1]} : vector<4x1088xbf16> to vector<4x34xbf16>
    %224 = tpu.concatenate %192, %193, %194, %195, %196, %197, %198, %199, %200, %201, %202, %203, %204, %205, %206, %207 in 0 : vector<4x34xbf16>, vector<4x34xbf16>, vector<4x34xbf16>, vector<4x34xbf16>, vector<4x34xbf16>, vector<4x34xbf16>, vector<4x34xbf16>, vector<4x34xbf16>, vector<4x34xbf16>, vector<4x34xbf16>, vector<4x34xbf16>, vector<4x34xbf16>, vector<4x34xbf16>, vector<4x34xbf16>, vector<4x34xbf16>, vector<4x34xbf16> -> vector<64x34xbf16>
    %225 = tpu.concatenate %208, %209, %210, %211, %212, %213, %214, %215, %216, %217, %218, %219, %220, %221, %222, %223 in 0 : vector<4x34xbf16>, vector<4x34xbf16>, vector<4x34xbf16>, vector<4x34xbf16>, vector<4x34xbf16>, vector<4x34xbf16>, vector<4x34xbf16>, vector<4x34xbf16>, vector<4x34xbf16>, vector<4x34xbf16>, vector<4x34xbf16>, vector<4x34xbf16>, vector<4x34xbf16>, vector<4x34xbf16>, vector<4x34xbf16>, vector<4x34xbf16> -> vector<64x34xbf16>
    %226 = tpu.concatenate %224, %225 in 0 : vector<64x34xbf16>, vector<64x34xbf16> -> vector<128x34xbf16>
    %c0_35 = arith.constant 0 : index
    %c0_36 = arith.constant 0 : index
    %227 = vector.load %arg12[%c0_35, %c0_36] : memref<34x128xbf16, #tpu.memory_space<vmem>>, vector<34x128xbf16>
    %cst_37 = arith.constant dense<0.000000e+00> : vector<128x128xf32>
    %228 = tpu.matmul %226, %227, %cst_37 {dimension_numbers = #tpu.dot_dimension_numbers<[1], [0], [0], [1], [0, 0, 1, 1], [], []>} : vector<128x34xbf16>, vector<34x128xbf16>, vector<128x128xf32> -> vector<128x128xf32>
    %229 = arith.truncf %228 : vector<128x128xf32> to vector<128x128xbf16>
    %c0_38 = arith.constant 0 : index
    %c0_39 = arith.constant 0 : index
    %230 = vector.load %arg13[%c0_38, %c0_39] : memref<512x128xbf16, #tpu.memory_space<vmem>>, vector<512x128xbf16>
    %cst_40 = arith.constant dense<0.000000e+00> : vector<512x128xf32>
    %231 = tpu.matmul %230, %229, %cst_40 {dimension_numbers = #tpu.dot_dimension_numbers<[1], [0], [0], [1], [0, 0, 1, 1], [], []>} : vector<512x128xbf16>, vector<128x128xbf16>, vector<512x128xf32> -> vector<512x128xf32>
    %232 = vector.extract_strided_slice %231 {offsets = [0, 0], sizes = [128, 128], strides = [1, 1]} : vector<512x128xf32> to vector<128x128xf32>
    %c0_41 = arith.constant 0 : index
    %c0_42 = arith.constant 0 : index
    %c0_43 = arith.constant 0 : index
    %c0_44 = arith.constant 0 : index
    %233 = vector.load %arg14[%c0_41, %c0_42, %c0_43, %c0_44] : memref<1x4x128x128xf32, #tpu.memory_space<vmem>>, vector<1x1x128x128xf32>
    %234 = vector.shape_cast %233 : vector<1x1x128x128xf32> to vector<128x128xf32>
    %235 = vector.shape_cast %232 : vector<128x128xf32> to vector<1x1x128x128xf32>
    tpu.vector_store %arg14[%c0_41, %c0_42, %c0_43, %c0_44], %235 {strides = array<i32>} : memref<1x4x128x128xf32, #tpu.memory_space<vmem>>, vector<1x1x128x128xf32>,
    %236 = vector.extract_strided_slice %231 {offsets = [128, 0], sizes = [128, 128], strides = [1, 1]} : vector<512x128xf32> to vector<128x128xf32>
    %c0_45 = arith.constant 0 : index
    %c1 = arith.constant 1 : index
    %c0_46 = arith.constant 0 : index
    %c0_47 = arith.constant 0 : index
    %237 = vector.load %arg14[%c0_45, %c1, %c0_46, %c0_47] : memref<1x4x128x128xf32, #tpu.memory_space<vmem>>, vector<1x1x128x128xf32>
    %238 = vector.shape_cast %237 : vector<1x1x128x128xf32> to vector<128x128xf32>
    %239 = vector.shape_cast %236 : vector<128x128xf32> to vector<1x1x128x128xf32>
    tpu.vector_store %arg14[%c0_45, %c1, %c0_46, %c0_47], %239 {strides = array<i32>} : memref<1x4x128x128xf32, #tpu.memory_space<vmem>>, vector<1x1x128x128xf32>,
    %240 = vector.extract_strided_slice %231 {offsets = [256, 0], sizes = [128, 128], strides = [1, 1]} : vector<512x128xf32> to vector<128x128xf32>
    %c0_48 = arith.constant 0 : index
    %c2 = arith.constant 2 : index
    %c0_49 = arith.constant 0 : index
    %c0_50 = arith.constant 0 : index
    %241 = vector.load %arg14[%c0_48, %c2, %c0_49, %c0_50] : memref<1x4x128x128xf32, #tpu.memory_space<vmem>>, vector<1x1x128x128xf32>
    %242 = vector.shape_cast %241 : vector<1x1x128x128xf32> to vector<128x128xf32>
    %243 = vector.shape_cast %240 : vector<128x128xf32> to vector<1x1x128x128xf32>
    tpu.vector_store %arg14[%c0_48, %c2, %c0_49, %c0_50], %243 {strides = array<i32>} : memref<1x4x128x128xf32, #tpu.memory_space<vmem>>, vector<1x1x128x128xf32>,
    %244 = vector.extract_strided_slice %231 {offsets = [384, 0], sizes = [128, 128], strides = [1, 1]} : vector<512x128xf32> to vector<128x128xf32>
    %c0_51 = arith.constant 0 : index
    %c3 = arith.constant 3 : index
    %c0_52 = arith.constant 0 : index
    %c0_53 = arith.constant 0 : index
    %245 = vector.load %arg14[%c0_51, %c3, %c0_52, %c0_53] : memref<1x4x128x128xf32, #tpu.memory_space<vmem>>, vector<1x1x128x128xf32>
    %246 = vector.shape_cast %245 : vector<1x1x128x128xf32> to vector<128x128xf32>
    %247 = vector.shape_cast %244 : vector<128x128xf32> to vector<1x1x128x128xf32>
    tpu.vector_store %arg14[%c0_51, %c3, %c0_52, %c0_53], %247 {strides = array<i32>} : memref<1x4x128x128xf32, #tpu.memory_space<vmem>>, vector<1x1x128x128xf32>,
    return
  }
  func.func @transform_0(%arg0: i32) -> (i32, i32, i32) {
    %c0_i32 = arith.constant 0 : i32
    %c0_i32_0 = arith.constant 0 : i32
    %c0_i32_1 = arith.constant 0 : i32
    return %arg0, %c0_i32, %c0_i32_0 : i32, i32, i32
  }
  func.func @transform_1(%arg0: i32) -> (i32, i32) {
    %c0_i32 = arith.constant 0 : i32
    %c0_i32_0 = arith.constant 0 : i32
    %c0_i32_1 = arith.constant 0 : i32
    return %c0_i32, %c0_i32_0 : i32, i32
  }
  func.func @transform_2(%arg0: i32) -> (i32, i32) {
    %c0_i32 = arith.constant 0 : i32
    %c0_i32_0 = arith.constant 0 : i32
    %c0_i32_1 = arith.constant 0 : i32
    return %c0_i32, %c0_i32_0 : i32, i32
  }
  func.func @transform_3(%arg0: i32) -> (i32, i32) {
    %c0_i32 = arith.constant 0 : i32
    %c0_i32_0 = arith.constant 0 : i32
    %c0_i32_1 = arith.constant 0 : i32
    return %c0_i32, %c0_i32_0 : i32, i32
  }
  func.func @transform_4(%arg0: i32) -> (i32, i32) {
    %c0_i32 = arith.constant 0 : i32
    %c0_i32_0 = arith.constant 0 : i32
    %c0_i32_1 = arith.constant 0 : i32
    return %c0_i32, %c0_i32_0 : i32, i32
  }
  func.func @transform_5(%arg0: i32) -> (i32, i32) {
    %c0_i32 = arith.constant 0 : i32
    %c0_i32_0 = arith.constant 0 : i32
    %c0_i32_1 = arith.constant 0 : i32
    return %c0_i32, %c0_i32_0 : i32, i32
  }
  func.func @transform_6(%arg0: i32) -> (i32, i32) {
    %c0_i32 = arith.constant 0 : i32
    %c0_i32_0 = arith.constant 0 : i32
    %c0_i32_1 = arith.constant 0 : i32
    return %c0_i32, %c0_i32_0 : i32, i32
  }
  func.func @transform_7(%arg0: i32) -> (i32, i32) {
    %c0_i32 = arith.constant 0 : i32
    %c0_i32_0 = arith.constant 0 : i32
    %c0_i32_1 = arith.constant 0 : i32
    return %c0_i32, %c0_i32_0 : i32, i32
  }
  func.func @transform_8(%arg0: i32) -> (i32, i32) {
    %c0_i32 = arith.constant 0 : i32
    %c0_i32_0 = arith.constant 0 : i32
    %c0_i32_1 = arith.constant 0 : i32
    return %c0_i32, %c0_i32_0 : i32, i32
  }
  func.func @transform_9(%arg0: i32) -> (i32, i32) {
    %c0_i32 = arith.constant 0 : i32
    %c0_i32_0 = arith.constant 0 : i32
    %c0_i32_1 = arith.constant 0 : i32
    return %c0_i32, %c0_i32_0 : i32, i32
  }
  func.func @transform_10(%arg0: i32) -> (i32, i32) {
    %c0_i32 = arith.constant 0 : i32
    %c0_i32_0 = arith.constant 0 : i32
    %c0_i32_1 = arith.constant 0 : i32
    return %c0_i32, %c0_i32_0 : i32, i32
  }
  func.func @transform_11(%arg0: i32) -> (i32, i32) {
    %c0_i32 = arith.constant 0 : i32
    %c0_i32_0 = arith.constant 0 : i32
    %c0_i32_1 = arith.constant 0 : i32
    return %c0_i32, %c0_i32_0 : i32, i32
  }
  func.func @transform_12(%arg0: i32) -> (i32, i32) {
    %c0_i32 = arith.constant 0 : i32
    %c0_i32_0 = arith.constant 0 : i32
    %c0_i32_1 = arith.constant 0 : i32
    return %c0_i32, %c0_i32_0 : i32, i32
  }
  func.func @transform_13(%arg0: i32) -> (i32, i32, i32, i32) {
    %c0_i32 = arith.constant 0 : i32
    %c0_i32_0 = arith.constant 0 : i32
    %c0_i32_1 = arith.constant 0 : i32
    %c0_i32_2 = arith.constant 0 : i32
    return %arg0, %c0_i32, %c0_i32_0, %c0_i32_1 : i32, i32, i32, i32
  }
}

</mosaic_0001>

<bundles_post_ra>
// kernel: forward.1
= control target key start
LH: loop header
LB: loop body
LE: loop exit
PB: predicated region body
PF: predicated region fallthrough
CT: control target
= control target key end

     0   :  { %s5822_s0 = inlined_call_operand.vmem [shape: f32[2,4,128], index: 0, kind: input, shape index: {}]   ;;  %s5823_s1 = inlined_call_operand.vmem [shape: bf16[32,36], index: 1, kind: input, shape index: {}]   ;;  %s5824_s2 = inlined_call_operand.vmem [shape: f32[32,1], index: 2, kind: input, shape index: {}, may-alias: {2,6}]   ;;  %s5825_s3 = inlined_call_operand.vmem [shape: bf16[10,18], index: 3, kind: input, shape index: {}]   ;;  %s5826_s4 = inlined_call_operand.vmem [shape: bf16[10,18], index: 4, kind: input, shape index: {}]   ;;  %s5827_s5 = inlined_call_operand.vmem [shape: bf16[32,72], index: 5, kind: input, shape index: {}]   ;;  %s5828_s6 = inlined_call_operand.vmem [shape: f32[32,1], index: 6, kind: input, shape index: {}, may-alias: {2,6}]   ;;  %s5829_s7 = inlined_call_operand.vmem [shape: bf16[18,34], index: 7, kind: input, shape index: {}]   ;;  %s5830_s8 = inlined_call_operand.vmem [shape: bf16[18,34], index: 8, kind: input, shape index: {}]   ;;  %s5831_s9 = inlined_call_operand.vmem [shape: bf16[4,72], index: 9, kind: input, shape index: {}]   ;;  %s5832_s10 = inlined_call_operand.vmem [shape: f32[4,1], index: 10, kind: input, shape index: {}]   ;;  %s5833_s11 = inlined_call_operand.vmem [shape: bf16[34,128], index: 11, kind: input, shape index: {}]   ;;  %s5834_s12 = inlined_call_operand.vmem [shape: bf16[512,128], index: 12, kind: input, shape index: {}]   ;;  %s5835_s13 = inlined_call_operand.hbm [shape: f32[2,4,128,128], index: 13, kind: output, shape index: {}]  }
   0x1   :  { %5899 = sst [smem:[#allocation7_spill]] %s5822_s0 }
   0x2   :  { %5900 = sst [smem:[#allocation8_spill]] %s5823_s1 }
   0x3   :  { %5901 = sst [smem:[#allocation9_spill]] %s5824_s2 }
   0x4   :  { %5902 = sst [smem:[#allocation10_spill]] %s5825_s3 }
   0x5   :  { %18 = vsyncpa [#allocation3], 0 }
   0x6   :  { %20 = vsyncpa [#allocation3 + $0x1], 0  ;;  %s4677_s25 = smov 0   ;;  %s4679_s26 = smov 0  }
   0x7   :  { %s4681_s27 = smov 0   ;;  %s4683_s28 = smov 0  }
   0x8 LB: > { %5903 = sst [smem:[#allocation5_spill]] %s4538_s27  ;;  %s4698_s29 = sadd.s32 4294967295, %s4542_s28   ;;  %s4542_s28 = sphi %s4683_s28, %s6024_s28   ;;  %s4538_s27 = sphi %s4681_s27, %s6021_s27   ;;  %s4534_s26 = sphi %s4679_s26, %s6023_s26   ;;  %s4530_s25 = sphi %s4677_s25, %s6022_s25  }
   0x9   : > { %s3729_s30 = sadd.s32 4294967294, %s4542_s28   ;;  %s4702_s14 = sadd.s32 1, %s4542_s28  }
   0xa   : > { %s311_s15 = sadd.s32 1, %s4538_s27  ;;  %s308_s16 = ssub.s32 %s4542_s28, %s4702_s14 }
   0xb   : > { %p321_p0 = scmp.ne.s32.totalorder %s4538_s27, %s4534_s26  ;;  %p309_p1 = scmp.eq.s32.totalorder %s308_s16, 0 }
   0xc   : > { %p322_p2 = scmp.eq.s32.totalorder %s4698_s29, 1  ;;  %p327_p3 = scmp.ne.s32.totalorder %s4534_s26, %s4530_s25 }
   0xd   : > { %p328_p4 = scmp.eq.s32.totalorder %s3729_s30, 1  ;;  %p3732_p7 = scmp.ge.s32.totalorder %s4542_s28, 1 }
   0xe   : > { %s4713_s17 = scalar_select %p309_p1, %s4538_s27, %s311_s15  }
   0xf   : > { %p4715_p5 = por %p322_p2, %p321_p0  ;;  %p4719_p6 = por %p328_p4, %p327_p3 }
  0x10   : > { %5904 = sst [smem:[#allocation6_spill]] %s4713_s17  ;;  %p389_p8 = scmp.lt.s32.totalorder %s4542_s28, 3 }
  0x12   : > { %p390_p9 = pnand %p3732_p7, %p389_p8 }
  0x13   : > { %p432_p10 = scmp.lt.s32.totalorder (!%p390_p9), %s4698_s29, 1  ;;  %s5907_s0 = sld [smem:[#allocation7_spill]] (!%p390_p9)  ;;  %vm5862_vm0 = vcmask (!%p390_p9), 293888   ;;  %v4550_v6 = vmov (!%p390_p9), 0   ;;  %vm5887_vm1 = vcmask (!%p390_p9), 1041408   ;;  %vm5891_vm2 = vcmask (!%p390_p9), 1043456  }
  0x14   : > { %393 = sbr.rel (%p390_p9) target bundleno = 3167 (0xc5f), region = 72  ;;  %s4544_s30 = smov (!%p390_p9), 117   ;;  %4434 = vset.pattern.permute.xlu1 (!%p390_p9), %v4550_v6  ;;  %4433 = vset.pattern.permute.xlu0 (!%p390_p9), %v4550_v6  ;;  %vm5886_vm3 = vcmask (!%p390_p9), 1045504   ;;  %v4437_v27 = vld [vmem:[%s5826_s4] sm:$0x1f] (!%p390_p9)   ;;  %vm654_vm4 = vcmask (!%p390_p9), 1044480  }
  0x15   : > { %s5837_s15 = smov (!%p390_p9), 127   ;;  %s5841_s16 = smov (!%p390_p9), 118   ;;  %4326 = vmatprep.subr.msk.bf16.mxu1 (!%p390_p9), %vm654_vm4, %v4437_v27  ;;  %v656_v28 = vsel (!%p390_p9), %vm654_vm4, %v4437_v27, 0  ;;  %vm5861_vm5 = vcmask (!%p390_p9), 80896   ;;  %vm5885_vm6 = vcmask (!%p390_p9), 146432   ;;  %vm942_vm7 = vcmask (!%p390_p9), 441344  }
  0x16   : > { %s5839_s17 = smov (!%p390_p9), 126   ;;  %s5908_s1 = sld [smem:[#allocation8_spill]] (!%p390_p9)  ;;  %4040 = vmatpush3.bf16.msra.mxu1 (!%p390_p9), %v656_v28  ;;  %vm957_vm8 = vcmask (!%p390_p9), 130048   ;;  %vm5889_vm9 = vcmask (!%p390_p9), 588800   ;;  %vm960_vm10 = vcmask (!%p390_p9), 277504   ;;  %vm948_vm11 = vcmask (!%p390_p9), 736256  }
  0x17   : > { %s4549_s22 = smov (!%p390_p9), 116   ;;  %s5909_s2 = sld [smem:[#allocation9_spill]] (!%p390_p9)  ;;  %vm5871_vm12 = vcmask (!%p390_p9), 424960   ;;  %vm951_vm13 = vcmask (!%p390_p9), 883712   ;;  %vm954_vm14 = vcmask (!%p390_p9), 1031168   ;;  %vm966_vm15 = vcmask (!%p390_p9), 572416  }
  0x18   : > { %s5910_s3 = sld [smem:[#allocation10_spill]] (!%p390_p9)  ;;  %s5911_s27 = smov (!%p390_p9), 108  }
  0x19   : > { %s4558_s23 = smov (!%p390_p9), 54  }
  0x1b   : > { %s433_s20 = scalar_select %p432_p10, %s4698_s29, 1 }
  0x1c   : > { %v4435_v5 = vld [vmem:[%s5908_s1] sm:$0xff]   ;;  %v4436_v26 = vld [vmem:[%s5908_s1 + $0x8] sm:$0xff]   ;;  %s5874_s1 = smov 112  }
  0x1d   : > { %s3734_s21 = sshll.u32 %s433_s20, 2  ;;  %4035 = vmatprep.mubr.msk.bf16.mxu0 %vm5862_vm0, %v4435_v5  ;;  %v483_v7 = vld [vmem:[%s5909_s2 + $0x8] sm:$0xff]  ;;  %v482_v8 = vld [vmem:[%s5909_s2] sm:$0xff]  ;;  %v484_v9 = vld [vmem:[%s5909_s2 + $0x10] sm:$0xff]  ;;  %s5912_s20 = smov 118  }
  0x1e   : > { %s435_s24 = scalar_lea.vmem %s5907_s0, %s3734_s21  ;;  %s5843_s21 = smov 108   ;;  %v485_v10 = vld [vmem:[%s5909_s2 + $0x18] sm:$0xff]  ;;  %v4438_v47 = vld [vmem:[%s5910_s3] sm:$0x1f]  }
  0x1f   : > { %v437_v0 = vld [vmem:[%s435_s24] sm:$0xf]  ;;  %4327 = vmatprep.subr.msk.bf16.mxu1 %vm654_vm4, %v4438_v47  ;;  %v784_v52 = vsel %vm654_vm4, %v4438_v47, 0  ;;  %s5849_s24 = smov 18   ;;  %vm969_vm4 = vcmask 719872   ;;  %s5872_s0 = smov 2  }
  0x20   : > { %v438_v1 = vpack.c.bf16 %v437_v0, %v437_v0  ;;  %s5883_s2 = smov 84   ;;  %s5985_s3 = smov 120  }
  0x22   : > { %v440_v2 = vrot.slane %v438_v1, 6  ;;  %449 = vrot.lane.b32.xlu1 %v438_v1, %s4544_s30  ;;  %v443_v3 = vrot.slane %v438_v1, 4  ;;  %v446_v4 = vrot.slane %v438_v1, 2  ;;  %s4551_s30 = smov 106  }
  0x24   : > { %441 = vrot.lane.b32.xlu0 %v440_v2, %s5837_s15  ;;  %s4552_s15 = smov 107  }
  0x26   : > { %447 = vrot.lane.b32.xlu1 %v446_v4, %s5841_s16  ;;  %s5845_s16 = smov 78  }
  0x28   : > { %444 = vrot.lane.b32.xlu0 %v443_v3, %s5839_s17  ;;  %s4554_s17 = smov 98  }
  0x2a   : > { %453 = vrot.lane.b32.xlu1 %v443_v3, %s5843_s21  ;;  %s5851_s21 = smov 58  }
  0x2c   : > { %451 = vrot.lane.b32.xlu0 %v440_v2, %s4549_s22  ;;  %s4553_s22 = smov 88  }
  0x2e   : > { %457 = vrot.lane.b32.xlu1 %v438_v1, %s4551_s30 }
  0x30   : > { %455 = vrot.lane.b32.xlu0 %v446_v4, %s4552_s15  ;;  %s5847_s15 = smov 68  }
  0x32   : > { %493 = vperm.xlu1 %4434, %v483_v7  }
  0x34   : > { %488 = vperm.xlu0 %4433, %v482_v8  }
  0x36   : > { %498 = vperm.xlu1 %4434, %v484_v9  }
  0x38   : > { %503 = vperm.xlu0 %4433, %v485_v10  }
  0x94   : > { %v450_v11 = vpop.permute.xlu1 %449 }
  0x96   : > { %v442_v12 = vpop.permute.xlu0 %441 }
  0x97   : > { %v462_v14 = vsel %vm5887_vm1, %v438_v1, %v442_v12 }
  0x98   : > { %v448_v13 = vpop.permute.xlu1 %447 }
  0x9a   : > { %v445_v15 = vpop.permute.xlu0 %444 }
  0x9b   : > { %v465_v16 = vsel %vm5891_vm2, %v462_v14, %v445_v15 }
  0x9c   : > { %v468_v17 = vsel %vm5886_vm3, %v465_v16, %v448_v13  ;;  %v454_v20 = vpop.permute.xlu1 %453 }
  0x9d   : > { %4029 = vmatprep.subr.bf16.mxu0 %v468_v17 }
  0x9e   : > { %4030 = vmatpush3.bf16.msra.mxu0 %v468_v17  ;;  %v452_v18 = vpop.permute.xlu0 %451 }
  0x9f   : > { %v472_v19 = vsel %vm5887_vm1, %v450_v11, %v452_v18 }
  0xa0   : > { %v474_v21 = vsel %vm5891_vm2, %v472_v19, %v454_v20  ;;  %v458_v24 = vpop.permute.xlu1 %457 }
  0xa1   : > { %v524_v25 = vsel %vm5887_vm1, %v458_v24, 0 }
  0xa2   : > { %v456_v22 = vpop.permute.xlu0 %455 }
  0xa3   : > { %v476_v23 = vsel %vm5886_vm3, %v474_v21, %v456_v22  ;;  %vm1918_vm3 = vcmask 621568  }
  0xa4   : > { %4031 = vmatprep.subr.bf16.mxu0 %v476_v23 }
  0xa5   : > { %4032 = vmatpush3.bf16.msra.mxu0 %v476_v23 }
  0xa6   : > { %4325 = vmatprep.subr.msk.bf16.mxu0 %vm5887_vm1, %v458_v24  ;;  %vm1926_vm1 = vcmask 408576  }
  0xa9   : > { %4034 = vmatpush3.bf16.msra.mxu0 %v524_v25 }
  0xac   : > { %4036 = vmatmul.mubr.msk.bf16.vlgmr.msra.gmra.mrb[0].mxu0 %vm5862_vm0, %v4436_v26 }
  0xad   : > { %1198 = vmatprep.mubr.bf16.mxu0 %v4550_v6 }
  0xb1   : > { %v494_v29 = vpop.permute.xlu1 %493 }
  0xb3   : > { %v489_v30 = vpop.permute.xlu0 %488 }
  0xb5   : > { %v499_v31 = vpop.permute.xlu1 %498 }
  0xb7   : > { %v504_v33 = vpop.permute.xlu0 %503 }
 0x17f   : > { %v4037_v32 = vpop.f32.mrb[0].mxu0 }
 0x180   : > { %v569_v34 = vadd.f32 %v4037_v32, %v499_v31  ;;  %v560_v35 = vpop.f32.mrb[1].mxu0 }
 0x181   : > { %v561_v36 = vadd.f32 %v560_v35, %v489_v30  ;;  %v4038_v37 = vpop.f32.mrb[2].mxu0 }
 0x182   : > { %v572_v38 = vadd.f32 %v4038_v37, %v504_v33  ;;  %v563_v39 = vpop.f32.mrb[3].mxu0  ;;  %v577_v41 = vmax.f32 %v569_v34, 0.0 }
 0x183   : > { %v564_v40 = vadd.f32 %v563_v39, %v494_v29  ;;  %v575_v43 = vmax.f32 %v561_v36, 0.0 }
 0x184   : > { %v578_v42 = vmax.f32 %v572_v38, 0.0 }
 0x185   : > { %v576_v44 = vmax.f32 %v564_v40, 0.0 }
 0x186   : > { %v580_v45 = vpack.c.bf16 %v578_v42, %v577_v41 }
 0x187   : > { %v579_v46 = vpack.c.bf16 %v576_v44, %v575_v43 }
 0x188   : > { %v582_v48 = vrot.slane %v580_v45, 4 }
 0x189   : > { %v587_v49 = vrot.slane %v579_v46, 4 }
 0x18a   : > { %v585_v50 = vsel %vm5891_vm2, %v579_v46, %v582_v48 }
 0x18b   : > { %v590_v51 = vsel %vm5891_vm2, %v587_v49, %v580_v45 }
 0x18c   : > { %609 = vrot.lane.b32.xlu0 %v590_v51, %s5911_s27  ;;  %607 = vrot.lane.b32.xlu1 %v590_v51, %s5912_s20 }
 0x18d   : > { %4041 = vmatprep.mubr.msk.bf16.mxu1 %vm5861_vm5, %v590_v51 }
 0x190   : > { %613 = vrot.lane.b32.xlu0 %v590_v51, %s4553_s22  ;;  %611 = vrot.lane.b32.xlu1 %v590_v51, %s4554_s17 }
 0x194   : > { %617 = vrot.lane.b32.xlu0 %v590_v51, %s5847_s15  ;;  %615 = vrot.lane.b32.xlu1 %v590_v51, %s5845_s16 }
 0x198   : > { %619 = vrot.lane.b32.xlu1 %v590_v51, %s5851_s21  ;;  %592 = vrot.lane.b32.xlu0 %v585_v50, %s5912_s20 }
 0x19c   : > { %594 = vrot.lane.b32.xlu1 %v585_v50, %s5911_s27  ;;  %596 = vrot.lane.b32.xlu0 %v585_v50, %s4554_s17  ;;  %s4560_s17 = smov 72  }
 0x1a0   : > { %598 = vrot.lane.b32.xlu1 %v585_v50, %s4553_s22  ;;  %600 = vrot.lane.b32.xlu0 %v585_v50, %s5845_s16  ;;  %s5857_s16 = smov 16  }
 0x1a4   : > { %602 = vrot.lane.b32.xlu1 %v585_v50, %s5847_s15  ;;  %604 = vrot.lane.b32.xlu0 %v585_v50, %s5851_s21  ;;  %s5853_s15 = smov 36   ;;  %s5859_s21 = smov 34  }
 0x1fe   : > { %v610_v53 = vpop.permute.xlu0 %609  ;;  %v608_v54 = vpop.permute.xlu1 %607 }
 0x1ff   : > { %4042 = vmatmul.mubr.msk.bf16.vlgmr.msra.gmra.mrb[0].mxu1 %vm5861_vm5, %v608_v54 }
 0x200   : > { %4045 = vmatprep.mubr.msk.bf16.mxu1 %vm5861_vm5, %v610_v53  ;;  %4058 = vmatpush3.bf16.msra.mxu1 %v784_v52 }
 0x202   : > { %v612_v55 = vpop.permute.xlu1 %611  ;;  %v614_v56 = vpop.permute.xlu0 %613 }
 0x206   : > { %v616_v57 = vpop.permute.xlu1 %615  ;;  %v618_v58 = vpop.permute.xlu0 %617 }
 0x207   : > { %4046 = vmatmul.mubr.msk.bf16.gmra.mrb[4].mxu1 %vm5861_vm5, %v612_v55 }
 0x208   : > { %4049 = vmatprep.mubr.msk.bf16.mxu1 %vm5861_vm5, %v614_v56 }
 0x20a   : > { %v620_v59 = vpop.permute.xlu1 %619  ;;  %v593_v60 = vpop.permute.xlu0 %592 }
 0x20e   : > { %v595_v61 = vpop.permute.xlu1 %594  ;;  %v597_v62 = vpop.permute.xlu0 %596 }
 0x20f   : > { %4050 = vmatmul.mubr.msk.bf16.gmra.mrb[8].mxu1 %vm5861_vm5, %v616_v57 }
 0x210   : > { %4053 = vmatprep.mubr.msk.bf16.mxu1 %vm5861_vm5, %v618_v58 }
 0x212   : > { %v599_v63 = vpop.permute.xlu1 %598  ;;  %v601_v0 = vpop.permute.xlu0 %600 }
 0x216   : > { %v603_v1 = vpop.permute.xlu1 %602  ;;  %v605_v2 = vpop.permute.xlu0 %604 }
 0x217   : > { %4054 = vmatmul.mubr.msk.bf16.gmra.mrb[12].mxu1 %vm5861_vm5, %v620_v59 }
 0x218   : > { %4059 = vmatprep.mubr.msk.bf16.mxu1 %vm5861_vm5, %v585_v50 }
 0x21f   : > { %4060 = vmatmul.mubr.msk.bf16.vlgmr.msra.gmra.mrb[0].mxu1 %vm5861_vm5, %v593_v60 }
 0x220   : > { %4063 = vmatprep.mubr.msk.bf16.mxu1 %vm5861_vm5, %v595_v61 }
 0x227   : > { %4064 = vmatmul.mubr.msk.bf16.gmra.mrb[4].mxu1 %vm5861_vm5, %v597_v62 }
 0x228   : > { %4067 = vmatprep.mubr.msk.bf16.mxu1 %vm5861_vm5, %v599_v63 }
 0x22f   : > { %4068 = vmatmul.mubr.msk.bf16.gmra.mrb[8].mxu1 %vm5861_vm5, %v601_v0 }
 0x230   : > { %4071 = vmatprep.mubr.msk.bf16.mxu1 %vm5861_vm5, %v603_v1 }
 0x237   : > { %4072 = vmatmul.mubr.msk.bf16.gmra.mrb[12].mxu1 %vm5861_vm5, %v605_v2  ;;  %vm975_vm5 = vcmask 1014784  }
 0x2f2   : > { %v4061_v3 = vpop.f32.mrb[0].mxu1 }
 0x2f3   : > { %v820_v4 = vpop.f32.mrb[1].mxu1 }
 0x2f4   : > { %v4062_v5 = vpop.f32.mrb[2].mxu1 }
 0x2f5   : > { %v884_v7 = vpack.c.bf16 %v4062_v5, %v4061_v3  ;;  %v823_v8 = vpop.f32.mrb[3].mxu1 }
 0x2f6   : > { %v883_v9 = vpack.c.bf16 %v823_v8, %v820_v4 }
 0x2f7   : > { %898 = vrot.lane.b32.xlu1 %v884_v7, %s4558_s23  ;;  %v900_v13 = vrot.slane %v884_v7, 4  ;;  %s5913_s23 = smov 126  }
 0x2f8   : > { %v894_v18 = vrot.slane %v883_v9, 4 }
 0x2fa   : > { %v4065_v10 = vpop.f32.mrb[4].mxu1 }
 0x2fb   : > { %892 = vrot.lane.b32.xlu1 %v883_v9, %s5849_s24  ;;  %v836_v11 = vpop.f32.mrb[5].mxu1  ;;  %s5855_s24 = smov 70   ;;  %v1118_v9 = vld [vmem:[%s5828_s6 + $0x8] sm:$0xff] }
 0x2fc   : > { %v4066_v12 = vpop.f32.mrb[6].mxu1 }
 0x2fd   : > { %v886_v14 = vpack.c.bf16 %v4066_v12, %v4065_v10  ;;  %v839_v15 = vpop.f32.mrb[7].mxu1  ;;  %v1117_v10 = vld [vmem:[%s5828_s6] sm:$0xff]  ;;  %v1119_v12 = vld [vmem:[%s5828_s6 + $0x10] sm:$0xff] }
 0x2fe   : > { %v885_v16 = vpack.c.bf16 %v839_v15, %v836_v11  ;;  %v1120_v11 = vld [vmem:[%s5828_s6 + $0x18] sm:$0xff] }
 0x2ff   : > { %v912_v17 = vrot.slane %v886_v14, 4  ;;  %901 = vrot.lane.b32.xlu1 %v900_v13, %s4560_s17  ;;  %s4564_s17 = smov 90  }
 0x300   : > { %v906_v34 = vrot.slane %v885_v16, 4 }
 0x301   : > { %913 = vrot.lane.b32.xlu0 %v912_v17, %s5857_s16  ;;  %s4568_s16 = smov 14  }
 0x302   : > { %v4069_v19 = vpop.f32.mrb[8].mxu1 }
 0x303   : > { %895 = vrot.lane.b32.xlu1 %v894_v18, %s5853_s15  ;;  %v852_v20 = vpop.f32.mrb[9].mxu1  ;;  %s4566_s15 = smov 124  }
 0x304   : > { %v4070_v21 = vpop.f32.mrb[10].mxu1 }
 0x305   : > { %v888_v22 = vpack.c.bf16 %v4070_v21, %v4069_v19  ;;  %v855_v23 = vpop.f32.mrb[11].mxu1 }
 0x306   : > { %v887_v24 = vpack.c.bf16 %v855_v23, %v852_v20 }
 0x307   : > { %910 = vrot.lane.b32.xlu1 %v886_v14, %s5913_s23  ;;  %922 = vrot.lane.b32.xlu0 %v888_v22, %s5855_s24  ;;  %v924_v28 = vrot.slane %v888_v22, 4  ;;  %s5863_s24 = smov 52  }
 0x308   : > { %v918_v33 = vrot.slane %v887_v24, 4 }
 0x30a   : > { %v4073_v25 = vpop.f32.mrb[12].mxu1 }
 0x30b   : > { %904 = vrot.lane.b32.xlu1 %v885_v16, %s4564_s17  ;;  %916 = vrot.lane.b32.xlu0 %v887_v24, %s5859_s21  ;;  %v868_v26 = vpop.f32.mrb[13].mxu1  ;;  %s5865_s21 = smov 32  }
 0x30c   : > { %v4074_v27 = vpop.f32.mrb[14].mxu1 }
 0x30d   : > { %v890_v29 = vpack.c.bf16 %v4074_v27, %v4073_v25  ;;  %v871_v30 = vpop.f32.mrb[15].mxu1 }
 0x30e   : > { %v889_v31 = vpack.c.bf16 %v871_v30, %v868_v26 }
 0x30f   : > { %925 = vrot.lane.b32.xlu0 %v924_v28, %s4553_s22  ;;  %v982_v35 = vsel %vm5885_vm6, %v890_v29, 0  ;;  %s4570_s22 = smov 109  }
 0x310   : > { %v930_v32 = vrot.slane %v889_v31, 4  ;;  %v984_v36 = vrot.slane %v982_v35, 4 }
 0x312   : > { %931 = vrot.lane.b32.xlu1 %v930_v32, %s4566_s15  ;;  %s5867_s15 = smov 110  }
 0x313   : > { %919 = vrot.lane.b32.xlu0 %v918_v33, %s5863_s24  ;;  %s4573_s24 = smov 91  }
 0x316   : > { %907 = vrot.lane.b32.xlu1 %v906_v34, %s5911_s27 }
 0x317   : > { %934 = vrot.lane.b32.xlu0 %v890_v29, %s4568_s16  ;;  %s5869_s16 = smov 92  }
 0x31b   : > { %928 = vrot.lane.b32.xlu0 %v889_v31, %s4551_s30  ;;  %s5914_s30 = smov 127  }
 0x31f   : > { %985 = vrot.lane.b32.xlu0 %v984_v36, %s5865_s21  ;;  %s5876_s21 = smov 94  }
 0x369   : > { %v899_v37 = vpop.permute.xlu1 %898 }
 0x36d   : > { %v893_v38 = vpop.permute.xlu1 %892 }
 0x36e   : > { %v939_v45 = vsel %vm5885_vm6, 0, %v893_v38 }
 0x371   : > { %v902_v39 = vpop.permute.xlu1 %901 }
 0x373   : > { %v914_v40 = vpop.permute.xlu0 %913 }
 0x375   : > { %v896_v41 = vpop.permute.xlu1 %895 }
 0x376   : > { %v941_v47 = vsel %vm5862_vm0, %v939_v45, %v896_v41  ;;  %vm5890_vm0 = vcmask 261120  }
 0x377   : > { %v944_v49 = vsel %vm942_vm7, %v941_v47, %v899_v37  ;;  %vm972_vm7 = vcmask 867328  }
 0x378   : > { %v947_v53 = vsel %vm5889_vm9, %v944_v49, %v902_v39 }
 0x379   : > { %v923_v42 = vpop.permute.xlu0 %922  ;;  %v911_v43 = vpop.permute.xlu1 %910 }
 0x37a   : > { %v959_v52 = vsel %vm957_vm8, %v911_v43, %v914_v40 }
 0x37d   : > { %v917_v44 = vpop.permute.xlu0 %916  ;;  %v905_v46 = vpop.permute.xlu1 %904 }
 0x37e   : > { %v962_v54 = vsel %vm960_vm10, %v959_v52, %v917_v44  ;;  %v950_v55 = vsel %vm948_vm11, %v947_v53, %v905_v46 }
 0x381   : > { %v926_v48 = vpop.permute.xlu0 %925 }
 0x384   : > { %v932_v50 = vpop.permute.xlu1 %931 }
 0x385   : > { %v920_v51 = vpop.permute.xlu0 %919 }
 0x386   : > { %v965_v56 = vsel %vm5871_vm12, %v962_v54, %v920_v51  ;;  %vm1056_vm12 = vcmask 744448  }
 0x387   : > { %v968_v61 = vsel %vm966_vm15, %v965_v56, %v923_v42  ;;  %vm978_vm15 = vcmask 113664  }
 0x388   : > { %v908_v57 = vpop.permute.xlu1 %907  ;;  %v971_v0 = vsel %vm969_vm4, %v968_v61, %v926_v48  ;;  %vm1020_vm4 = vcmask 900096  }
 0x389   : > { %v953_v58 = vsel %vm951_vm13, %v950_v55, %v908_v57  ;;  %v935_v59 = vpop.permute.xlu0 %934 }
 0x38a   : > { %v4828_v60 = vsel %vm954_vm14, %v953_v58, %v911_v43  ;;  %v980_v4 = vsel %vm978_vm15, %v932_v50, %v935_v59  ;;  %vm1047_vm15 = vcmask 752640  }
 0x38b   : > { %1005 = vrot.lane.b32.xlu0 %v4828_v60, %s5913_s23  ;;  %v993_v62 = vrot.slane %v4828_v60, 4 }
 0x38d   : > { %v929_v63 = vpop.permute.xlu0 %928  ;;  %996 = vrot.lane.b32.xlu1 %v993_v62, %s5914_s30 }
 0x38e   : > { %v974_v1 = vsel %vm972_vm7, %v971_v0, %v929_v63  ;;  %vm1029_vm7 = vcmask 891904  }
 0x38f   : > { %1023 = vrot.lane.b32.xlu0 %v4828_v60, %s4570_s22  ;;  %v977_v2 = vsel %vm975_vm5, %v974_v1, %v932_v50  ;;  %vm1002_vm5 = vcmask 1039360   ;;  %v4440_v1 = vld [vmem:[%s5827_s5 + $0x8] sm:$0xff]  }
 0x390   : > { %v994_v7 = vrot.slane %v977_v2, 4 }
 0x391   : > { %1014 = vrot.lane.b32.xlu1 %v993_v62, %s5867_s15  ;;  %v986_v3 = vpop.permute.xlu0 %985 }
 0x392   : > { %v4839_v5 = vsel %vm5890_vm0, %v980_v4, %v986_v3  ;;  %vm1935_vm0 = vcmask 195584  }
 0x393   : > { %1007 = vrot.lane.b32.xlu0 %v977_v2, %s5913_s23  ;;  %v995_v8 = vrot.slane %v4839_v5, 4 }
 0x395   : > { %1032 = vrot.lane.b32.xlu1 %v993_v62, %s5911_s27 }
 0x397   : > { %1025 = vrot.lane.b32.xlu0 %v977_v2, %s4570_s22 }
 0x399   : > { %1009 = vrot.lane.b32.xlu1 %v4839_v5, %s5913_s23 }
 0x39b   : > { %1016 = vrot.lane.b32.xlu0 %v994_v7, %s5867_s15 }
 0x39d   : > { %1027 = vrot.lane.b32.xlu1 %v4839_v5, %s4570_s22  ;;  %s4575_s22 = smov 56  }
 0x39f   : > { %1034 = vrot.lane.b32.xlu0 %v994_v7, %s5911_s27 }
 0x3a1   : > { %998 = vrot.lane.b32.xlu1 %v994_v7, %s5914_s30 }
 0x3a3   : > { %1000 = vrot.lane.b32.xlu0 %v995_v8, %s5914_s30 }
 0x3a5   : > { %1045 = vrot.lane.b32.xlu1 %v4839_v5, %s5869_s16 }
 0x3a7   : > { %1043 = vrot.lane.b32.xlu0 %v977_v2, %s5869_s16 }
 0x3a9   : > { %1018 = vrot.lane.b32.xlu1 %v995_v8, %s5867_s15  ;;  %s5916_s15 = smov 92  }
 0x3ab   : > { %1052 = vrot.lane.b32.xlu0 %v994_v7, %s4573_s24  ;;  %v4442_v7 = vld [vmem:[%s5829_s7] sm:$0xff]  }
 0x3ad   : > { %1036 = vrot.lane.b32.xlu1 %v995_v8, %s5911_s27  ;;  %s4576_s27 = smov 38  }
 0x3af   : > { %1041 = vrot.lane.b32.xlu0 %v4828_v60, %s5869_s16  ;;  %s4574_s16 = smov 74  }
 0x3b1   : > { %1054 = vrot.lane.b32.xlu1 %v995_v8, %s4573_s24  ;;  %v4443_v8 = vld [vmem:[%s5830_s8 + $0x8] ss:$0 sps:$4 sm:$0x11]  }
 0x3b3   : > { %1059 = vrot.lane.b32.xlu0 %v4828_v60, %s4564_s17 }
 0x3b5   : > { %1050 = vrot.lane.b32.xlu1 %v993_v62, %s4573_s24  ;;  %v4439_v62 = vld [vmem:[%s5827_s5] sm:$0xff]   ;;  %s4577_s24 = smov 20  }
 0x3b7   : > { %1063 = vrot.lane.b32.xlu0 %v4839_v5, %s4564_s17 }
 0x3b9   : > { %1061 = vrot.lane.b32.xlu1 %v977_v2, %s4564_s17  ;;  %s5915_s17 = smov 110  }
 0x3bb   : > { %1128 = vperm.xlu0 %4433, %v1118_v9   ;;  %v4444_v9 = vld [vmem:[%s5829_s7 + $0x8] ss:$0 sps:$4 sm:$0x11]  }
 0x3bd   : > { %1123 = vperm.xlu1 %4434, %v1117_v10  }
 0x3bf   : > { %1138 = vperm.xlu0 %4433, %v1120_v11  }
 0x3c1   : > { %1133 = vperm.xlu1 %4434, %v1119_v12  }
 0x3fd   : > { %v1006_v13 = vpop.permute.xlu0 %1005 }
 0x3ff   : > { %v997_v14 = vpop.permute.xlu1 %996 }
 0x401   : > { %v1024_v15 = vpop.permute.xlu0 %1023 }
 0x403   : > { %v1015_v16 = vpop.permute.xlu1 %1014 }
 0x405   : > { %v1008_v17 = vpop.permute.xlu0 %1007 }
 0x406   : > { %v1012_v36 = vsel %vm954_vm14, %v1006_v13, %v1008_v17 }
 0x407   : > { %v1033_v18 = vpop.permute.xlu1 %1032 }
 0x409   : > { %v1026_v19 = vpop.permute.xlu0 %1025 }
 0x40a   : > { %v1030_v44 = vsel %vm1029_vm7, %v1024_v15, %v1026_v19 }
 0x40b   : > { %v4873_v20 = vpop.permute.xlu1 %1009 }
 0x40c   : > { %v1013_v34 = vsel %vm954_vm14, %v1008_v17, %v4873_v20 }
 0x40d   : > { %v1017_v21 = vpop.permute.xlu0 %1016 }
 0x40e   : > { %v1021_v32 = vsel %vm1020_vm4, %v1015_v16, %v1017_v21 }
 0x40f   : > { %v4875_v22 = vpop.permute.xlu1 %1027  ;;  %v1079_v39 = vsel %vm5891_vm2, %v1012_v36, %v1021_v32 }
 0x410   : > { %v1031_v42 = vsel %vm1029_vm7, %v1026_v19, %v4875_v22  ;;  %vm1906_vm7 = vcmask 556032  }
 0x411   : > { %v1035_v23 = vpop.permute.xlu0 %1034 }
 0x412   : > { %v1039_v40 = vsel %vm951_vm13, %v1033_v18, %v1035_v23 }
 0x413   : > { %v999_v24 = vpop.permute.xlu1 %998  ;;  %v1091_v47 = vsel %vm5891_vm2, %v1030_v44, %v1039_v40 }
 0x414   : > { %v1003_v25 = vsel %vm1002_vm5, %v997_v14, %v999_v24 }
 0x415   : > { %v1001_v26 = vpop.permute.xlu0 %1000  ;;  %v1069_v30 = vsel %vm5891_vm2, %v4828_v60, %v1003_v25 }
 0x416   : > { %v1004_v27 = vsel %vm1002_vm5, %v999_v24, %v1001_v26  ;;  %v1075_v63 = vsel %vm5891_vm2, %v4839_v5, %v1001_v26  ;;  %v4441_v5 = vld [vmem:[%s5830_s8] sm:$0xff]  }
 0x417   : > { %v4879_v28 = vpop.permute.xlu1 %1045  ;;  %v1072_v29 = vsel %vm5891_vm2, %v977_v2, %v1004_v27  ;;  %4089 = vmatprep.subr.bf16.mxu1 %v4441_v5 }
 0x418   : > { %1166 = vmatprep.subr.bf16.mxu0 %v1072_v29  ;;  %4090 = vmatpush3.bf16.msra.mxu1 %v4441_v5 }
 0x419   : > { %v1044_v31 = vpop.permute.xlu0 %1043  ;;  %1167 = vmatpush1.bf16.msra.mxu0 %v1069_v30 }
 0x41a   : > { %v1049_v49 = vsel %vm1047_vm15, %v1044_v31, %v4879_v28 }
 0x41b   : > { %v1019_v33 = vpop.permute.xlu1 %1018 }
 0x41c   : > { %v1022_v35 = vsel %vm1020_vm4, %v1017_v21, %v1019_v33  ;;  %v1087_v0 = vsel %vm5891_vm2, %v4873_v20, %v1019_v33 }
 0x41d   : > { %v1053_v37 = vpop.permute.xlu0 %1052  ;;  %v1083_v38 = vsel %vm5891_vm2, %v1013_v34, %v1022_v35 }
 0x41e   : > { %1168 = vmatprep.subr.bf16.mxu0 %v1083_v38 }
 0x41f   : > { %1169 = vmatpush1.bf16.msra.mxu0 %v1079_v39  ;;  %v1037_v41 = vpop.permute.xlu1 %1036 }
 0x420   : > { %v1040_v43 = vsel %vm951_vm13, %v1035_v23, %v1037_v41  ;;  %v1099_v2 = vsel %vm5891_vm2, %v4875_v22, %v1037_v41  ;;  %vm1353_vm13 = vcmask 31744  }
 0x421   : > { %v1042_v45 = vpop.permute.xlu0 %1041  ;;  %v1095_v46 = vsel %vm5891_vm2, %v1031_v42, %v1040_v43 }
 0x422   : > { %1170 = vmatprep.subr.bf16.mxu0 %v1095_v46  ;;  %v1048_v54 = vsel %vm1047_vm15, %v1042_v45, %v1044_v31 }
 0x423   : > { %1171 = vmatpush1.bf16.msra.mxu0 %v1091_v47  ;;  %v1055_v48 = vpop.permute.xlu1 %1054 }
 0x424   : > { %v1058_v50 = vsel %vm1056_vm12, %v1053_v37, %v1055_v48  ;;  %v1111_v3 = vsel %vm5891_vm2, %v4879_v28, %v1055_v48 }
 0x425   : > { %v1060_v51 = vpop.permute.xlu0 %1059  ;;  %v1107_v52 = vsel %vm5891_vm2, %v1049_v49, %v1058_v50 }
 0x426   : > { %1172 = vmatprep.subr.bf16.mxu0 %v1107_v52 }
 0x427   : > { %v1051_v53 = vpop.permute.xlu1 %1050 }
 0x428   : > { %v1057_v55 = vsel %vm1056_vm12, %v1051_v53, %v1053_v37  ;;  %vm5884_vm12 = vcmask 15360  }
 0x429   : > { %v1103_v56 = vsel %vm5891_vm2, %v1048_v54, %v1057_v55  ;;  %v1064_v57 = vpop.permute.xlu0 %1063 }
 0x42a   : > { %1173 = vmatpush1.bf16.msra.mxu0 %v1103_v56  ;;  %v1164_v4 = vsel %vm5891_vm2, %v1064_v57, 0 }
 0x42b   : > { %v1062_v58 = vpop.permute.xlu1 %1061 }
 0x42c   : > { %v1066_v59 = vsel %vm948_vm11, %v1060_v51, %v1062_v58  ;;  %v1067_v60 = vsel %vm948_vm11, %v1062_v58, %v1064_v57  ;;  %vm5888_vm11 = vcmask 1040384  }
 0x42d   : > { %3759 = vmatprep.subr.msk.bf16.mxu0 %vm5891_vm2, %v1067_v60  ;;  %v1158_v61 = vsel %vm5891_vm2, %v1066_v59, 0  ;;  %4329 = vmatprep.subr.msk.bf16.mxu1 %vm5888_vm11, %v4443_v8  ;;  %v1460_v10 = vsel %vm5888_vm11, %v4443_v8, 0  ;;  %v1680_v11 = vsel %vm5888_vm11, %v4444_v9, 0 }
 0x42e   : > { %1175 = vmatpush1.bf16.msra.mxu0 %v1158_v61  ;;  %4092 = vmatpush3.bf16.msra.mxu1 %v1460_v10 }
 0x42f   : > { %4075 = vmatprep.subr.bf16.mxu0 %v1075_v63 }
 0x431   : > { %3760 = vmatmul.mubr.msk.bf16.vlgmr.msra.gmra.mrb[4].mxu0 %vm5889_vm9, %v4439_v62 }
 0x432   : > { %4076 = vmatpush3.bf16.msra.mxu0 %v1075_v63  ;;  %1208 = vmatprep.mubr.bf16.mxu0 %v4550_v6 }
 0x433   : > { %4077 = vmatprep.subr.bf16.mxu0 %v1087_v0 }
 0x436   : > { %4078 = vmatpush3.bf16.msra.mxu0 %v1087_v0 }
 0x437   : > { %4079 = vmatprep.subr.bf16.mxu0 %v1099_v2 }
 0x439   : > { %3761 = vmatmul.mubr.msk.bf16.gmra.mrb[8].mxu0 %vm5889_vm9, %v4440_v1 }
 0x43a   : > { %4080 = vmatpush3.bf16.msra.mxu0 %v1099_v2  ;;  %4085 = vmatprep.mubr.msk.bf16.mxu0 %vm5889_vm9, %v4439_v62  ;;  %v1129_v16 = vpop.permute.xlu0 %1128 }
 0x43b   : > { %4081 = vmatprep.subr.bf16.mxu0 %v1111_v3 }
 0x43c   : > { %v1124_v12 = vpop.permute.xlu1 %1123 }
 0x43e   : > { %4082 = vmatpush3.bf16.msra.mxu0 %v1111_v3  ;;  %v1139_v32 = vpop.permute.xlu0 %1138 }
 0x43f   : > { %4328 = vmatprep.subr.msk.bf16.mxu0 %vm5891_vm2, %v1064_v57 }
 0x440   : > { %v1134_v27 = vpop.permute.xlu1 %1133 }
 0x442   : > { %4084 = vmatpush3.bf16.msra.mxu0 %v1164_v4 }
 0x443   : > { %4125 = vmatprep.subr.bf16.mxu0 %v4442_v7 }
 0x445   : > { %4086 = vmatmul.mubr.msk.bf16.vlgmr.msra.gmra.mrb[12].mxu0 %vm5889_vm9, %v4440_v1  ;;  %vm1932_vm9 = vcmask 965632  }
 0x446   : > { %4126 = vmatpush3.bf16.msra.mxu0 %v4442_v7 }
 0x447   : > { %4330 = vmatprep.subr.msk.bf16.mxu0 %vm5888_vm11, %v4444_v9  ;;  %vm1929_vm11 = vcmask 687104  }
 0x44a   : > { %4128 = vmatpush3.bf16.msra.mxu0 %v1680_v11 }
 0x504   : > { %v1200_v13 = vpop.f32.mrb[4].mxu0 }
 0x505   : > { %v1201_v14 = vadd.f32 %v1200_v13, %v1124_v12  ;;  %v1202_v15 = vpop.f32.mrb[5].mxu0 }
 0x506   : > { %v1203_v17 = vadd.f32 %v1202_v15, %v1124_v12  ;;  %v1204_v18 = vpop.f32.mrb[6].mxu0 }
 0x507   : > { %v1205_v19 = vadd.f32 %v1204_v18, %v1129_v16  ;;  %v1206_v20 = vpop.f32.mrb[7].mxu0  ;;  %v1268_v22 = vmax.f32 %v1201_v14, 0.0 }
 0x508   : > { %v1207_v21 = vadd.f32 %v1206_v20, %v1129_v16  ;;  %v1269_v24 = vmax.f32 %v1203_v17, 0.0 }
 0x509   : > { %v1271_v23 = vmax.f32 %v1205_v19, 0.0 }
 0x50a   : > { %v1272_v25 = vmax.f32 %v1207_v21, 0.0 }
 0x50b   : > { %v1280_v26 = vpack.c.bf16 %v1271_v23, %v1268_v22 }
 0x50c   : > { %v1281_v28 = vpack.c.bf16 %v1272_v25, %v1269_v24  ;;  %v1210_v29 = vpop.f32.mrb[8].mxu0 }
 0x50d   : > { %v1211_v30 = vadd.f32 %v1210_v29, %v1134_v27  ;;  %v1212_v31 = vpop.f32.mrb[9].mxu0  ;;  %v1304_v42 = vrot.slane %v1280_v26, 4 }
 0x50e   : > { %v1213_v33 = vadd.f32 %v1212_v31, %v1134_v27  ;;  %v1214_v34 = vpop.f32.mrb[10].mxu0  ;;  %v1305_v44 = vrot.slane %v1281_v28, 4 }
 0x50f   : > { %v1215_v35 = vadd.f32 %v1214_v34, %v1139_v32  ;;  %v1216_v36 = vpop.f32.mrb[11].mxu0  ;;  %v1274_v38 = vmax.f32 %v1211_v30, 0.0 }
 0x510   : > { %v1217_v37 = vadd.f32 %v1216_v36, %v1139_v32  ;;  %v1275_v40 = vmax.f32 %v1213_v33, 0.0 }
 0x511   : > { %v1277_v39 = vmax.f32 %v1215_v35, 0.0 }
 0x512   : > { %v1278_v41 = vmax.f32 %v1217_v37, 0.0 }
 0x513   : > { %v1283_v43 = vpack.c.bf16 %v1277_v39, %v1274_v38 }
 0x514   : > { %v1284_v45 = vpack.c.bf16 %v1278_v41, %v1275_v40 }
 0x515   : > { %v1289_v46 = vrot.slane %v1283_v43, 4  ;;  %v1309_v47 = vsel %vm5891_vm2, %v1304_v42, %v1283_v43 }
 0x516   : > { %v1290_v48 = vrot.slane %v1284_v45, 4  ;;  %v1312_v49 = vsel %vm5891_vm2, %v1305_v44, %v1284_v45  ;;  %1358 = vrot.lane.b32.xlu0 %v1309_v47, %s5915_s17  ;;  %4093 = vmatprep.mubr.msk.bf16.mxu1 %vm5885_vm6, %v1309_v47 }
 0x517   : > { %v1294_v50 = vsel %vm5891_vm2, %v1280_v26, %v1289_v46 }
 0x518   : > { %v1297_v51 = vsel %vm5891_vm2, %v1281_v28, %v1290_v48  ;;  %v4087_v52 = vpop.f32.mrb[12].mxu0  ;;  %1317 = vrot.lane.b32.xlu1 %v1294_v50, %s5915_s17  ;;  %4129 = vmatprep.mubr.msk.bf16.mxu0 %vm5885_vm6, %v1294_v50 }
 0x519   : > { %v1262_v53 = vadd.f32 %v4087_v52, %v1134_v27  ;;  %v1253_v54 = vpop.f32.mrb[13].mxu0 }
 0x51a   : > { %v1254_v55 = vadd.f32 %v1253_v54, %v1124_v12  ;;  %v4088_v56 = vpop.f32.mrb[14].mxu0  ;;  %1360 = vrot.lane.b32.xlu0 %v1309_v47, %s5916_s15 }
 0x51b   : > { %v1265_v57 = vadd.f32 %v4088_v56, %v1139_v32  ;;  %v1256_v58 = vpop.f32.mrb[15].mxu0  ;;  %v1276_v60 = vmax.f32 %v1262_v53, 0.0 }
 0x51c   : > { %v1257_v59 = vadd.f32 %v1256_v58, %v1129_v16  ;;  %1319 = vrot.lane.b32.xlu1 %v1294_v50, %s5916_s15  ;;  %v1270_v62 = vmax.f32 %v1254_v55, 0.0 }
 0x51d   : > { %v1279_v61 = vmax.f32 %v1265_v57, 0.0 }
 0x51e   : > { %v1273_v63 = vmax.f32 %v1257_v59, 0.0  ;;  %1362 = vrot.lane.b32.xlu0 %v1309_v47, %s4574_s16 }
 0x51f   : > { %v1285_v0 = vpack.c.bf16 %v1279_v61, %v1276_v60 }
 0x520   : > { %v1282_v1 = vpack.c.bf16 %v1273_v63, %v1270_v62  ;;  %1321 = vrot.lane.b32.xlu1 %v1294_v50, %s4574_s16  ;;  %s4581_s16 = smov 76  }
 0x521   : > { %v1291_v2 = vrot.slane %v1285_v0, 4 }
 0x522   : > { %v1306_v3 = vrot.slane %v1282_v1, 4  ;;  %1364 = vrot.lane.b32.xlu0 %v1309_v47, %s4575_s22 }
 0x523   : > { %v1300_v4 = vsel %vm5891_vm2, %v1282_v1, %v1291_v2 }
 0x524   : > { %1323 = vrot.lane.b32.xlu1 %v1294_v50, %s4575_s22  ;;  %v1315_v5 = vsel %vm5891_vm2, %v1306_v3, %v1285_v0  ;;  %s5917_s22 = smov 58   ;;  %vm1938_vm2 = vcmask 474112  }
 0x526   : > { %1366 = vrot.lane.b32.xlu0 %v1309_v47, %s4576_s27 }
 0x528   : > { %1325 = vrot.lane.b32.xlu1 %v1294_v50, %s4576_s27  ;;  %s4582_s27 = smov 40  }
 0x52a   : > { %1368 = vrot.lane.b32.xlu0 %v1309_v47, %s4577_s24 }
 0x52c   : > { %1327 = vrot.lane.b32.xlu1 %v1294_v50, %s4577_s24  ;;  %s4583_s24 = smov 22  }
 0x52e   : > { %1330 = vrot.lane.b32.xlu0 %v1294_v50, %s5872_s0 }
 0x530   : > { %1332 = vrot.lane.b32.xlu1 %v1297_v51, %s5872_s0 }
 0x532   : > { %1373 = vrot.lane.b32.xlu0 %v1312_v49, %s5872_s0 }
 0x534   : > { %1371 = vrot.lane.b32.xlu1 %v1309_v47, %s5872_s0  ;;  %s4584_s0 = smov 4  }
 0x536   : > { %1376 = vrot.lane.b32.xlu0 %v1312_v49, %s5874_s1 }
 0x538   : > { %1336 = vrot.lane.b32.xlu1 %v1297_v51, %s5874_s1  ;;  %s4585_s1 = smov 114  }
 0x53a   : > { %1378 = vrot.lane.b32.xlu0 %v1312_v49, %s5876_s21 }
 0x53c   : > { %1338 = vrot.lane.b32.xlu1 %v1297_v51, %s5876_s21  ;;  %s5879_s21 = smov 42  }
 0x53e   : > { %1380 = vrot.lane.b32.xlu0 %v1312_v49, %s4581_s16 }
 0x540   : > { %1340 = vrot.lane.b32.xlu1 %v1297_v51, %s4581_s16 }
 0x542   : > { %1382 = vrot.lane.b32.xlu0 %v1312_v49, %s5917_s22 }
 0x544   : > { %1342 = vrot.lane.b32.xlu1 %v1297_v51, %s5917_s22 }
 0x546   : > { %1384 = vrot.lane.b32.xlu0 %v1312_v49, %s4582_s27 }
 0x548   : > { %1344 = vrot.lane.b32.xlu1 %v1297_v51, %s4582_s27  ;;  %s5918_s27 = smov 34  }
 0x54a   : > { %1386 = vrot.lane.b32.xlu0 %v1312_v49, %s4583_s24 }
 0x54c   : > { %1346 = vrot.lane.b32.xlu1 %v1297_v51, %s4583_s24  ;;  %s5919_s24 = smov 68  }
 0x54e   : > { %1351 = vrot.lane.b32.xlu0 %v1300_v4, %s4584_s0 }
 0x550   : > { %1389 = vrot.lane.b32.xlu1 %v1312_v49, %s4584_s0 }
 0x552   : > { %1391 = vrot.lane.b32.xlu0 %v1315_v5, %s4584_s0 }
 0x554   : > { %1349 = vrot.lane.b32.xlu1 %v1297_v51, %s4584_s0  ;;  %s5878_s0 = smov 102  }
 0x556   : > { %1394 = vrot.lane.b32.xlu0 %v1315_v5, %s4585_s1 }
 0x558   : > { %1355 = vrot.lane.b32.xlu1 %v1300_v4, %s4585_s1  ;;  %s5880_s1 = smov 8  }
 0x588   : > { %v1359_v7 = vpop.permute.xlu0 %1358 }
 0x589   : > { %4094 = vmatmul.mubr.msk.bf16.vlgmr.msra.gmra.mrb[16].mxu1 %vm5885_vm6, %v1359_v7 }
 0x58a   : > { %v1318_v8 = vpop.permute.xlu1 %1317 }
 0x58b   : > { %4130 = vmatmul.mubr.msk.bf16.vlgmr.msra.gmra.mrb[16].mxu0 %vm5885_vm6, %v1318_v8 }
 0x58c   : > { %v1361_v9 = vpop.permute.xlu0 %1360 }
 0x58d   : > { %4097 = vmatprep.mubr.msk.bf16.mxu1 %vm5885_vm6, %v1361_v9 }
 0x58e   : > { %v1320_v10 = vpop.permute.xlu1 %1319 }
 0x58f   : > { %4133 = vmatprep.mubr.msk.bf16.mxu0 %vm5885_vm6, %v1320_v10 }
 0x590   : > { %v1363_v11 = vpop.permute.xlu0 %1362 }
 0x591   : > { %4098 = vmatmul.mubr.msk.bf16.gmra.mrb[20].mxu1 %vm5885_vm6, %v1363_v11 }
 0x592   : > { %v1322_v12 = vpop.permute.xlu1 %1321 }
 0x593   : > { %4134 = vmatmul.mubr.msk.bf16.gmra.mrb[20].mxu0 %vm5885_vm6, %v1322_v12 }
 0x594   : > { %v1365_v13 = vpop.permute.xlu0 %1364 }
 0x595   : > { %4101 = vmatprep.mubr.msk.bf16.mxu1 %vm5885_vm6, %v1365_v13 }
 0x596   : > { %v1324_v14 = vpop.permute.xlu1 %1323 }
 0x597   : > { %4137 = vmatprep.mubr.msk.bf16.mxu0 %vm5885_vm6, %v1324_v14 }
 0x598   : > { %v1367_v15 = vpop.permute.xlu0 %1366 }
 0x599   : > { %4102 = vmatmul.mubr.msk.bf16.gmra.mrb[24].mxu1 %vm5885_vm6, %v1367_v15 }
 0x59a   : > { %v1326_v16 = vpop.permute.xlu1 %1325 }
 0x59b   : > { %4138 = vmatmul.mubr.msk.bf16.gmra.mrb[24].mxu0 %vm5885_vm6, %v1326_v16 }
 0x59c   : > { %v1369_v17 = vpop.permute.xlu0 %1368 }
 0x59d   : > { %4105 = vmatprep.mubr.msk.bf16.mxu1 %vm5885_vm6, %v1369_v17 }
 0x59e   : > { %v1328_v18 = vpop.permute.xlu1 %1327 }
 0x59f   : > { %4141 = vmatprep.mubr.msk.bf16.mxu0 %vm5885_vm6, %v1328_v18 }
 0x5a0   : > { %v1331_v19 = vpop.permute.xlu0 %1330 }
 0x5a2   : > { %v1333_v20 = vpop.permute.xlu1 %1332 }
 0x5a3   : > { %v1335_v21 = vsel %vm5884_vm12, %v1331_v19, %v1333_v20 }
 0x5a4   : > { %v1374_v22 = vpop.permute.xlu0 %1373  ;;  %4142 = vmatmul.mubr.msk.bf16.gmra.mrb[28].mxu0 %vm5885_vm6, %v1335_v21 }
 0x5a6   : > { %v1372_v23 = vpop.permute.xlu1 %1371 }
 0x5a7   : > { %v1375_v24 = vsel %vm5884_vm12, %v1372_v23, %v1374_v22  ;;  %vm1912_vm12 = vcmask 64512  }
 0x5a8   : > { %v1377_v25 = vpop.permute.xlu0 %1376  ;;  %4106 = vmatmul.mubr.msk.bf16.gmra.mrb[28].mxu1 %vm5885_vm6, %v1375_v24 }
 0x5a9   : > { %4109 = vmatprep.mubr.msk.bf16.mxu1 %vm5885_vm6, %v1377_v25 }
 0x5aa   : > { %v1337_v26 = vpop.permute.xlu1 %1336 }
 0x5ab   : > { %4145 = vmatprep.mubr.msk.bf16.mxu0 %vm5885_vm6, %v1337_v26 }
 0x5ac   : > { %v1379_v27 = vpop.permute.xlu0 %1378 }
 0x5ae   : > { %v1339_v28 = vpop.permute.xlu1 %1338 }
 0x5af   : > { %4146 = vmatmul.mubr.msk.bf16.gmra.mrb[32].mxu0 %vm5885_vm6, %v1339_v28 }
 0x5b0   : > { %v1381_v29 = vpop.permute.xlu0 %1380  ;;  %4110 = vmatmul.mubr.msk.bf16.gmra.mrb[32].mxu1 %vm5885_vm6, %v1379_v27 }
 0x5b1   : > { %4113 = vmatprep.mubr.msk.bf16.mxu1 %vm5885_vm6, %v1381_v29 }
 0x5b2   : > { %v1341_v30 = vpop.permute.xlu1 %1340 }
 0x5b3   : > { %4149 = vmatprep.mubr.msk.bf16.mxu0 %vm5885_vm6, %v1341_v30 }
 0x5b4   : > { %v1383_v31 = vpop.permute.xlu0 %1382 }
 0x5b6   : > { %v1343_v32 = vpop.permute.xlu1 %1342 }
 0x5b7   : > { %4150 = vmatmul.mubr.msk.bf16.gmra.mrb[36].mxu0 %vm5885_vm6, %v1343_v32 }
 0x5b8   : > { %v1385_v33 = vpop.permute.xlu0 %1384  ;;  %4114 = vmatmul.mubr.msk.bf16.gmra.mrb[36].mxu1 %vm5885_vm6, %v1383_v31 }
 0x5b9   : > { %4117 = vmatprep.mubr.msk.bf16.mxu1 %vm5885_vm6, %v1385_v33 }
 0x5ba   : > { %v1345_v34 = vpop.permute.xlu1 %1344 }
 0x5bb   : > { %4153 = vmatprep.mubr.msk.bf16.mxu0 %vm5885_vm6, %v1345_v34 }
 0x5bc   : > { %v1387_v35 = vpop.permute.xlu0 %1386 }
 0x5be   : > { %v1347_v36 = vpop.permute.xlu1 %1346 }
 0x5bf   : > { %4154 = vmatmul.mubr.msk.bf16.gmra.mrb[40].mxu0 %vm5885_vm6, %v1347_v36 }
 0x5c0   : > { %v1352_v37 = vpop.permute.xlu0 %1351  ;;  %4118 = vmatmul.mubr.msk.bf16.gmra.mrb[40].mxu1 %vm5885_vm6, %v1387_v35 }
 0x5c2   : > { %v1390_v38 = vpop.permute.xlu1 %1389 }
 0x5c4   : > { %v1392_v39 = vpop.permute.xlu0 %1391 }
 0x5c5   : > { %v1393_v40 = vsel %vm1353_vm13, %v1390_v38, %v1392_v39 }
 0x5c6   : > { %4121 = vmatprep.mubr.msk.bf16.mxu1 %vm5885_vm6, %v1393_v40  ;;  %v1350_v41 = vpop.permute.xlu1 %1349 }
 0x5c7   : > { %v1354_v42 = vsel %vm1353_vm13, %v1350_v41, %v1352_v37  ;;  %vm1909_vm13 = vcmask 834560  }
 0x5c8   : > { %v1395_v43 = vpop.permute.xlu0 %1394  ;;  %4157 = vmatprep.mubr.msk.bf16.mxu0 %vm5885_vm6, %v1354_v42 }
 0x5c9   : > { %4122 = vmatmul.mubr.msk.bf16.gmra.mrb[44].mxu1 %vm5885_vm6, %v1395_v43 }
 0x5ca   : > { %v1356_v44 = vpop.permute.xlu1 %1355  ;;  %2510 = vmatprep.mubr.bf16.mxu1 %v4550_v6 }
 0x5cb   : > { %4158 = vmatmul.mubr.msk.bf16.gmra.mrb[44].mxu0 %vm5885_vm6, %v1356_v44  ;;  %vm1915_vm6 = vcmask 343040  }
 0x65c   : > { %v4095_v45 = vpop.f32.mrb[16].mxu1 }
 0x65d   : > { %v1496_v46 = vpop.f32.mrb[17].mxu1 }
 0x65e   : > { %v4096_v47 = vpop.f32.mrb[18].mxu1  ;;  %v4131_v48 = vpop.f32.mrb[16].mxu0 }
 0x65f   : > { %v1725_v49 = vadd.f32 %v4131_v48, %v4095_v45  ;;  %v1499_v50 = vpop.f32.mrb[19].mxu1  ;;  %v1716_v51 = vpop.f32.mrb[17].mxu0 }
 0x660   : > { %v1717_v52 = vadd.f32 %v1716_v51, %v1496_v46  ;;  %v4132_v53 = vpop.f32.mrb[18].mxu0 }
 0x661   : > { %v1728_v54 = vadd.f32 %v4132_v53, %v4096_v47  ;;  %v1719_v55 = vpop.f32.mrb[19].mxu0 }
 0x662   : > { %v1720_v56 = vadd.f32 %v1719_v55, %v1499_v50 }
 0x663   : > { %v1844_v57 = vpack.c.bf16 %v1728_v54, %v1725_v49 }
 0x664   : > { %v1843_v58 = vpack.c.bf16 %v1720_v56, %v1717_v52  ;;  %v4099_v59 = vpop.f32.mrb[20].mxu1 }
 0x665   : > { %v1868_v60 = vrot.slane %v1844_v57, 4  ;;  %v1512_v61 = vpop.f32.mrb[21].mxu1  ;;  %1866 = vrot.lane.b32.xlu0 %v1844_v57, %s5878_s0  ;;  %s5920_s0 = smov 16  }
 0x666   : > { %v4100_v62 = vpop.f32.mrb[22].mxu1  ;;  %v4135_v63 = vpop.f32.mrb[20].mxu0  ;;  %v1862_v5 = vrot.slane %v1843_v58, 4 }
 0x667   : > { %v1741_v0 = vadd.f32 %v4135_v63, %v4099_v59  ;;  %v1515_v1 = vpop.f32.mrb[23].mxu1  ;;  %1869 = vrot.lane.b32.xlu1 %v1868_v60, %s5880_s1  ;;  %v1732_v2 = vpop.f32.mrb[21].mxu0  ;;  %s4590_s1 = smov 24  }
 0x668   : > { %v1733_v3 = vadd.f32 %v1732_v2, %v1512_v61  ;;  %v4136_v4 = vpop.f32.mrb[22].mxu0 }
 0x669   : > { %v1744_v7 = vadd.f32 %v4136_v4, %v4100_v62  ;;  %v1735_v8 = vpop.f32.mrb[23].mxu0  ;;  %1860 = vrot.lane.b32.xlu0 %v1843_v58, %s5918_s27 }
 0x66a   : > { %v1736_v9 = vadd.f32 %v1735_v8, %v1515_v1 }
 0x66b   : > { %v1846_v10 = vpack.c.bf16 %v1744_v7, %v1741_v0  ;;  %1863 = vrot.lane.b32.xlu1 %v1862_v5, %s5919_s24 }
 0x66c   : > { %v1845_v11 = vpack.c.bf16 %v1736_v9, %v1733_v3  ;;  %v4103_v12 = vpop.f32.mrb[24].mxu1 }
 0x66d   : > { %v1528_v13 = vpop.f32.mrb[25].mxu1  ;;  %1878 = vrot.lane.b32.xlu0 %v1846_v10, %s5915_s17  ;;  %v1880_v21 = vrot.slane %v1846_v10, 4 }
 0x66e   : > { %v4104_v14 = vpop.f32.mrb[26].mxu1  ;;  %v4139_v15 = vpop.f32.mrb[24].mxu0  ;;  %v1874_v27 = vrot.slane %v1845_v11, 4 }
 0x66f   : > { %v1757_v16 = vadd.f32 %v4139_v15, %v4103_v12  ;;  %v1531_v17 = vpop.f32.mrb[27].mxu1  ;;  %v1748_v18 = vpop.f32.mrb[25].mxu0  ;;  %1872 = vrot.lane.b32.xlu1 %v1845_v11, %s5879_s21  ;;  %s5882_s21 = smov 50  }
 0x670   : > { %v1749_v19 = vadd.f32 %v1748_v18, %v1528_v13  ;;  %v4140_v20 = vpop.f32.mrb[26].mxu0 }
 0x671   : > { %v1760_v22 = vadd.f32 %v4140_v20, %v4104_v14  ;;  %v1751_v23 = vpop.f32.mrb[27].mxu0 }
 0x672   : > { %v1752_v24 = vadd.f32 %v1751_v23, %v1531_v17 }
 0x673   : > { %v1848_v25 = vpack.c.bf16 %v1760_v22, %v1757_v16  ;;  %1881 = vrot.lane.b32.xlu1 %v1880_v21, %s5920_s0 }
 0x674   : > { %v1847_v26 = vpack.c.bf16 %v1752_v24, %v1749_v19 }
 0x675   : > { %1890 = vrot.lane.b32.xlu0 %v1848_v25, %s5912_s20  ;;  %v1892_v30 = vrot.slane %v1848_v25, 4 }
 0x676   : > { %v1886_v33 = vrot.slane %v1847_v26, 4 }
 0x677   : > { %v4143_v28 = vpop.f32.mrb[28].mxu0  ;;  %1875 = vrot.lane.b32.xlu1 %v1874_v27, %s4581_s16 }
 0x678   : > { %v1764_v29 = vpop.f32.mrb[29].mxu0 }
 0x679   : > { %v4144_v31 = vpop.f32.mrb[30].mxu0  ;;  %1884 = vrot.lane.b32.xlu0 %v1847_v26, %s5882_s21  ;;  %s5921_s21 = smov 8  }
 0x67a   : > { %v1767_v32 = vpop.f32.mrb[31].mxu0 }
 0x67b   : > { %v4107_v34 = vpop.f32.mrb[28].mxu1  ;;  %1893 = vrot.lane.b32.xlu1 %v1892_v30, %s4590_s1 }
 0x67c   : > { %v1773_v35 = vadd.f32 %v4143_v28, %v4107_v34  ;;  %v1544_v36 = vpop.f32.mrb[29].mxu1 }
 0x67d   : > { %v1765_v37 = vadd.f32 %v1764_v29, %v1544_v36  ;;  %v4108_v38 = vpop.f32.mrb[30].mxu1  ;;  %1887 = vrot.lane.b32.xlu0 %v1886_v33, %s5883_s2  ;;  %s5922_s2 = smov 102  }
 0x67e   : > { %v1776_v39 = vadd.f32 %v4144_v31, %v4108_v38  ;;  %v1547_v40 = vpop.f32.mrb[31].mxu1 }
 0x67f   : > { %v1768_v41 = vadd.f32 %v1767_v32, %v1547_v40 }
 0x680   : > { %v5011_v42 = vpack.c.bf16 %v1776_v39, %v1773_v35 }
 0x681   : > { %v1849_v43 = vpack.c.bf16 %v1768_v41, %v1765_v37 }
 0x682   : > { %v4147_v44 = vpop.f32.mrb[32].mxu0 }
 0x683   : > { %v1898_v45 = vrot.slane %v1849_v43, 4  ;;  %v4111_v46 = vpop.f32.mrb[32].mxu1  ;;  %v1780_v47 = vpop.f32.mrb[33].mxu0  ;;  %1896 = vrot.lane.b32.xlu0 %v1849_v43, %s5917_s22 }
 0x684   : > { %v1789_v48 = vadd.f32 %v4147_v44, %v4111_v46  ;;  %v1560_v49 = vpop.f32.mrb[33].mxu1  ;;  %v4148_v50 = vpop.f32.mrb[34].mxu0 }
 0x685   : > { %v1781_v51 = vadd.f32 %v1780_v47, %v1560_v49  ;;  %v4112_v52 = vpop.f32.mrb[34].mxu1  ;;  %v1783_v53 = vpop.f32.mrb[35].mxu0  ;;  %1899 = vrot.lane.b32.xlu1 %v1898_v45, %s5916_s15 }
 0x686   : > { %v1792_v54 = vadd.f32 %v4148_v50, %v4112_v52  ;;  %v1563_v55 = vpop.f32.mrb[35].mxu1 }
 0x687   : > { %v1784_v56 = vadd.f32 %v1783_v53, %v1563_v55 }
 0x688   : > { %v1852_v57 = vpack.c.bf16 %v1792_v54, %v1789_v48 }
 0x689   : > { %v1851_v58 = vpack.c.bf16 %v1784_v56, %v1781_v51 }
 0x68a   : > { %v1953_v59 = vrot.slane %v1852_v57, 4  ;;  %v4151_v60 = vpop.f32.mrb[36].mxu0  ;;  %1956 = vrot.lane.b32.xlu0 %v1852_v57, %s5921_s21 }
 0x68b   : > { %v4115_v61 = vpop.f32.mrb[36].mxu1  ;;  %v1796_v62 = vpop.f32.mrb[37].mxu0  ;;  %v1947_v5 = vrot.slane %v1851_v58, 4 }
 0x68c   : > { %v1805_v63 = vadd.f32 %v4151_v60, %v4115_v61  ;;  %v1576_v0 = vpop.f32.mrb[37].mxu1  ;;  %v4152_v1 = vpop.f32.mrb[38].mxu0  ;;  %1954 = vrot.lane.b32.xlu1 %v1953_v59, %s5922_s2  ;;  %s5923_s2 = smov 42  }
 0x68d   : > { %v1797_v2 = vadd.f32 %v1796_v62, %v1576_v0  ;;  %v4116_v3 = vpop.f32.mrb[38].mxu1  ;;  %v1799_v4 = vpop.f32.mrb[39].mxu0 }
 0x68e   : > { %v1808_v7 = vadd.f32 %v4152_v1, %v4116_v3  ;;  %v1579_v8 = vpop.f32.mrb[39].mxu1  ;;  %1950 = vrot.lane.b32.xlu0 %v1851_v58, %s5919_s24  ;;  %s4595_s24 = smov 59  }
 0x68f   : > { %v1800_v9 = vadd.f32 %v1799_v4, %v1579_v8 }
 0x690   : > { %v1854_v10 = vpack.c.bf16 %v1808_v7, %v1805_v63  ;;  %1948 = vrot.lane.b32.xlu1 %v1947_v5, %s5918_s27  ;;  %s5894_s27 = smov 60  }
 0x691   : > { %v1853_v11 = vpack.c.bf16 %v1800_v9, %v1797_v2 }
 0x692   : > { %v4155_v12 = vpop.f32.mrb[40].mxu0  ;;  %1902 = vrot.lane.b32.xlu0 %v5011_v42, %s5913_s23  ;;  %v1965_v21 = vrot.slane %v1854_v10, 4 }
 0x693   : > { %v4119_v13 = vpop.f32.mrb[40].mxu1  ;;  %v1812_v14 = vpop.f32.mrb[41].mxu0  ;;  %v1959_v27 = vrot.slane %v1853_v11, 4 }
 0x694   : > { %v1821_v15 = vadd.f32 %v4155_v12, %v4119_v13  ;;  %v1592_v16 = vpop.f32.mrb[41].mxu1  ;;  %v4156_v17 = vpop.f32.mrb[42].mxu0  ;;  %1962 = vrot.lane.b32.xlu1 %v1853_v11, %s4581_s16  ;;  %s5924_s16 = smov 84  }
 0x695   : > { %v1813_v18 = vadd.f32 %v1812_v14, %v1592_v16  ;;  %v4120_v19 = vpop.f32.mrb[42].mxu1  ;;  %v1815_v20 = vpop.f32.mrb[43].mxu0 }
 0x696   : > { %v1824_v22 = vadd.f32 %v4156_v17, %v4120_v19  ;;  %v1595_v23 = vpop.f32.mrb[43].mxu1  ;;  %1968 = vrot.lane.b32.xlu0 %v1854_v10, %s5920_s0  ;;  %s4592_s0 = smov 64  }
 0x697   : > { %v1816_v24 = vadd.f32 %v1815_v20, %v1595_v23 }
 0x698   : > { %v1856_v25 = vpack.c.bf16 %v1824_v22, %v1821_v15  ;;  %1966 = vrot.lane.b32.xlu1 %v1965_v21, %s5915_s17  ;;  %s5925_s17 = smov 50  }
 0x699   : > { %v1855_v26 = vpack.c.bf16 %v1816_v24, %v1813_v18 }
 0x69a   : > { %1980 = vrot.lane.b32.xlu0 %v1856_v25, %s4590_s1  ;;  %v1977_v30 = vrot.slane %v1856_v25, 4  ;;  %s5926_s1 = smov 94  }
 0x69b   : > { %v1971_v36 = vrot.slane %v1855_v26, 4 }
 0x69c   : > { %v4123_v28 = vpop.f32.mrb[44].mxu1  ;;  %1960 = vrot.lane.b32.xlu1 %v1959_v27, %s5923_s2  ;;  %s5927_s2 = smov 32  }
 0x69d   : > { %v1608_v29 = vpop.f32.mrb[45].mxu1 }
 0x69e   : > { %v4124_v31 = vpop.f32.mrb[46].mxu1  ;;  %v4159_v32 = vpop.f32.mrb[44].mxu0  ;;  %1974 = vrot.lane.b32.xlu0 %v1855_v26, %s5924_s16  ;;  %s5980_s16 = smov 18  }
 0x69f   : > { %v1837_v33 = vadd.f32 %v4159_v32, %v4123_v28  ;;  %v1611_v34 = vpop.f32.mrb[47].mxu1  ;;  %v1828_v35 = vpop.f32.mrb[45].mxu0 }
 0x6a0   : > { %v1829_v37 = vadd.f32 %v1828_v35, %v1608_v29  ;;  %v4160_v38 = vpop.f32.mrb[46].mxu0  ;;  %1978 = vrot.lane.b32.xlu1 %v1977_v30, %s5912_s20  ;;  %s4593_s20 = smov 93  }
 0x6a1   : > { %v1840_v39 = vadd.f32 %v4160_v38, %v4124_v31  ;;  %v1831_v40 = vpop.f32.mrb[47].mxu0 }
 0x6a2   : > { %v1832_v41 = vadd.f32 %v1831_v40, %v1611_v34  ;;  %1972 = vrot.lane.b32.xlu0 %v1971_v36, %s5925_s17  ;;  %s5896_s17 = smov 44  }
 0x6a3   : > { %v1858_v43 = vpack.c.bf16 %v1840_v39, %v1837_v33 }
 0x6a4   : > { %v1857_v44 = vpack.c.bf16 %v1832_v41, %v1829_v37 }
 0x6a5   : > { %v1989_v45 = vrot.slane %v1858_v43, 4  ;;  %v2024_v46 = vsel %vm960_vm10, %v1858_v43, 0 }
 0x6a6   : > { %1986 = vrot.lane.b32.xlu0 %v1857_v44, %s5916_s15  ;;  %v2051_v47 = vrot.slane %v2024_v46, 4  ;;  %v1983_v48 = vrot.slane %v1857_v44, 4 }
 0x6a7   : > { %1990 = vrot.lane.b32.xlu1 %v1989_v45, %s5913_s23 }
 0x6aa   : > { %2053 = vrot.lane.b32.xlu0 %v2051_v47, %s4592_s0 }
 0x6ab   : > { %1984 = vrot.lane.b32.xlu1 %v1983_v48, %s5917_s22 }
 0x6d7   : > { %v1867_v49 = vpop.permute.xlu0 %1866 }
 0x6d9   : > { %v1870_v50 = vpop.permute.xlu1 %1869 }
 0x6da   : > { %v1914_v61 = vsel %vm1912_vm12, %v1867_v49, %v1870_v50 }
 0x6db   : > { %v1861_v51 = vpop.permute.xlu0 %1860 }
 0x6dc   : > { %v1905_v52 = vsel %vm960_vm10, 0, %v1861_v51 }
 0x6dd   : > { %v1864_v53 = vpop.permute.xlu1 %1863 }
 0x6de   : > { %v1908_v54 = vsel %vm1906_vm7, %v1905_v52, %v1864_v53 }
 0x6df   : > { %v5037_v55 = vsel %vm1909_vm13, %v1908_v54, %v1867_v49  ;;  %v1879_v58 = vpop.permute.xlu0 %1878 }
 0x6e0   : > { %2106 = vrot.lane.b32.xlu0 %v5037_v55, %s5913_s23  ;;  %v5042_v56 = vrot.slane %v5037_v55, 4 }
 0x6e1   : > { %v1873_v57 = vpop.permute.xlu1 %1872 }
 0x6e2   : > { %2080 = vrot.lane.b32.xlu1 %v5042_v56, %s5914_s30  ;;  %v1917_v62 = vsel %vm1915_vm6, %v1914_v61, %v1873_v57 }
 0x6e4   : > { %2159 = vrot.lane.b32.xlu0 %v5037_v55, %s4593_s20 }
 0x6e5   : > { %v1882_v59 = vpop.permute.xlu1 %1881 }
 0x6e6   : > { %2132 = vrot.lane.b32.xlu1 %v5042_v56, %s5926_s1  ;;  %v1925_v4 = vsel %vm957_vm8, %v1879_v58, %v1882_v59 }
 0x6e7   : > { %v1891_v60 = vpop.permute.xlu0 %1890 }
 0x6e9   : > { %v1876_v63 = vpop.permute.xlu1 %1875 }
 0x6ea   : > { %v1920_v0 = vsel %vm1918_vm3, %v1917_v62, %v1876_v63  ;;  %2186 = vrot.lane.b32.xlu1 %v5042_v56, %s5916_s15 }
 0x6eb   : > { %v5056_v1 = vsel %vm1020_vm4, %v1920_v0, %v1879_v58  ;;  %v1885_v2 = vpop.permute.xlu0 %1884 }
 0x6ec   : > { %2108 = vrot.lane.b32.xlu0 %v5056_v1, %s5913_s23  ;;  %v2072_v3 = vrot.slane %v5056_v1, 4  ;;  %v1928_v5 = vsel %vm1926_vm1, %v1925_v4, %v1885_v2 }
 0x6ed   : > { %v1894_v10 = vpop.permute.xlu1 %1893 }
 0x6ee   : > { %2082 = vrot.lane.b32.xlu1 %v2072_v3, %s5914_s30  ;;  %v1937_v26 = vsel %vm1935_vm0, %v1891_v60, %v1894_v10 }
 0x6ef   : > { %v1888_v7 = vpop.permute.xlu0 %1887 }
 0x6f0   : > { %v1931_v8 = vsel %vm1929_vm11, %v1928_v5, %v1888_v7  ;;  %2161 = vrot.lane.b32.xlu0 %v5056_v1, %s4593_s20 }
 0x6f1   : > { %v5068_v9 = vsel %vm1932_vm9, %v1931_v8, %v1891_v60 }
 0x6f2   : > { %2110 = vrot.lane.b32.xlu1 %v5068_v9, %s5913_s23  ;;  %v2073_v14 = vrot.slane %v5068_v9, 4 }
 0x6f4   : > { %2214 = vrot.lane.b32.xlu0 %v5056_v1, %s5894_s27 }
 0x6f5   : > { %v1897_v11 = vpop.permute.xlu0 %1896 }
 0x6f6   : > { %2163 = vrot.lane.b32.xlu1 %v5068_v9, %s4593_s20  ;;  %v1940_v29 = vsel %vm1938_vm2, %v1937_v26, %v1897_v11 }
 0x6f7   : > { %v1900_v12 = vpop.permute.xlu1 %1899 }
 0x6f8   : > { %2134 = vrot.lane.b32.xlu0 %v2072_v3, %s5926_s1  ;;  %v1943_v34 = vsel %vm1047_vm15, %v1940_v29, %v1900_v12 }
 0x6fa   : > { %2216 = vrot.lane.b32.xlu1 %v5068_v9, %s5894_s27 }
 0x6fc   : > { %v1957_v13 = vpop.permute.xlu0 %1956  ;;  %2188 = vrot.lane.b32.xlu0 %v2072_v3, %s5916_s15 }
 0x6fe   : > { %2136 = vrot.lane.b32.xlu1 %v2073_v14, %s5926_s1  ;;  %v1955_v15 = vpop.permute.xlu1 %1954 }
 0x6ff   : > { %v2000_v27 = vsel %vm1912_vm12, %v1955_v15, %v1957_v13  ;;  %vm2232_vm12 = vcmask 490496  }
 0x700   : > { %v1951_v16 = vpop.permute.xlu0 %1950  ;;  %2245 = vrot.lane.b32.xlu0 %v2072_v3, %s4595_s24 }
 0x702   : > { %2190 = vrot.lane.b32.xlu1 %v2073_v14, %s5916_s15  ;;  %v1949_v17 = vpop.permute.xlu1 %1948 }
 0x703   : > { %v1994_v18 = vsel %vm960_vm10, %v5011_v42, %v1949_v17 }
 0x704   : > { %v1996_v19 = vsel %vm1906_vm7, %v1994_v18, %v1951_v16  ;;  %v5087_v20 = vpop.permute.xlu0 %1902  ;;  %2084 = vrot.lane.b32.xlu0 %v2073_v14, %s5914_s30 }
 0x705   : > { %v1998_v21 = vsel %vm1909_vm13, %v1996_v19, %v1955_v15  ;;  %v5110_v36 = vsel %vm954_vm14, %v1943_v34, %v5087_v20 }
 0x706   : > { %v2029_v22 = vrot.slane %v1998_v21, 4  ;;  %v1963_v23 = vpop.permute.xlu1 %1962  ;;  %v2074_v43 = vrot.slane %v5110_v36, 4 }
 0x708   : > { %v1969_v24 = vpop.permute.xlu0 %1968  ;;  %2212 = vrot.lane.b32.xlu0 %v5037_v55, %s5894_s27  ;;  %2034 = vrot.lane.b32.xlu1 %v2029_v22, %s5927_s2 }
 0x70a   : > { %v1967_v25 = vpop.permute.xlu1 %1966 }
 0x70b   : > { %v2008_v37 = vsel %vm957_vm8, %v1967_v25, %v1969_v24  ;;  %vm5931_vm8 = vcmask 261120  }
 0x70c   : > { %v1981_v42 = vpop.permute.xlu0 %1980  ;;  %2273 = vrot.lane.b32.xlu0 %v5037_v55, %s5917_s22  ;;  %2247 = vrot.lane.b32.xlu1 %v2073_v14, %s4595_s24 }
 0x70e   : > { %v1961_v28 = vpop.permute.xlu1 %1960 }
 0x70f   : > { %v2002_v30 = vsel %vm1915_vm6, %v2000_v27, %v1961_v28 }
 0x710   : > { %v2004_v31 = vsel %vm1918_vm3, %v2002_v30, %v1963_v23  ;;  %v1975_v32 = vpop.permute.xlu0 %1974  ;;  %2277 = vrot.lane.b32.xlu0 %v5068_v9, %s5917_s22  ;;  %2243 = vrot.lane.b32.xlu1 %v5042_v56, %s4595_s24  ;;  %v2052_v56 = vrot.slane %v4550_v6, 4 }
 0x711   : > { %v2006_v33 = vsel %vm1020_vm4, %v2004_v31, %v1967_v25  ;;  %vm2263_vm4 = vcmask 482304  }
 0x712   : > { %v2030_v35 = vrot.slane %v2006_v33, 4  ;;  %v1979_v39 = vpop.permute.xlu1 %1978 }
 0x713   : > { %v2016_v47 = vsel %vm1935_vm0, %v1979_v39, %v1981_v42  ;;  %vm2150_vm0 = vcmask 769024  }
 0x714   : > { %v1973_v38 = vpop.permute.xlu0 %1972  ;;  %2275 = vrot.lane.b32.xlu1 %v5056_v1, %s5917_s22  ;;  %2036 = vrot.lane.b32.xlu0 %v2030_v35, %s5927_s2 }
 0x715   : > { %v2010_v40 = vsel %vm1926_vm1, %v2008_v37, %v1973_v38  ;;  %vm5928_vm1 = vcmask 1043456  }
 0x716   : > { %v2012_v41 = vsel %vm1929_vm11, %v2010_v40, %v1975_v32  ;;  %vm5929_vm3 = vmmov %vm5928_vm1 }
 0x717   : > { %v2014_v44 = vsel %vm1932_vm9, %v2012_v41, %v1979_v39  ;;  %vm5930_vm6 = vmmov %vm5928_vm1  ;;  %vm2177_vm9 = vcmask 760832  }
 0x718   : > { %2086 = vrot.lane.b32.xlu1 %v2074_v43, %s5914_s30  ;;  %2218 = vrot.lane.b32.xlu0 %v5110_v36, %s5894_s27  ;;  %v2031_v46 = vrot.slane %v2014_v44, 4  ;;  %v1987_v49 = vpop.permute.xlu0 %1986  ;;  %vm5932_vm11 = vmmov %vm5928_vm1 }
 0x719   : > { %v1991_v45 = vpop.permute.xlu1 %1990  ;;  %vm5933_vm7 = vmmov %vm5928_vm1 }
 0x71a   : > { %v2033_v54 = vrot.slane %v1991_v45, 4  ;;  %vm5934_vm13 = vmmov %vm5928_vm1 }
 0x71c   : > { %2249 = vrot.lane.b32.xlu0 %v2074_v43, %s4595_s24  ;;  %2038 = vrot.lane.b32.xlu1 %v2031_v46, %s5927_s2  ;;  %v5141_v57 = vpop.permute.xlu0 %2053 }
 0x71d   : > { %v1985_v48 = vpop.permute.xlu1 %1984 }
 0x71e   : > { %v2018_v50 = vsel %vm1938_vm2, %v2016_v47, %v1985_v48 }
 0x71f   : > { %v2020_v51 = vsel %vm1047_vm15, %v2018_v50, %v1987_v49  ;;  %v5216_v49 = vld [vmem:[%s5831_s9] sm:$0x3] }
 0x720   : > { %v2022_v52 = vsel %vm954_vm14, %v2020_v51, %v1991_v45  ;;  %2279 = vrot.lane.b32.xlu0 %v5110_v36, %s5917_s22  ;;  %2112 = vrot.lane.b32.xlu1 %v5110_v36, %s5913_s23 }
 0x721   : > { %v2032_v53 = vrot.slane %v2022_v52, 4 }
 0x724   : > { %2138 = vrot.lane.b32.xlu1 %v2074_v43, %s5926_s1  ;;  %2040 = vrot.lane.b32.xlu0 %v2032_v53, %s5927_s2 }
 0x728   : > { %2165 = vrot.lane.b32.xlu1 %v5110_v36, %s4593_s20 }
 0x72c   : > { %2192 = vrot.lane.b32.xlu1 %v2074_v43, %s5916_s15 }
 0x730   : > { %2042 = vrot.lane.b32.xlu1 %v2033_v54, %s5927_s2  ;;  %s5892_s2 = smov 104  }
 0x734   : > { %2055 = vrot.lane.b32.xlu1 %v2052_v56, %s4592_s0  ;;  %s5893_s0 = smov 86  }
 0x752   : > { %v2107_v58 = vpop.permute.xlu0 %2106 }
 0x754   : > { %v2081_v59 = vpop.permute.xlu1 %2080 }
 0x756   : > { %v2160_v61 = vpop.permute.xlu0 %2159 }
 0x758   : > { %v2133_v60 = vpop.permute.xlu1 %2132 }
 0x75c   : > { %v2187_v62 = vpop.permute.xlu1 %2186 }
 0x75e   : > { %v2109_v63 = vpop.permute.xlu0 %2108 }
 0x75f   : > { %v2124_v26 = vsel %vm954_vm14, %v2107_v58, %v2109_v63 }
 0x760   : > { %v2083_v0 = vpop.permute.xlu1 %2082 }
 0x761   : > { %v2098_v13 = vsel %vm1002_vm5, %v2081_v59, %v2083_v0 }
 0x762   : > { %v2162_v2 = vpop.permute.xlu0 %2161  ;;  %v2304_v21 = vsel %vm5929_vm3, %v5037_v55, %v2098_v13  ;;  %vm5935_vm3 = vmmov %vm5928_vm1 }
 0x763   : > { %v2178_v31 = vsel %vm2177_vm9, %v2160_v61, %v2162_v2 }
 0x764   : > { %v5143_v3 = vpop.permute.xlu1 %2110 }
 0x765   : > { %v2125_v19 = vsel %vm954_vm14, %v2109_v63, %v5143_v3 }
 0x766   : > { %v2215_v4 = vpop.permute.xlu0 %2214 }
 0x768   : > { %v5145_v5 = vpop.permute.xlu1 %2163 }
 0x769   : > { %v2179_v55 = vsel %vm2177_vm9, %v2162_v2, %v5145_v5 }
 0x76a   : > { %v2135_v7 = vpop.permute.xlu0 %2134 }
 0x76b   : > { %v2151_v22 = vsel %vm2150_vm0, %v2133_v60, %v2135_v7 }
 0x76c   : > { %v5147_v8 = vpop.permute.xlu1 %2216  ;;  %v2335_v27 = vsel %vm5932_vm11, %v2124_v26, %v2151_v22  ;;  %vm5938_vm11 = vcmask 588800  }
 0x76d   : > { %v2234_v33 = vsel %vm2232_vm12, %v2215_v4, %v5147_v8 }
 0x76e   : > { %v2189_v10 = vpop.permute.xlu0 %2188 }
 0x770   : > { %v5149_v11 = vpop.permute.xlu1 %2136 }
 0x771   : > { %v2152_v16 = vsel %vm2150_vm0, %v2135_v7, %v5149_v11 }
 0x772   : > { %v2246_v12 = vpop.permute.xlu0 %2245  ;;  %v2339_v25 = vsel %vm5930_vm6, %v2125_v19, %v2152_v16  ;;  %vm5936_vm6 = vmmov %vm5928_vm1 }
 0x774   : > { %v5152_v14 = vpop.permute.xlu1 %2190 }
 0x775   : > { %v2205_v42 = vsel %vm1047_vm15, %v2189_v10, %v5152_v14 }
 0x776   : > { %v5154_v15 = vpop.permute.xlu0 %2084  ;;  %v2375_v29 = vsel %vm5933_vm7, %v2179_v55, %v2205_v42  ;;  %vm5939_vm7 = vcmask 261120  }
 0x777   : > { %v2099_v17 = vsel %vm1002_vm5, %v2083_v0, %v5154_v15 }
 0x778   : > { %v2307_v18 = vsel %vm5928_vm1, %v5056_v1, %v2099_v17 }
 0x779   : > { %2478 = vmatprep.subr.bf16.mxu1 %v2307_v18 }
 0x77a   : > { %v2213_v23 = vpop.permute.xlu0 %2212  ;;  %2479 = vmatpush1.bf16.msra.mxu1 %v2304_v21  ;;  %v2035_v24 = vpop.permute.xlu1 %2034  ;;  %v2442_v21 = vld [vmem:[%s5832_s10] sm:$0xf] }
 0x77b   : > { %v5172_v1 = vsel %vm5931_vm8, %v5087_v20, %v2035_v24  ;;  %2480 = vmatprep.subr.bf16.mxu1 %v2339_v25  ;;  %v2204_v20 = vsel %vm1047_vm15, %v2187_v62, %v2189_v10  ;;  %v2233_v39 = vsel %vm2232_vm12, %v2213_v23, %v2215_v4  ;;  %vm5937_vm8 = vmmov %vm5928_vm1 }
 0x77c   : > { %2220 = vrot.lane.b32.xlu1 %v5172_v1, %s5894_s27  ;;  %2114 = vrot.lane.b32.xlu0 %v5172_v1, %s5913_s23  ;;  %v2371_v34 = vsel %vm5934_vm13, %v2178_v31, %v2204_v20  ;;  %v2075_v38 = vrot.slane %v5172_v1, 4  ;;  %vm5940_vm13 = vmmov %vm5939_vm7 }
 0x77e   : > { %2481 = vmatpush1.bf16.msra.mxu1 %v2335_v27  ;;  %v5183_v28 = vpop.permute.xlu1 %2247  ;;  %v2274_v32 = vpop.permute.xlu0 %2273 }
 0x77f   : > { %v2265_v30 = vsel %vm2263_vm4, %v2246_v12, %v5183_v28  ;;  %2482 = vmatprep.subr.bf16.mxu1 %v2375_v29 }
 0x780   : > { %2281 = vrot.lane.b32.xlu1 %v5172_v1, %s5917_s22  ;;  %2167 = vrot.lane.b32.xlu0 %v5172_v1, %s4593_s20  ;;  %v2411_v37 = vsel %vm5928_vm1, %v2234_v33, %v2265_v30  ;;  %vm2057_vm1 = vcmask 523264  }
 0x782   : > { %2483 = vmatpush1.bf16.msra.mxu1 %v2371_v34  ;;  %v2244_v35 = vpop.permute.xlu1 %2243  ;;  %v5203_v43 = vpop.permute.xlu0 %2277 }
 0x783   : > { %v2264_v40 = vsel %vm2263_vm4, %v2244_v35, %v2246_v12  ;;  %2484 = vmatprep.subr.bf16.mxu1 %v2411_v37 }
 0x784   : > { %2251 = vrot.lane.b32.xlu1 %v2075_v38, %s4595_s24  ;;  %2088 = vrot.lane.b32.xlu0 %v2075_v38, %s5914_s30  ;;  %v2407_v41 = vsel %vm5935_vm3, %v2233_v39, %v2264_v40  ;;  %vm5941_vm3 = vmmov %vm5939_vm7 }
 0x786   : > { %2485 = vmatpush1.bf16.msra.mxu1 %v2407_v41  ;;  %v2276_v44 = vpop.permute.xlu1 %2275  ;;  %v2037_v50 = vpop.permute.xlu0 %2036 }
 0x787   : > { %v2294_v45 = vsel %vm1938_vm2, %v2274_v32, %v2276_v44  ;;  %v2295_v46 = vsel %vm1938_vm2, %v2276_v44, %v5203_v43  ;;  %v5223_v52 = vsel %vm5939_vm7, %v2035_v24, %v2037_v50  ;;  %vm5944_vm7 = vmmov %vm5937_vm8 }
 0x788   : > { %2140 = vrot.lane.b32.xlu0 %v2075_v38, %s5926_s1  ;;  %3800 = vmatprep.subr.msk.bf16.mxu1 %vm5936_vm6, %v2295_v46  ;;  %v2452_v47 = vsel %vm5937_vm8, %v2294_v45, 0  ;;  %v2076_v60 = vrot.slane %v5223_v52, 4  ;;  %vm5942_vm6 = vmmov %vm5941_vm3 }
 0x78a   : > { %2487 = vmatpush1.bf16.msra.mxu1 %v2452_v47  ;;  %v5211_v48 = vpop.permute.xlu1 %2086  ;;  %v5244_v58 = vpop.permute.xlu0 %2218 }
 0x78b   : > { %v2100_v24 = vsel %vm1002_vm5, %v5154_v15, %v5211_v48 }
 0x78c   : > { %2194 = vrot.lane.b32.xlu0 %v2075_v38, %s5916_s15 }
 0x78d   : > { %3801 = vmatmul.mubr.msk.bf16.vlgmr.msra.gmra.mrb[48].mxu1 %vm5938_vm11, %v5216_v49  ;;  %vm5943_vm11 = vmmov %vm5937_vm8 }
 0x78e   : > { %v2039_v51 = vpop.permute.xlu1 %2038  ;;  %2551 = vmatprep.mubr.bf16.mxu1 %v4550_v6  ;;  %v5254_v62 = vpop.permute.xlu0 %2249  ;;  %v2310_v27 = vsel %vm5943_vm11, %v5068_v9, %v2100_v24 }
 0x78f   : > { %v5226_v53 = vsel %vm5940_vm13, %v2037_v50, %v2039_v51  ;;  %vm5945_vm13 = vmmov %vm5944_vm7  ;;  %v2266_v40 = vsel %vm2263_vm4, %v5183_v28, %v5254_v62 }
 0x790   : > { %2116 = vrot.lane.b32.xlu0 %v5223_v52, %s5913_s23  ;;  %2118 = vrot.lane.b32.xlu1 %v5226_v53, %s5913_s23  ;;  %v2077_v61 = vrot.slane %v5226_v53, 4 }
 0x792   : > { %v5232_v54 = vpop.permute.xlu1 %2112  ;;  %v5262_v0 = vpop.permute.xlu0 %2279 }
 0x793   : > { %v2296_v47 = vsel %vm1938_vm2, %v5203_v43, %v5262_v0 }
 0x794   : > { %2169 = vrot.lane.b32.xlu0 %v5223_v52, %s4593_s20  ;;  %2171 = vrot.lane.b32.xlu1 %v5226_v53, %s4593_s20 }
 0x796   : > { %v5238_v56 = vpop.permute.xlu1 %2138  ;;  %v2041_v4 = vpop.permute.xlu0 %2040 }
 0x797   : > { %v5270_v10 = vsel %vm5942_vm6, %v2039_v51, %v2041_v4  ;;  %v2153_v20 = vsel %vm2150_vm0, %v5149_v11, %v5238_v56 }
 0x798   : > { %2222 = vrot.lane.b32.xlu0 %v5223_v52, %s5894_s27  ;;  %2224 = vrot.lane.b32.xlu1 %v5226_v53, %s5894_s27  ;;  %v2078_v13 = vrot.slane %v5270_v10, 4 }
 0x79a   : > { %v5250_v59 = vpop.permute.xlu1 %2165 }
 0x79b   : > { %v2180_v37 = vsel %vm2177_vm9, %v5145_v5, %v5250_v59  ;;  %v2235_v5 = vsel %vm2232_vm12, %v5147_v8, %v5244_v58 }
 0x79c   : > { %2283 = vrot.lane.b32.xlu0 %v5223_v52, %s5917_s22  ;;  %2285 = vrot.lane.b32.xlu1 %v5226_v53, %s5917_s22 }
 0x79e   : > { %v5258_v63 = vpop.permute.xlu1 %2192 }
 0x79f   : > { %v2206_v32 = vsel %vm1047_vm15, %v5152_v14, %v5258_v63 }
 0x7a0   : > { %2090 = vrot.lane.b32.xlu0 %v2076_v60, %s5914_s30  ;;  %2092 = vrot.lane.b32.xlu1 %v2077_v61, %s5914_s30 }
 0x7a2   : > { %v2043_v2 = vpop.permute.xlu1 %2042 }
 0x7a3   : > { %v2048_v7 = vsel %vm5941_vm3, %v2041_v4, %v2043_v2 }
 0x7a4   : > { %2142 = vrot.lane.b32.xlu0 %v2076_v60, %s5926_s1  ;;  %2144 = vrot.lane.b32.xlu1 %v2077_v61, %s5926_s1  ;;  %v5274_v12 = vsel %vm2057_vm1, %v2048_v7, %v5141_v57 }
 0x7a5   : > { %v2079_v16 = vrot.slane %v5274_v12, 4 }
 0x7a6   : > { %v2056_v17 = vpop.permute.xlu1 %2055 }
 0x7a7   : > { %v2058_v18 = vsel %vm2057_vm1, %v5141_v57, %v2056_v17  ;;  %vm5946_vm1 = vmmov %vm5944_vm7 }
 0x7a8   : > { %2196 = vrot.lane.b32.xlu0 %v2076_v60, %s5916_s15  ;;  %2198 = vrot.lane.b32.xlu1 %v2077_v61, %s5916_s15  ;;  %v2242_v19 = vrot.slane %v2058_v18, 4  ;;  %vm5947_vm3 = vmmov %vm5946_vm1 }
 0x7a9   : > { %v2379_v39 = vsel %vm5947_vm3, %v2180_v37, %v2206_v32  ;;  %vm5948_vm6 = vmmov %vm5946_vm1 }
 0x7aa   : > { %vm5950_vm11 = vmmov %vm5946_vm1 }
 0x7ab   : > { %vm5953_vm3 = vmmov %vm5946_vm1 }
 0x7ac   : > { %2253 = vrot.lane.b32.xlu0 %v2076_v60, %s4595_s24  ;;  %2255 = vrot.lane.b32.xlu1 %v2077_v61, %s4595_s24 }
 0x7b0   : > { %2120 = vrot.lane.b32.xlu0 %v5270_v10, %s5913_s23  ;;  %2122 = vrot.lane.b32.xlu1 %v5274_v12, %s5913_s23  ;;  %s5981_s23 = smov 78  }
 0x7b4   : > { %2173 = vrot.lane.b32.xlu0 %v5270_v10, %s4593_s20  ;;  %2175 = vrot.lane.b32.xlu1 %v5274_v12, %s4593_s20  ;;  %s4600_s20 = smov 26  }
 0x7b8   : > { %2226 = vrot.lane.b32.xlu0 %v5270_v10, %s5894_s27  ;;  %2228 = vrot.lane.b32.xlu1 %v5274_v12, %s5894_s27 }
 0x7bc   : > { %2094 = vrot.lane.b32.xlu0 %v2078_v13, %s5914_s30  ;;  %2096 = vrot.lane.b32.xlu1 %v2079_v16, %s5914_s30  ;;  %s5982_s30 = smov 36  }
 0x7c0   : > { %2146 = vrot.lane.b32.xlu0 %v2078_v13, %s5926_s1  ;;  %2148 = vrot.lane.b32.xlu1 %v2079_v16, %s5926_s1 }
 0x7c4   : > { %2200 = vrot.lane.b32.xlu0 %v2078_v13, %s5916_s15  ;;  %2202 = vrot.lane.b32.xlu1 %v2079_v16, %s5916_s15  ;;  %s5895_s15 = smov 120  }
 0x7c8   : > { %2257 = vrot.lane.b32.xlu0 %v2078_v13, %s4595_s24  ;;  %2259 = vrot.lane.b32.xlu1 %v2079_v16, %s4595_s24 }
 0x7cc   : > { %2287 = vrot.lane.b32.xlu0 %v5270_v10, %s5917_s22  ;;  %2289 = vrot.lane.b32.xlu1 %v5274_v12, %s5917_s22 }
 0x7d0   : > { %2230 = vrot.lane.b32.xlu0 %v2058_v18, %s5894_s27  ;;  %2261 = vrot.lane.b32.xlu1 %v2242_v19, %s4595_s24  ;;  %s5979_s24 = smov 112  }
 0x7d4   : > { %2291 = vrot.lane.b32.xlu0 %v2058_v18, %s5917_s22  ;;  %2445 = vperm.xlu1 %4434, %v2442_v21   ;;  %s5978_s22 = smov 52  }
 0x7ee   : > { %v5310_v22 = vpop.permute.xlu0 %2114  ;;  %v5312_v57 = vpop.permute.xlu1 %2220 }
 0x7ef   : > { %v2127_v15 = vsel %vm954_vm14, %v5232_v54, %v5310_v22  ;;  %v2236_v14 = vsel %vm2232_vm12, %v5244_v58, %v5312_v57 }
 0x7f2   : > { %v5314_v23 = vpop.permute.xlu0 %2167  ;;  %v5319_v25 = vpop.permute.xlu1 %2281 }
 0x7f3   : > { %v2181_v34 = vsel %vm2177_vm9, %v5250_v59, %v5314_v23  ;;  %v2297_v28 = vsel %vm1938_vm2, %v5262_v0, %v5319_v25 }
 0x7f6   : > { %v2089_v42 = vpop.permute.xlu0 %2088  ;;  %v5338_v31 = vpop.permute.xlu1 %2251 }
 0x7f7   : > { %v2101_v26 = vsel %vm1002_vm5, %v5211_v48, %v2089_v42 }
 0x7f8   : > { %v2313_v55 = vsel %vm5937_vm8, %v5110_v36, %v2101_v26  ;;  %v2126_v36 = vsel %vm954_vm14, %v5143_v3, %v5232_v54  ;;  %v2267_v3 = vsel %vm2263_vm4, %v5254_v62, %v5338_v31  ;;  %vm5949_vm8 = vmmov %vm5946_vm1 }
 0x7f9   : > { %2519 = vmatprep.subr.bf16.mxu1 %v2313_v55  ;;  %v2343_v11 = vsel %vm5945_vm13, %v2126_v36, %v2153_v20  ;;  %v2419_v45 = vsel %vm5948_vm6, %v2236_v14, %v2267_v3  ;;  %v2415_v46 = vsel %vm5949_vm8, %v2235_v5, %v2266_v40  ;;  %vm5952_vm13 = vcmask 588800   ;;  %vm5954_vm6 = vmmov %vm5946_vm1 }
 0x7fa   : > { %v2141_v29 = vpop.permute.xlu0 %2140  ;;  %2520 = vmatpush1.bf16.msra.mxu1 %v2310_v27  ;;  %vm5955_vm8 = vmmov %vm5946_vm1 }
 0x7fb   : > { %v2154_v30 = vsel %vm2150_vm0, %v5238_v56, %v2141_v29 }
 0x7fc   : > { %v2347_v9 = vsel %vm5944_vm7, %v2127_v15, %v2154_v30  ;;  %vm5951_vm7 = vmmov %vm5946_vm1 }
 0x7fd   : > { %2521 = vmatprep.subr.bf16.mxu1 %v2347_v9  ;;  %v2458_v51 = vsel %vm5951_vm7, %v2296_v47, 0  ;;  %vm5957_vm7 = vmmov %vm5946_vm1 }
 0x7fe   : > { %v2195_v33 = vpop.permute.xlu0 %2194  ;;  %2522 = vmatpush1.bf16.msra.mxu1 %v2343_v11 }
 0x7ff   : > { %v2207_v35 = vsel %vm1047_vm15, %v5258_v63, %v2195_v33 }
 0x800   : > { %v2383_v38 = vsel %vm5946_vm1, %v2181_v34, %v2207_v35 }
 0x801   : > { %2523 = vmatprep.subr.bf16.mxu1 %v2383_v38 }
 0x802   : > { %v2117_v41 = vpop.permute.xlu0 %2116  ;;  %2524 = vmatpush1.bf16.msra.mxu1 %v2379_v39  ;;  %v5364_v44 = vpop.permute.xlu1 %2118 }
 0x803   : > { %2525 = vmatprep.subr.bf16.mxu1 %v2419_v45  ;;  %v2128_v4 = vsel %vm954_vm14, %v5310_v22, %v2117_v41  ;;  %v2129_v7 = vsel %vm954_vm14, %v2117_v41, %v5364_v44 }
 0x806   : > { %v2170_v48 = vpop.permute.xlu0 %2169  ;;  %2526 = vmatpush1.bf16.msra.mxu1 %v2415_v46  ;;  %v5377_v50 = vpop.permute.xlu1 %2171 }
 0x807   : > { %3802 = vmatprep.subr.msk.bf16.mxu1 %vm5950_vm11, %v2297_v28  ;;  %v2182_v19 = vsel %vm2177_vm9, %v5314_v23, %v2170_v48  ;;  %v2183_v21 = vsel %vm2177_vm9, %v2170_v48, %v5377_v50  ;;  %vm5956_vm11 = vmmov %vm5946_vm1 }
 0x80a   : > { %v2223_v54 = vpop.permute.xlu0 %2222  ;;  %2528 = vmatpush1.bf16.msra.mxu1 %v2458_v51  ;;  %v5381_v8 = vpop.permute.xlu1 %2224 }
 0x80b   : > { %v2237_v20 = vsel %vm2232_vm12, %v5312_v57, %v2223_v54  ;;  %v2238_v23 = vsel %vm2232_vm12, %v2223_v54, %v5381_v8 }
 0x80d   : > { %3803 = vmatmul.mubr.msk.bf16.vlgmr.msra.gmra.mrb[52].mxu1 %vm5952_vm13, %v5216_v49  ;;  %vm5958_vm13 = vmmov %vm5946_vm1 }
 0x80e   : > { %v2284_v43 = vpop.permute.xlu0 %2283  ;;  %v5385_v56 = vpop.permute.xlu1 %2285  ;;  %2592 = vmatprep.mubr.bf16.mxu1 %v4550_v6 }
 0x80f   : > { %v2298_v9 = vsel %vm1938_vm2, %v5319_v25, %v2284_v43  ;;  %v2299_v11 = vsel %vm1938_vm2, %v2284_v43, %v5385_v56 }
 0x812   : > { %v2091_v58 = vpop.permute.xlu0 %2090  ;;  %v2093_v59 = vpop.permute.xlu1 %2092 }
 0x813   : > { %v2102_v60 = vsel %vm1002_vm5, %v2089_v42, %v2091_v58  ;;  %v2103_v61 = vsel %vm1002_vm5, %v2091_v58, %v2093_v59 }
 0x814   : > { %v2320_v62 = vsel %vm5946_vm1, %v5223_v52, %v2103_v61  ;;  %v2316_v63 = vsel %vm5953_vm3, %v5172_v1, %v2102_v60  ;;  %vm5959_vm3 = vmmov %vm5946_vm1 }
 0x815   : > { %2560 = vmatprep.subr.bf16.mxu1 %v2320_v62 }
 0x816   : > { %v2143_v0 = vpop.permute.xlu0 %2142  ;;  %2561 = vmatpush1.bf16.msra.mxu1 %v2316_v63  ;;  %v2145_v2 = vpop.permute.xlu1 %2144 }
 0x817   : > { %v2155_v13 = vsel %vm2150_vm0, %v2141_v29, %v2143_v0  ;;  %v2156_v16 = vsel %vm2150_vm0, %v2143_v0, %v2145_v2 }
 0x818   : > { %v2355_v17 = vsel %vm5954_vm6, %v2129_v7, %v2156_v16  ;;  %v2351_v52 = vsel %vm5955_vm8, %v2128_v4, %v2155_v13  ;;  %vm5960_vm6 = vmmov %vm5946_vm1  ;;  %vm5961_vm8 = vcmask 588800  }
 0x819   : > { %2562 = vmatprep.subr.bf16.mxu1 %v2355_v17 }
 0x81a   : > { %v2197_v1 = vpop.permute.xlu0 %2196  ;;  %2563 = vmatpush1.bf16.msra.mxu1 %v2351_v52  ;;  %v2199_v18 = vpop.permute.xlu1 %2198  ;;  %v4596_v52 = vmov 0.0  }
 0x81b   : > { %v2208_v22 = vsel %vm1047_vm15, %v2195_v33, %v2197_v1  ;;  %v2209_v24 = vsel %vm1047_vm15, %v2197_v1, %v2199_v18 }
 0x81c   : > { %v2391_v42 = vsel %vm5956_vm11, %v2183_v21, %v2209_v24  ;;  %v2387_v26 = vsel %vm5957_vm7, %v2182_v19, %v2208_v22  ;;  %vm5962_vm11 = vmmov %vm5946_vm1 }
 0x81d   : > { %2564 = vmatprep.subr.bf16.mxu1 %v2391_v42  ;;  %vm5963_vm7 = vmmov %vm5946_vm1 }
 0x81e   : > { %v2254_v55 = vpop.permute.xlu0 %2253  ;;  %2565 = vmatpush1.bf16.msra.mxu1 %v2387_v26  ;;  %v2256_v27 = vpop.permute.xlu1 %2255 }
 0x81f   : > { %v2268_v29 = vsel %vm2263_vm4, %v5338_v31, %v2254_v55  ;;  %v2269_v15 = vsel %vm2263_vm4, %v2254_v55, %v2256_v27  ;;  %v2464_v31 = vsel %vm5960_vm6, %v2298_v9, 0 }
 0x820   : > { %v2427_v30 = vsel %vm5958_vm13, %v2238_v23, %v2269_v15  ;;  %v2423_v36 = vsel %vm5946_vm1, %v2237_v20, %v2268_v29  ;;  %vm5965_vm13 = vmmov %vm5946_vm1 }
 0x821   : > { %2566 = vmatprep.subr.bf16.mxu1 %v2427_v30 }
 0x822   : > { %v2121_v57 = vpop.permute.xlu0 %2120  ;;  %2567 = vmatpush1.bf16.msra.mxu1 %v2423_v36  ;;  %v5423_v32 = vpop.permute.xlu1 %2122 }
 0x823   : > { %3804 = vmatprep.subr.msk.bf16.mxu1 %vm5959_vm3, %v2299_v11  ;;  %v2130_v5 = vsel %vm954_vm14, %v5364_v44, %v2121_v57 }
 0x826   : > { %v2174_v33 = vpop.permute.xlu0 %2173  ;;  %2569 = vmatpush1.bf16.msra.mxu1 %v2464_v31  ;;  %v5427_v34 = vpop.permute.xlu1 %2175 }
 0x827   : > { %v2184_v51 = vsel %vm2177_vm9, %v5377_v50, %v2174_v33  ;;  %v2185_v44 = vsel %vm2177_vm9, %v2174_v33, %v5427_v34 }
 0x829   : > { %3805 = vmatmul.mubr.msk.bf16.vlgmr.msra.gmra.mrb[56].mxu1 %vm5961_vm8, %v5216_v49 }
 0x82a   : > { %v2227_v3 = vpop.permute.xlu0 %2226  ;;  %v2229_v25 = vpop.permute.xlu1 %2228  ;;  %2633 = vmatprep.mubr.bf16.mxu1 %v4550_v6  ;;  %v2131_v6 = vsel %vm954_vm14, %v2121_v57, %v5423_v32  ;;  %vm5966_vm14 = vmmov %vm5946_vm1 }
 0x82b   : > { %v2239_v62 = vsel %vm2232_vm12, %v5381_v8, %v2227_v3  ;;  %v2240_v50 = vsel %vm2232_vm12, %v2227_v3, %v2229_v25 }
 0x82e   : > { %v2095_v35 = vpop.permute.xlu0 %2094  ;;  %v2097_v37 = vpop.permute.xlu1 %2096 }
 0x82f   : > { %v2104_v38 = vsel %vm1002_vm5, %v2093_v59, %v2095_v35  ;;  %v2105_v14 = vsel %vm1002_vm5, %v2095_v35, %v2097_v37  ;;  %vm5964_vm5 = vmmov %vm5946_vm1 }
 0x830   : > { %v2328_v39 = vsel %vm5962_vm11, %v5270_v10, %v2105_v14  ;;  %v2324_v40 = vsel %vm5963_vm7, %v5226_v53, %v2104_v38  ;;  %vm4597_vm11 = vmmov 0  }
 0x831   : > { %2601 = vmatprep.subr.bf16.mxu1 %v2328_v39 }
 0x832   : > { %v2147_v41 = vpop.permute.xlu0 %2146  ;;  %2602 = vmatpush1.bf16.msra.mxu1 %v2324_v40  ;;  %v2149_v45 = vpop.permute.xlu1 %2148 }
 0x833   : > { %v2157_v46 = vsel %vm2150_vm0, %v2145_v2, %v2147_v41  ;;  %v2158_v47 = vsel %vm2150_vm0, %v2147_v41, %v2149_v45  ;;  %vm5967_vm0 = vmmov %vm5946_vm1 }
 0x834   : > { %v2363_v28 = vsel %vm5964_vm5, %v2131_v6, %v2158_v47  ;;  %v2359_v10 = vsel %vm5965_vm13, %v2130_v5, %v2157_v46  ;;  %vm5968_vm9 = vmmov %vm5967_vm0 }
 0x835   : > { %2603 = vmatprep.subr.bf16.mxu1 %v2363_v28  ;;  %vm5970_vm1 = vmmov %vm5967_vm0 }
 0x836   : > { %v2201_v53 = vpop.permute.xlu0 %2200  ;;  %2604 = vmatpush1.bf16.msra.mxu1 %v2359_v10  ;;  %v2203_v48 = vpop.permute.xlu1 %2202  ;;  %vm5971_vm3 = vmmov %vm5967_vm0 }
 0x837   : > { %v2210_v54 = vsel %vm1047_vm15, %v2199_v18, %v2201_v53  ;;  %v2211_v43 = vsel %vm1047_vm15, %v2201_v53, %v2203_v48  ;;  %vm5969_vm15 = vmmov %vm5967_vm0 }
 0x838   : > { %v2399_v58 = vsel %vm5966_vm14, %v2185_v44, %v2211_v43  ;;  %v2395_v59 = vsel %vm5967_vm0, %v2184_v51, %v2210_v54  ;;  %vm5972_vm6 = vmmov %vm5967_vm0 }
 0x839   : > { %2605 = vmatprep.subr.bf16.mxu1 %v2399_v58  ;;  %v2331_v1 = vsel %vm5972_vm6, %v5274_v12, %v2097_v37  ;;  %vm5973_vm7 = vmmov %vm5967_vm0 }
 0x83a   : > { %v2258_v60 = vpop.permute.xlu0 %2257  ;;  %2606 = vmatpush1.bf16.msra.mxu1 %v2395_v59  ;;  %v2260_v61 = vpop.permute.xlu1 %2259  ;;  %vm5974_vm5 = vmmov %vm5967_vm0 }
 0x83b   : > { %v2270_v63 = vsel %vm2263_vm4, %v2256_v27, %v2258_v60  ;;  %v2271_v0 = vsel %vm2263_vm4, %v2258_v60, %v2260_v61  ;;  %v2403_v21 = vsel %vm5974_vm5, %v5427_v34, %v2203_v48  ;;  %vm5975_vm13 = vmmov %vm5967_vm0 }
 0x83c   : > { %v2435_v2 = vsel %vm5968_vm9, %v2240_v50, %v2271_v0  ;;  %v2431_v4 = vsel %vm5969_vm15, %v2239_v62, %v2270_v63  ;;  %vm5976_vm14 = vmmov %vm5967_vm0  ;;  %vm5993_vm9 = vcmask 1041408  }
 0x83d   : > { %2607 = vmatprep.subr.bf16.mxu1 %v2435_v2  ;;  %vm5977_vm0 = vmmov %vm5961_vm8 }
 0x83e   : > { %v2288_v7 = vpop.permute.xlu0 %2287  ;;  %2608 = vmatpush1.bf16.msra.mxu1 %v2431_v4  ;;  %v2290_v13 = vpop.permute.xlu1 %2289  ;;  %vm5994_vm15 = vmmov %vm5970_vm1 }
 0x83f   : > { %v2300_v16 = vsel %vm1938_vm2, %v5385_v56, %v2288_v7  ;;  %v2301_v17 = vsel %vm1938_vm2, %v2288_v7, %v2290_v13  ;;  %v2367_v56 = vsel %vm5973_vm7, %v5423_v32, %v2149_v45  ;;  %vm5997_vm6 = vmmov %vm5993_vm9 }
 0x840   : > { %v2470_v8 = vsel %vm5970_vm1, %v2300_v16, 0  ;;  %3806 = vmatprep.subr.msk.bf16.mxu1 %vm5971_vm3, %v2301_v17  ;;  %vm5995_vm1 = vcmask 1045504   ;;  %vm5996_vm3 = vcmask 424960   ;;  %vm6000_vm7 = vmmov %vm5997_vm6 }
 0x842   : > { %2610 = vmatpush1.bf16.msra.mxu1 %v2470_v8  ;;  %v2231_v18 = vpop.permute.xlu0 %2230  ;;  %v2262_v19 = vpop.permute.xlu1 %2261 }
 0x843   : > { %4161 = vmatprep.subr.bf16.mxu1 %v4596_v52  ;;  %v2241_v22 = vsel %vm2232_vm12, %v2229_v25, %v2231_v18  ;;  %v2272_v12 = vsel %vm2263_vm4, %v2260_v61, %v2262_v19 }
 0x844   : > { %v2439_v42 = vsel %vm5975_vm13, %v2241_v22, %v2272_v12  ;;  %vm6001_vm13 = vmmov %vm5995_vm1 }
 0x845   : > { %3807 = vmatmul.mubr.msk.bf16.vlgmr.msra.gmra.mrb[60].mxu1 %vm5961_vm8, %v5216_v49  ;;  %vm5999_vm8 = vmmov %vm5995_vm1 }
 0x846   : > { %4162 = vmatpush3.bf16.msra.mxu1 %v2331_v1  ;;  %4171 = vmatprep.mubr.msk.bf16.mxu1 %vm4597_vm11, %v4596_v52  ;;  %v2292_v24 = vpop.permute.xlu0 %2291  ;;  %vm2832_vm11 = vcmask 359424  }
 0x847   : > { %4163 = vmatprep.subr.bf16.mxu1 %v4596_v52  ;;  %v2302_v26 = vsel %vm1938_vm2, %v2290_v13, %v2292_v24  ;;  %vm5986_vm2 = vcmask 1040384  }
 0x848   : > { %v2476_v55 = vsel %vm5976_vm14, %v2302_v26, 0  ;;  %vm5987_vm4 = vmmov %vm5986_vm2  ;;  %vm6002_vm14 = vcmask 293888  }
 0x84a   : > { %4164 = vmatpush3.bf16.msra.mxu1 %v2367_v56 }
 0x84b   : > { %4165 = vmatprep.subr.bf16.mxu1 %v4596_v52 }
 0x84e   : > { %4166 = vmatpush3.bf16.msra.mxu1 %v2403_v21  ;;  %v4446_v21 = vld [vmem:[%s5833_s11 + $0x8] sm:$0xff]  }
 0x84f   : > { %4167 = vmatprep.subr.bf16.mxu1 %v4596_v52 }
 0x852   : > { %4168 = vmatpush3.bf16.msra.mxu1 %v2439_v42  ;;  %v4447_v42 = vld [vmem:[%s5833_s11 + $0x10] ss:$0 sps:$4 sm:$0x11]  }
 0x853   : > { %4169 = vmatprep.subr.bf16.mxu1 %v4596_v52  ;;  %v5487_v11 = vpop.permute.xlu1 %2445  ;;  %v4445_v52 = vld [vmem:[%s5833_s11] sm:$0xff]  }
 0x856   : > { %4170 = vmatpush3.bf16.msra.mxu1 %v2476_v55  ;;  %v2934_v55 = vsel %vm5987_vm4, %v4447_v42, 0  ;;  %vm6005_vm4 = vmmov %vm5995_vm1 }
 0x857   : > { %4175 = vmatprep.subr.bf16.mxu1 %v4445_v52 }
 0x859   : > { %4172 = vmatmul.mubr.msk.bf16.vlgmr.msra.gmra.mrb[64].mxu1 %vm5977_vm0, %v5216_v49  ;;  %vm6003_vm0 = vmmov %vm5997_vm6 }
 0x85a   : > { %4176 = vmatpush3.bf16.msra.mxu1 %v4445_v52 }
 0x85b   : > { %4177 = vmatprep.subr.bf16.mxu1 %v4446_v21 }
 0x85e   : > { %4178 = vmatpush3.bf16.msra.mxu1 %v4446_v21 }
 0x85f   : > { %4331 = vmatprep.subr.msk.bf16.mxu1 %vm5986_vm2, %v4447_v42  ;;  %vm6004_vm2 = vmmov %vm5974_vm5 }
 0x860   : > { %v2512_v27 = vpop.f32.mrb[48].mxu1 }
 0x861   : > { %v5481_v20 = vpop.f32.mrb[49].mxu1  ;;  %v2513_v43 = vadd.f32 %v2512_v27, %v5487_v11 }
 0x862   : > { %v2516_v23 = vpop.f32.mrb[50].mxu1  ;;  %v2515_v16 = vadd.f32 %v5481_v20, %v5487_v11  ;;  %4180 = vmatpush3.bf16.msra.mxu1 %v2934_v55 }
 0x863   : > { %v2517_v29 = vpop.f32.mrb[51].mxu1  ;;  %v2682_v59 = vmax.f32 %v2513_v43, 0.0 }
 0x864   : > { %v2683_v56 = vmax.f32 %v2515_v16, 0.0 }
 0x865   : > { %v5512_v62 = vpack.c.bf16 %v2682_v59, %v2682_v59 }
 0x866   : > { %v2692_v12 = vpack.c.bf16 %v2683_v56, %v2683_v56 }
 0x867   : > { %v2701_v8 = vrot.slane %v5512_v62, 6  ;;  %v2708_v19 = vrot.slane %v5512_v62, 2  ;;  %v2704_v26 = vrot.slane %v5512_v62, 4 }
 0x868   : > { %v2721_v20 = vrot.slane %v2692_v12, 4  ;;  %v2709_v23 = vrot.slane %v2692_v12, 2 }
 0x8e0   : > { %v5483_v15 = vpop.f32.mrb[52].mxu1 }
 0x8e1   : > { %v5485_v30 = vpop.f32.mrb[53].mxu1  ;;  %v2554_v18 = vadd.f32 %v5483_v15, %v5487_v11  ;;  %v2718_v15 = vrot.slane %v2692_v12, 6 }
 0x8e2   : > { %v2557_v36 = vpop.f32.mrb[54].mxu1 }
 0x8e3   : > { %v2558_v9 = vpop.f32.mrb[55].mxu1  ;;  %v2684_v24 = vmax.f32 %v2554_v18, 0.0  ;;  %v2556_v36 = vadd.f32 %v5485_v30, %v5487_v11 }
 0x8e5   : > { %v2693_v27 = vpack.c.bf16 %v2684_v24, %v2684_v24 }
 0x8e7   : > { %v2725_v29 = vrot.slane %v2693_v27, 2  ;;  %v2734_v9 = vrot.slane %v2693_v27, 6 }
 0x8fc   : > { %v2594_v57 = vpop.f32.mrb[56].mxu1 }
 0x8fd   : > { %v2595_v32 = vadd.f32 %v2594_v57, %v5487_v11  ;;  %v2596_v31 = vpop.f32.mrb[57].mxu1  ;;  %v2685_v57 = vmax.f32 %v2556_v36, 0.0 }
 0x8fe   : > { %v2597_v33 = vadd.f32 %v2596_v31, %v5487_v11  ;;  %v2598_v49 = vpop.f32.mrb[58].mxu1  ;;  %v2737_v31 = vrot.slane %v2693_v27, 4 }
 0x8ff   : > { %v2686_v34 = vmax.f32 %v2595_v32, 0.0  ;;  %v2599_v3 = vpop.f32.mrb[59].mxu1  ;;  %v2694_v32 = vpack.c.bf16 %v2685_v57, %v2685_v57 }
 0x900   : > { %v2687_v25 = vmax.f32 %v2597_v33, 0.0 }
 0x901   : > { %v5491_v35 = vpack.c.bf16 %v2686_v34, %v2686_v34  ;;  %v2753_v33 = vrot.slane %v2694_v32, 4  ;;  %v2741_v30 = vrot.slane %v2694_v32, 2  ;;  %v2750_v49 = vrot.slane %v2694_v32, 6 }
 0x902   : > { %v2696_v37 = vpack.c.bf16 %v2687_v25, %v2687_v25 }
 0x903   : > { %v2791_v38 = vrot.slane %v5491_v35, 6  ;;  %v2795_v14 = vrot.slane %v5491_v35, 4 }
 0x904   : > { %2805 = vrot.lane.b32.xlu1 %v2696_v37, %s5895_s15  ;;  %v2796_v39 = vrot.slane %v2696_v37, 4  ;;  %v2807_v40 = vrot.slane %v2696_v37, 6  ;;  %v2802_v41 = vrot.slane %v2696_v37, 2 }
 0x905   : > { %2792 = vrot.lane.b32.xlu0 %v2791_v38, %s5926_s1 }
 0x908   : > { %2797 = vrot.lane.b32.xlu1 %v2795_v14, %s5894_s27 }
 0x909   : > { %2799 = vrot.lane.b32.xlu0 %v2796_v39, %s5894_s27 }
 0x90c   : > { %2812 = vrot.lane.b32.xlu1 %v2796_v39, %s5978_s22 }
 0x90d   : > { %2808 = vrot.lane.b32.xlu0 %v2807_v40, %s5893_s0  ;;  %s5983_s0 = smov 70  }
 0x910   : > { %2803 = vrot.lane.b32.xlu1 %v2802_v41, %s4600_s20 }
 0x918   : > { %v2635_v45 = vpop.f32.mrb[60].mxu1 }
 0x919   : > { %v2636_v5 = vadd.f32 %v2635_v45, %v5487_v11  ;;  %v2637_v6 = vpop.f32.mrb[61].mxu1 }
 0x91a   : > { %v2638_v46 = vadd.f32 %v2637_v6, %v5487_v11  ;;  %v2639_v47 = vpop.f32.mrb[62].mxu1 }
 0x91b   : > { %v2688_v28 = vmax.f32 %v2636_v5, 0.0  ;;  %v2640_v10 = vpop.f32.mrb[63].mxu1 }
 0x91c   : > { %v2689_v48 = vmax.f32 %v2638_v46, 0.0 }
 0x91d   : > { %v2697_v53 = vpack.c.bf16 %v2688_v28, %v2688_v28 }
 0x91e   : > { %v2698_v44 = vpack.c.bf16 %v2689_v48, %v2689_v48 }
 0x91f   : > { %2821 = vrot.lane.b32.xlu1 %v2697_v53, %s5979_s24  ;;  %v2811_v51 = vrot.slane %v2697_v53, 4  ;;  %v2818_v54 = vrot.slane %v2697_v53, 2  ;;  %v2823_v58 = vrot.slane %v2697_v53, 6 }
 0x920   : > { %v2827_v60 = vrot.slane %v2698_v44, 4  ;;  %v2834_v0 = vrot.slane %v2698_v44, 2  ;;  %v2839_v13 = vrot.slane %v2698_v44, 6 }
 0x921   : > { %2814 = vrot.lane.b32.xlu0 %v2811_v51, %s5978_s22 }
 0x923   : > { %2837 = vrot.lane.b32.xlu1 %v2698_v44, %s5892_s2  ;;  %s5897_s2 = smov 10  }
 0x925   : > { %2819 = vrot.lane.b32.xlu0 %v2818_v54, %s5980_s16 }
 0x927   : > { %2828 = vrot.lane.b32.xlu1 %v2811_v51, %s5896_s17 }
 0x929   : > { %2824 = vrot.lane.b32.xlu0 %v2823_v58, %s5981_s23 }
 0x92b   : > { %2844 = vrot.lane.b32.xlu1 %v2827_v60, %s5982_s30 }
 0x92c   : > { %v2676_v61 = vpop.f32.mrb[64].mxu1 }
 0x92d   : > { %v2677_v50 = vadd.f32 %v2676_v61, %v5487_v11  ;;  %v4173_v63 = vpop.f32.mrb[65].mxu1  ;;  %2830 = vrot.lane.b32.xlu0 %v2827_v60, %s5896_s17  ;;  %s5990_s17 = smov 10   ;;  %v2757_v11 = vrot.slane %v5491_v35, 2 }
 0x92e   : > { %v2679_v2 = vpop.f32.mrb[66].mxu1 }
 0x92f   : > { %v2690_v4 = vmax.f32 %v2677_v50, 0.0  ;;  %v4174_v7 = vpop.f32.mrb[67].mxu1  ;;  %2835 = vrot.lane.b32.xlu1 %v2834_v0, %s5897_s2  ;;  %s5988_s2 = smov 60  }
 0x931   : > { %v2699_v17 = vpack.c.bf16 %v2690_v4, %v2690_v4  ;;  %2840 = vrot.lane.b32.xlu0 %v2839_v13, %s5983_s0 }
 0x933   : > { %v2843_v1 = vrot.slane %v2699_v17, 4  ;;  %2702 = vrot.lane.b32.xlu1 %v2701_v8, %s5926_s1  ;;  %v2850_v22 = vrot.slane %v2699_v17, 2  ;;  %s5984_s1 = smov 2  }
 0x935   : > { %2846 = vrot.lane.b32.xlu0 %v2843_v1, %s5982_s30 }
 0x937   : > { %2710 = vrot.lane.b32.xlu1 %v2708_v19, %s4600_s20 }
 0x939   : > { %2851 = vrot.lane.b32.xlu0 %v2850_v22, %s5984_s1 }
 0x93b   : > { %2716 = vrot.lane.b32.xlu1 %v2692_v12, %s5985_s3  ;;  %s5989_s3 = smov 86  }
 0x93d   : > { %2705 = vrot.lane.b32.xlu0 %v2704_v26, %s5988_s2 }
 0x93f   : > { %2722 = vrot.lane.b32.xlu1 %v2721_v20, %s5978_s22  ;;  %s5991_s22 = smov 104  }
 0x941   : > { %2712 = vrot.lane.b32.xlu0 %v2709_v23, %s4600_s20  ;;  %s5992_s20 = smov 44  }
 0x943   : > { %2728 = vrot.lane.b32.xlu1 %v2725_v29, %s5980_s16 }
 0x945   : > { %2719 = vrot.lane.b32.xlu0 %v2718_v15, %s5989_s3  ;;  %s4605_s3 = smov [#allocation2]  }
 0x947   : > { %2735 = vrot.lane.b32.xlu1 %v2734_v9, %s5981_s23  ;;  %s3905_s23 = sshll.u32 %s4698_s29, 13 }
 0x948   : > { %s5771_s15 = scalar_lea.hbm %s5835_s13, %s3905_s23 }
 0x949   : > { %2726 = vrot.lane.b32.xlu0 %v2709_v23, %s5980_s16 }
 0x94b   : > { %2742 = vrot.lane.b32.xlu1 %v2725_v29, %s5990_s17 }
 0x94d   : > { %2732 = vrot.lane.b32.xlu0 %v2693_v27, %s5979_s24  ;;  %s4604_s24 = smov 96  }
 0x94f   : > { %2748 = vrot.lane.b32.xlu1 %v2694_v32, %s5991_s22 }
 0x951   : > { %2738 = vrot.lane.b32.xlu0 %v2737_v31, %s5992_s20 }
 0x953   : > { %2754 = vrot.lane.b32.xlu1 %v2753_v33, %s5982_s30 }
 0x955   : > { %2744 = vrot.lane.b32.xlu0 %v2741_v30, %s5990_s17  ;;  %s4484_s17 = sshll.u32 %s4605_s3, 4  ;;  %s4485_s17 = int_to_ptr.vmem [resolvable:$false] %s4484_s17 }
 0x956   : > { %s4486_s22 = scalar_lea.vmem %s4485_s17, 16384 }
 0x957   : > { %2760 = vrot.lane.b32.xlu1 %v2757_v11, %s5984_s1 }
 0x959   : > { %2751 = vrot.lane.b32.xlu0 %v2750_v49, %s5983_s0 }
 0x95d   : > { %2758 = vrot.lane.b32.xlu0 %v2741_v30, %s5984_s1 }
 0x976   : > { %v2806_v34 = vpop.permute.xlu1 %2805 }
 0x977   : > { %v2793_v3 = vpop.permute.xlu0 %2792 }
 0x978   : > { %v2855_v39 = vsel %vm5993_vm9, %v5491_v35, %v2793_v3  ;;  %vm2714_vm9 = vcmask 211968  }
 0x97a   : > { %v2798_v25 = vpop.permute.xlu1 %2797 }
 0x97b   : > { %v2800_v37 = vpop.permute.xlu0 %2799 }
 0x97c   : > { %v2801_v14 = vsel %vm2232_vm12, %v2798_v25, %v2800_v37  ;;  %vm5998_vm12 = vmmov %vm5974_vm5 }
 0x97d   : > { %v2857_v41 = vsel %vm5994_vm15, %v2855_v39, %v2801_v14  ;;  %vm6006_vm15 = vmmov %vm6003_vm0 }
 0x97e   : > { %v2813_v38 = vpop.permute.xlu1 %2812 }
 0x97f   : > { %v2809_v5 = vpop.permute.xlu0 %2808 }
 0x980   : > { %v2862_v10 = vsel %vm5997_vm6, %v2806_v34, %v2809_v5  ;;  %vm6009_vm6 = vmmov %vm6003_vm0  ;;  %v4448_v5 = vld [vmem:[%s5834_s12] sm:$0xff]  }
 0x981   : > { %4213 = vmatprep.mubr.bf16.mxu0 %v4448_v5 }
 0x982   : > { %v2804_v40 = vpop.permute.xlu1 %2803 }
 0x983   : > { %v2859_v45 = vsel %vm5995_vm1, %v2857_v41, %v2804_v40  ;;  %vm6007_vm1 = vmmov %vm6004_vm2 }
 0x984   : > { %2885 = vrot.lane.b32.xlu0 %v2859_v45, %s4604_s24 }
 0x991   : > { %v2822_v6 = vpop.permute.xlu1 %2821 }
 0x993   : > { %v2815_v46 = vpop.permute.xlu0 %2814 }
 0x994   : > { %v2817_v47 = vsel %vm5996_vm3, %v2813_v38, %v2815_v46  ;;  %vm6008_vm3 = vmmov %vm6005_vm4 }
 0x995   : > { %v2838_v28 = vpop.permute.xlu1 %2837  ;;  %v2864_v53 = vsel %vm5998_vm12, %v2862_v10, %v2817_v47  ;;  %vm6010_vm12 = vmmov %vm6007_vm1 }
 0x997   : > { %v2820_v48 = vpop.permute.xlu0 %2819 }
 0x998   : > { %v2866_v35 = vsel %vm5999_vm8, %v2864_v53, %v2820_v48  ;;  %vm6011_vm8 = vcmask 146432  }
 0x999   : > { %v2829_v51 = vpop.permute.xlu1 %2828  ;;  %2887 = vrot.lane.b32.xlu1 %v2866_v35, %s4604_s24 }
 0x99b   : > { %v2825_v44 = vpop.permute.xlu0 %2824 }
 0x99c   : > { %v2869_v58 = vsel %vm6000_vm7, %v2822_v6, %v2825_v44  ;;  %vm6013_vm7 = vmmov %vm6003_vm0 }
 0x99d   : > { %v2845_v54 = vpop.permute.xlu1 %2844 }
 0x99f   : > { %v2831_v43 = vpop.permute.xlu0 %2830 }
 0x9a0   : > { %v2833_v59 = vsel %vm2832_vm11, %v2829_v51, %v2831_v43  ;;  %vm6012_vm11 = vmmov %vm6008_vm3 }
 0x9a1   : > { %v2836_v60 = vpop.permute.xlu1 %2835  ;;  %v2871_v61 = vsel %vm5974_vm5, %v2869_v58, %v2833_v59  ;;  %vm6014_vm5 = vmmov %vm6007_vm1 }
 0x9a2   : > { %v2873_v50 = vsel %vm6001_vm13, %v2871_v61, %v2836_v60  ;;  %vm6015_vm13 = vcmask 80896  }
 0x9a3   : > { %v2841_v63 = vpop.permute.xlu0 %2840  ;;  %2889 = vrot.lane.b32.xlu0 %v2873_v50, %s4604_s24 }
 0x9a4   : > { %v2876_v13 = vsel %vm6003_vm0, %v2838_v28, %v2841_v63 }
 0x9a5   : > { %v2703_v0 = vpop.permute.xlu1 %2702 }
 0x9a6   : > { %v2765_v18 = vsel %vm6006_vm15, %v5512_v62, %v2703_v0 }
 0x9a7   : > { %v2847_v2 = vpop.permute.xlu0 %2846 }
 0x9a8   : > { %v2849_v4 = vsel %vm6002_vm14, %v2845_v54, %v2847_v2  ;;  %vm6016_vm14 = vmmov %vm6008_vm3 }
 0x9a9   : > { %v2711_v7 = vpop.permute.xlu1 %2710  ;;  %v2878_v16 = vsel %vm6004_vm2, %v2876_v13, %v2849_v4  ;;  %vm6017_vm2 = vmmov %vm6007_vm1 }
 0x9ab   : > { %v2852_v17 = vpop.permute.xlu0 %2851 }
 0x9ac   : > { %v2880_v8 = vsel %vm6005_vm4, %v2878_v16, %v2852_v17  ;;  %vm6018_vm4 = vcmask 15360   ;;  %v4449_v17 = vld [vmem:[%s5834_s12 + $0x8] sm:$0xff]  }
 0x9ad   : > { %2891 = vrot.lane.b32.xlu1 %v2880_v8, %s4604_s24  ;;  %v2717_v52 = vpop.permute.xlu1 %2716  ;;  %v4450_v8 = vld [vmem:[%s5834_s12 + $0x10] sm:$0xff]   ;;  %s429_s24 = sand.u32 1, %s4534_s26  }
 0x9ae   : > { %s3733_s0 = sshll.u32 %s429_s24, 9  ;;  %s5780_s29 = scalar_lea.sflag [#allocation3], %s429_s24 }
 0x9af   : > { %v2706_v1 = vpop.permute.xlu0 %2705  ;;  %s5703_s16 = scalar_lea.vmem [#allocation2], %s3733_s0 }
 0x9b0   : > { %v2767_v21 = vsel %vm6007_vm1, %v2765_v18, %v2706_v1  ;;  %v4452_v1 = vld [vmem:[%s5834_s12 + $0x20] sm:$0xff]   ;;  %v4454_v18 = vld [vmem:[%s5834_s12 + $0x30] sm:$0xff]   ;;  %s3667_s30 = sshll.u32 %s5703_s16, 4  ;;  %s5774_s30 = int_to_ptr.vmem [resolvable:$true] %s3667_s30 }
 0x9b1   : > { %v2723_v56 = vpop.permute.xlu1 %2722  ;;  %s4480_s2 = scalar_lea.vmem %s5774_s30, 8192  ;;  %p4487_p0 = scmp.lt.s32.totalorder %s5774_s30, %s4485_s17 }
 0x9b2   : > { %p4481_p11 = scmp.ne.s32.totalorder %s5774_s30, %s4480_s2  ;;  %p4488_p1 = scmp.lt.s32.totalorder %s4486_s22, %s4480_s2 }
 0x9b3   : > { %v2713_v19 = vpop.permute.xlu0 %2712 }
 0x9b4   : > { %v2715_v22 = vsel %vm2714_vm9, %v2711_v7, %v2713_v19  ;;  %vm6019_vm9 = vmmov %vm6008_vm3  ;;  %v4455_v19 = vld [vmem:[%s5834_s12 + $0x38] sm:$0xff]   ;;  %p4482_p12 = pnand %p4481_p11, %p4715_p5  ;;  %p4489_p2 = por %p4488_p1, %p4487_p0 }
 0x9b5   : > { %v2729_v12 = vpop.permute.xlu1 %2728  ;;  %v2769_v24 = vsel %vm6008_vm3, %v2767_v21, %v2715_v22  ;;  %v4456_v21 = vld [vmem:[%s5834_s12 + $0x40] sm:$0xff]   ;;  %v4457_v22 = vld [vmem:[%s5834_s12 + $0x48] sm:$0xff]  }
 0x9b6   : > { %4181 = vmatprep.mubr.msk.bf16.mxu1 %vm960_vm10, %v2769_v24  ;;  %v4459_v24 = vld [vmem:[%s5834_s12 + $0x58] sm:$0xff]   ;;  %p4483_p13 = pneg %p4482_p12 }
 0x9b7   : > { %v2720_v42 = vpop.permute.xlu0 %2719 }
 0x9b8   : > { %v2772_v26 = vsel %vm6009_vm6, %v2717_v52, %v2720_v42  ;;  %v4451_v52 = vld [vmem:[%s5834_s12 + $0x18] sm:$0xff]   ;;  %v4460_v42 = vld [vmem:[%s5834_s12 + $0x60] sm:$0xff]   ;;  %p4490_p3 = pnand %p4489_p2, %p4483_p13 }
 0x9b9   : > { %v2736_v55 = vpop.permute.xlu1 %2735  ;;  %v2774_v20 = vsel %vm6010_vm12, %v2772_v26, %v2723_v56  ;;  %v4453_v56 = vld [vmem:[%s5834_s12 + $0x28] sm:$0xff]  }
 0x9ba   : > { %v4461_v26 = vld [vmem:[%s5834_s12 + $0x68] sm:$0xff]  }
 0x9bb   : > { %v2727_v27 = vpop.permute.xlu0 %2726 }
 0x9bc   : > { %v2731_v23 = vsel %vm6011_vm8, %v2727_v27, %v2729_v12  ;;  %v4458_v12 = vld [vmem:[%s5834_s12 + $0x50] sm:$0xff]   ;;  %v4463_v27 = vld [vmem:[%s5834_s12 + $0x78] sm:$0xff]  }
 0x9bd   : > { %v2776_v62 = vsel %vm6012_vm11, %v2774_v20, %v2731_v23  ;;  %v2743_v29 = vpop.permute.xlu1 %2742  ;;  %v4464_v20 = vld [vmem:[%s5834_s12 + $0x80] sm:$0xff]   ;;  %v4465_v23 = vld [vmem:[%s5834_s12 + $0x88] sm:$0xff]  }
 0x9be   : > { %4182 = vmatmul.mubr.msk.bf16.vlgmr.msra.gmra.mrb[68].mxu1 %vm960_vm10, %v2776_v62  ;;  %v4466_v62 = vld [vmem:[%s5834_s12 + $0x90] sm:$0xff]  }
 0x9bf   : > { %v2733_v15 = vpop.permute.xlu0 %2732 }
 0x9c0   : > { %v2779_v57 = vsel %vm6013_vm7, %v2733_v15, %v2736_v55  ;;  %v4462_v55 = vld [vmem:[%s5834_s12 + $0x70] sm:$0xff]   ;;  %v4468_v15 = vld [vmem:[%s5834_s12 + $0xa0] sm:$0xff]  }
 0x9c1   : > { %v2749_v36 = vpop.permute.xlu1 %2748 }
 0x9c3   : > { %v2739_v9 = vpop.permute.xlu0 %2738 }
 0x9c4   : > { %v2781_v31 = vsel %vm6014_vm5, %v2779_v57, %v2739_v9  ;;  %v4470_v9 = vld [vmem:[%s5834_s12 + $0xb0] sm:$0xff]   ;;  %v4471_v57 = vld [vmem:[%s5834_s12 + $0xb8] sm:$0xff]  }
 0x9c5   : > { %v2755_v30 = vpop.permute.xlu1 %2754 }
 0x9c7   : > { %v2745_v32 = vpop.permute.xlu0 %2744 }
 0x9c8   : > { %v2747_v33 = vsel %vm6015_vm13, %v2743_v29, %v2745_v32  ;;  %v4467_v29 = vld [vmem:[%s5834_s12 + $0x98] sm:$0xff]   ;;  %v4472_v32 = vld [vmem:[%s5834_s12 + $0xc0] sm:$0xff]  }
 0x9c9   : > { %v2783_v11 = vsel %vm6016_vm14, %v2781_v31, %v2747_v33  ;;  %v2761_v3 = vpop.permute.xlu1 %2760  ;;  %v4473_v31 = vld [vmem:[%s5834_s12 + $0xc8] sm:$0xff]   ;;  %v4474_v33 = vld [vmem:[%s5834_s12 + $0xd0] sm:$0xff]  }
 0x9ca   : > { %4185 = vmatprep.mubr.msk.bf16.mxu1 %vm960_vm10, %v2783_v11  ;;  %v4476_v11 = vld [vmem:[%s5834_s12 + $0xe0] sm:$0xff]  }
 0x9cb   : > { %v2752_v49 = vpop.permute.xlu0 %2751 }
 0x9cc   : > { %v2786_v34 = vsel %vm6003_vm0, %v2749_v36, %v2752_v49  ;;  %v4469_v36 = vld [vmem:[%s5834_s12 + $0xa8] sm:$0xff]  }
 0x9cd   : > { %v2788_v37 = vsel %vm6017_vm2, %v2786_v34, %v2755_v30  ;;  %v4475_v30 = vld [vmem:[%s5834_s12 + $0xd8] sm:$0xff]   ;;  %v4477_v49 = vld [vmem:[%s5834_s12 + $0xe8] sm:$0xff]   ;;  %v4478_v34 = vld [vmem:[%s5834_s12 + $0xf0] sm:$0xff]  }
 0x9cf   : > { %v2759_v25 = vpop.permute.xlu0 %2758 }
 0x9d0   : > { %v2762_v38 = vsel %vm6018_vm4, %v2759_v25, %v2761_v3  ;;  %v4479_v3 = vld [vmem:[%s5834_s12 + $0xf8] sm:$0xff]  }
 0x9d1   : > { %v2790_v14 = vsel %vm6019_vm9, %v2788_v37, %v2762_v38 }
 0x9d2   : > { %4186 = vmatmul.mubr.msk.bf16.gmra.mrb[72].mxu1 %vm960_vm10, %v2790_v14 }
 0x9f6   : > { %v2886_v39 = vpop.permute.xlu0 %2885 }
 0x9f7   : > { %4189 = vmatprep.mubr.msk.bf16.mxu1 %vm960_vm10, %v2886_v39 }
 0xa0b   : > { %v2888_v40 = vpop.permute.xlu1 %2887 }
 0xa0c   : > { %4190 = vmatmul.mubr.msk.bf16.gmra.mrb[76].mxu1 %vm960_vm10, %v2888_v40 }
 0xa15   : > { %v2890_v41 = vpop.permute.xlu0 %2889 }
 0xa16   : > { %4193 = vmatprep.mubr.msk.bf16.mxu1 %vm960_vm10, %v2890_v41 }
 0xa1f   : > { %v2892_v45 = vpop.permute.xlu1 %2891 }
 0xa20   : > { %4194 = vmatmul.mubr.msk.bf16.gmra.mrb[80].mxu1 %vm960_vm10, %v2892_v45 }
 0xa91   : > { %v4183_v6 = vpop.f32.mrb[68].mxu1 }
 0xa92   : > { %v2970_v46 = vpop.f32.mrb[69].mxu1 }
 0xa93   : > { %v4184_v47 = vpop.f32.mrb[70].mxu1 }
 0xa94   : > { %v3034_v28 = vpack.c.bf16 %v4184_v47, %v4183_v6  ;;  %v2973_v10 = vpop.f32.mrb[71].mxu1 }
 0xa95   : > { %v3033_v53 = vpack.c.bf16 %v2973_v10, %v2970_v46 }
 0xa97   : > { %4197 = vmatprep.subr.bf16.mxu0 %v3033_v53 }
 0xa98   : > { %4198 = vmatpush3.bf16.msra.mxu0 %v3033_v53 }
 0xa99   : > { %4199 = vmatprep.subr.bf16.mxu0 %v3034_v28 }
 0xa9c   : > { %4200 = vmatpush3.bf16.msra.mxu0 %v3034_v28 }
 0xaa5   : > { %v4187_v48 = vpop.f32.mrb[72].mxu1 }
 0xaa6   : > { %v2986_v35 = vpop.f32.mrb[73].mxu1 }
 0xaa7   : > { %v4188_v51 = vpop.f32.mrb[74].mxu1 }
 0xaa8   : > { %v3036_v44 = vpack.c.bf16 %v4188_v51, %v4187_v48  ;;  %v2989_v54 = vpop.f32.mrb[75].mxu1 }
 0xaa9   : > { %v3035_v43 = vpack.c.bf16 %v2989_v54, %v2986_v35 }
 0xaab   : > { %4201 = vmatprep.subr.bf16.mxu0 %v3035_v43 }
 0xaac   : > { %4202 = vmatpush3.bf16.msra.mxu0 %v3035_v43 }
 0xaad   : > { %4203 = vmatprep.subr.bf16.mxu0 %v3036_v44 }
 0xab0   : > { %4204 = vmatpush3.bf16.msra.mxu0 %v3036_v44 }
 0xadf   : > { %v4191_v58 = vpop.f32.mrb[76].mxu1 }
 0xae0   : > { %v3002_v59 = vpop.f32.mrb[77].mxu1 }
 0xae1   : > { %v4192_v60 = vpop.f32.mrb[78].mxu1 }
 0xae2   : > { %v3038_v61 = vpack.c.bf16 %v4192_v60, %v4191_v58  ;;  %v3005_v50 = vpop.f32.mrb[79].mxu1 }
 0xae3   : > { %v3037_v63 = vpack.c.bf16 %v3005_v50, %v3002_v59 }
 0xae5   : > { %4205 = vmatprep.subr.bf16.mxu0 %v3037_v63 }
 0xae6   : > { %4206 = vmatpush3.bf16.msra.mxu0 %v3037_v63 }
 0xae7   : > { %4207 = vmatprep.subr.bf16.mxu0 %v3038_v61 }
 0xaea   : > { %4208 = vmatpush3.bf16.msra.mxu0 %v3038_v61 }
 0xaf3   : > { %v4195_v0 = vpop.f32.mrb[80].mxu1 }
 0xaf4   : > { %v3018_v2 = vpop.f32.mrb[81].mxu1 }
 0xaf5   : > { %v4196_v4 = vpop.f32.mrb[82].mxu1 }
 0xaf6   : > { %v3040_v7 = vpack.c.bf16 %v4196_v4, %v4195_v0  ;;  %v3021_v13 = vpop.f32.mrb[83].mxu1 }
 0xaf7   : > { %v3039_v16 = vpack.c.bf16 %v3021_v13, %v3018_v2 }
 0xaf9   : > { %4209 = vmatprep.subr.bf16.mxu0 %v3039_v16 }
 0xafa   : > { %4210 = vmatpush3.bf16.msra.mxu0 %v3039_v16 }
 0xafb   : > { %4211 = vmatprep.subr.bf16.mxu0 %v3040_v7 }
 0xafe   : > { %4212 = vmatpush3.bf16.msra.mxu0 %v3040_v7 }
 0xb01   : > { %4214 = vmatmul.mubr.bf16.vlgmr.msra.gmra.mrb[48].mxu0 %v4449_v17 }
 0xb02   : > { %4217 = vmatprep.mubr.bf16.mxu0 %v4450_v8 }
 0xb09   : > { %4218 = vmatmul.mubr.bf16.gmra.mrb[52].mxu0 %v4451_v52 }
 0xb0a   : > { %4221 = vmatprep.mubr.bf16.mxu0 %v4452_v1 }
 0xb11   : > { %4222 = vmatmul.mubr.bf16.gmra.mrb[56].mxu0 %v4453_v56 }
 0xb12   : > { %4225 = vmatprep.mubr.bf16.mxu0 %v4454_v18 }
 0xb19   : > { %4226 = vmatmul.mubr.bf16.gmra.mrb[60].mxu0 %v4455_v19 }
 0xb1a   : > { %4229 = vmatprep.mubr.bf16.mxu0 %v4456_v21 }
 0xb21   : > { %4230 = vmatmul.mubr.bf16.gmra.mrb[64].mxu0 %v4457_v22 }
 0xb22   : > { %4233 = vmatprep.mubr.bf16.mxu0 %v4458_v12 }
 0xb29   : > { %4234 = vmatmul.mubr.bf16.gmra.mrb[68].mxu0 %v4459_v24 }
 0xb2a   : > { %4237 = vmatprep.mubr.bf16.mxu0 %v4460_v42 }
 0xb31   : > { %4238 = vmatmul.mubr.bf16.gmra.mrb[72].mxu0 %v4461_v26 }
 0xb32   : > { %4241 = vmatprep.mubr.bf16.mxu0 %v4462_v55 }
 0xb39   : > { %4242 = vmatmul.mubr.bf16.gmra.mrb[76].mxu0 %v4463_v27 }
 0xb3a   : > { %4245 = vmatprep.mubr.bf16.mxu0 %v4464_v20 }
 0xb41   : > { %4246 = vmatmul.mubr.bf16.gmra.mrb[80].mxu0 %v4465_v23 }
 0xb42   : > { %4249 = vmatprep.mubr.bf16.mxu0 %v4466_v62 }
 0xb49   : > { %4250 = vmatmul.mubr.bf16.gmra.mrb[84].mxu0 %v4467_v29 }
 0xb4a   : > { %4253 = vmatprep.mubr.bf16.mxu0 %v4468_v15 }
 0xb51   : > { %4254 = vmatmul.mubr.bf16.gmra.mrb[88].mxu0 %v4469_v36 }
 0xb52   : > { %4257 = vmatprep.mubr.bf16.mxu0 %v4470_v9 }
 0xb59   : > { %4258 = vmatmul.mubr.bf16.gmra.mrb[92].mxu0 %v4471_v57 }
 0xb5a   : > { %4261 = vmatprep.mubr.bf16.mxu0 %v4472_v32 }
 0xb61   : > { %4262 = vmatmul.mubr.bf16.gmra.mrb[96].mxu0 %v4473_v31 }
 0xb62   : > { %4265 = vmatprep.mubr.bf16.mxu0 %v4474_v33 }
 0xb69   : > { %4266 = vmatmul.mubr.bf16.gmra.mrb[100].mxu0 %v4475_v30 }
 0xb6a   : > { %4269 = vmatprep.mubr.bf16.mxu0 %v4476_v11 }
 0xb71   : > { %4270 = vmatmul.mubr.bf16.gmra.mrb[104].mxu0 %v4477_v49 }
 0xb72   : > { %4273 = vmatprep.mubr.bf16.mxu0 %v4478_v34 }
 0xb79   : > { %4274 = vmatmul.mubr.bf16.gmra.mrb[108].mxu0 %v4479_v3 }
 0xbd4   : > { %v4215_v25 = vpop.f32.mrb[48].mxu0 }
 0xbd5   : > { %3588 = vst [vmem:[%s5703_s16 + $0x10] sm:$0xff] %v4215_v25  ;;  %v3331_v37 = vpop.f32.mrb[49].mxu0 }
 0xbd6   : > { %3586 = vst [vmem:[%s5703_s16] sm:$0xff] %v3331_v37  ;;  %v4216_v38 = vpop.f32.mrb[50].mxu0 }
 0xbd7   : > { %3589 = vst [vmem:[%s5703_s16 + $0x18] sm:$0xff] %v4216_v38  ;;  %v3334_v14 = vpop.f32.mrb[51].mxu0 }
 0xbd8   : > { %3587 = vst [vmem:[%s5703_s16 + $0x8] sm:$0xff] %v3334_v14 }
 0xbdc   : > { %v4219_v39 = vpop.f32.mrb[52].mxu0 }
 0xbdd   : > { %3592 = vst [vmem:[%s5703_s16 + $0x30] sm:$0xff] %v4219_v39  ;;  %v3347_v40 = vpop.f32.mrb[53].mxu0 }
 0xbde   : > { %3590 = vst [vmem:[%s5703_s16 + $0x20] sm:$0xff] %v3347_v40  ;;  %v4220_v41 = vpop.f32.mrb[54].mxu0 }
 0xbdf   : > { %3593 = vst [vmem:[%s5703_s16 + $0x38] sm:$0xff] %v4220_v41  ;;  %v3350_v45 = vpop.f32.mrb[55].mxu0 }
 0xbe0   : > { %3591 = vst [vmem:[%s5703_s16 + $0x28] sm:$0xff] %v3350_v45 }
 0xbe4   : > { %v4223_v5 = vpop.f32.mrb[56].mxu0 }
 0xbe5   : > { %3596 = vst [vmem:[%s5703_s16 + $0x50] sm:$0xff] %v4223_v5  ;;  %v3363_v6 = vpop.f32.mrb[57].mxu0 }
 0xbe6   : > { %3594 = vst [vmem:[%s5703_s16 + $0x40] sm:$0xff] %v3363_v6  ;;  %v4224_v46 = vpop.f32.mrb[58].mxu0 }
 0xbe7   : > { %3597 = vst [vmem:[%s5703_s16 + $0x58] sm:$0xff] %v4224_v46  ;;  %v3366_v47 = vpop.f32.mrb[59].mxu0 }
 0xbe8   : > { %3595 = vst [vmem:[%s5703_s16 + $0x48] sm:$0xff] %v3366_v47 }
 0xbec   : > { %v4227_v28 = vpop.f32.mrb[60].mxu0 }
 0xbed   : > { %3600 = vst [vmem:[%s5703_s16 + $0x70] sm:$0xff] %v4227_v28  ;;  %v3379_v10 = vpop.f32.mrb[61].mxu0 }
 0xbee   : > { %3598 = vst [vmem:[%s5703_s16 + $0x60] sm:$0xff] %v3379_v10  ;;  %v4228_v53 = vpop.f32.mrb[62].mxu0 }
 0xbef   : > { %3601 = vst [vmem:[%s5703_s16 + $0x78] sm:$0xff] %v4228_v53  ;;  %v3382_v48 = vpop.f32.mrb[63].mxu0 }
 0xbf0   : > { %3599 = vst [vmem:[%s5703_s16 + $0x68] sm:$0xff] %v3382_v48 }
 0xbf4   : > { %v4231_v35 = vpop.f32.mrb[64].mxu0 }
 0xbf5   : > { %3854 = vst [vmem:[%s5703_s16 + $0x90] sm:$0xff] %v4231_v35  ;;  %v3395_v51 = vpop.f32.mrb[65].mxu0 }
 0xbf6   : > { %3852 = vst [vmem:[%s5703_s16 + $0x80] sm:$0xff] %v3395_v51  ;;  %v4232_v44 = vpop.f32.mrb[66].mxu0 }
 0xbf7   : > { %3855 = vst [vmem:[%s5703_s16 + $0x98] sm:$0xff] %v4232_v44  ;;  %v3398_v54 = vpop.f32.mrb[67].mxu0 }
 0xbf8   : > { %3853 = vst [vmem:[%s5703_s16 + $0x88] sm:$0xff] %v3398_v54 }
 0xbfc   : > { %v4235_v43 = vpop.f32.mrb[68].mxu0 }
 0xbfd   : > { %3858 = vst [vmem:[%s5703_s16 + $0xb0] sm:$0xff] %v4235_v43  ;;  %v3411_v58 = vpop.f32.mrb[69].mxu0 }
 0xbfe   : > { %3856 = vst [vmem:[%s5703_s16 + $0xa0] sm:$0xff] %v3411_v58  ;;  %v4236_v59 = vpop.f32.mrb[70].mxu0 }
 0xbff   : > { %3859 = vst [vmem:[%s5703_s16 + $0xb8] sm:$0xff] %v4236_v59  ;;  %v3414_v60 = vpop.f32.mrb[71].mxu0 }
 0xc00   : > { %3857 = vst [vmem:[%s5703_s16 + $0xa8] sm:$0xff] %v3414_v60 }
 0xc04   : > { %v4239_v61 = vpop.f32.mrb[72].mxu0 }
 0xc05   : > { %3862 = vst [vmem:[%s5703_s16 + $0xd0] sm:$0xff] %v4239_v61  ;;  %v3427_v50 = vpop.f32.mrb[73].mxu0 }
 0xc06   : > { %3860 = vst [vmem:[%s5703_s16 + $0xc0] sm:$0xff] %v3427_v50  ;;  %v4240_v63 = vpop.f32.mrb[74].mxu0 }
 0xc07   : > { %3863 = vst [vmem:[%s5703_s16 + $0xd8] sm:$0xff] %v4240_v63  ;;  %v3430_v0 = vpop.f32.mrb[75].mxu0 }
 0xc08   : > { %3861 = vst [vmem:[%s5703_s16 + $0xc8] sm:$0xff] %v3430_v0 }
 0xc0c   : > { %v4243_v2 = vpop.f32.mrb[76].mxu0 }
 0xc0d   : > { %3866 = vst [vmem:[%s5703_s16 + $0xf0] sm:$0xff] %v4243_v2  ;;  %v3443_v4 = vpop.f32.mrb[77].mxu0 }
 0xc0e   : > { %3864 = vst [vmem:[%s5703_s16 + $0xe0] sm:$0xff] %v3443_v4  ;;  %v4244_v7 = vpop.f32.mrb[78].mxu0 }
 0xc0f   : > { %3867 = vst [vmem:[%s5703_s16 + $0xf8] sm:$0xff] %v4244_v7  ;;  %v3446_v13 = vpop.f32.mrb[79].mxu0 }
 0xc10   : > { %3865 = vst [vmem:[%s5703_s16 + $0xe8] sm:$0xff] %v3446_v13 }
 0xc14   : > { %v4247_v16 = vpop.f32.mrb[80].mxu0 }
 0xc15   : > { %3870 = vst [vmem:[%s5703_s16 + $0x110] sm:$0xff] %v4247_v16  ;;  %v3459_v17 = vpop.f32.mrb[81].mxu0 }
 0xc16   : > { %3868 = vst [vmem:[%s5703_s16 + $0x100] sm:$0xff] %v3459_v17  ;;  %v4248_v8 = vpop.f32.mrb[82].mxu0 }
 0xc17   : > { %3871 = vst [vmem:[%s5703_s16 + $0x118] sm:$0xff] %v4248_v8  ;;  %v3462_v52 = vpop.f32.mrb[83].mxu0 }
 0xc18   : > { %3869 = vst [vmem:[%s5703_s16 + $0x108] sm:$0xff] %v3462_v52 }
 0xc1c   : > { %v4251_v1 = vpop.f32.mrb[84].mxu0 }
 0xc1d   : > { %3874 = vst [vmem:[%s5703_s16 + $0x130] sm:$0xff] %v4251_v1  ;;  %v3475_v56 = vpop.f32.mrb[85].mxu0 }
 0xc1e   : > { %3872 = vst [vmem:[%s5703_s16 + $0x120] sm:$0xff] %v3475_v56  ;;  %v4252_v18 = vpop.f32.mrb[86].mxu0 }
 0xc1f   : > { %3875 = vst [vmem:[%s5703_s16 + $0x138] sm:$0xff] %v4252_v18  ;;  %v3478_v19 = vpop.f32.mrb[87].mxu0 }
 0xc20   : > { %3873 = vst [vmem:[%s5703_s16 + $0x128] sm:$0xff] %v3478_v19 }
 0xc24   : > { %v4255_v21 = vpop.f32.mrb[88].mxu0 }
 0xc25   : > { %3878 = vst [vmem:[%s5703_s16 + $0x150] sm:$0xff] %v4255_v21  ;;  %v3491_v22 = vpop.f32.mrb[89].mxu0 }
 0xc26   : > { %3876 = vst [vmem:[%s5703_s16 + $0x140] sm:$0xff] %v3491_v22  ;;  %v4256_v12 = vpop.f32.mrb[90].mxu0 }
 0xc27   : > { %3879 = vst [vmem:[%s5703_s16 + $0x158] sm:$0xff] %v4256_v12  ;;  %v3494_v24 = vpop.f32.mrb[91].mxu0 }
 0xc28   : > { %3877 = vst [vmem:[%s5703_s16 + $0x148] sm:$0xff] %v3494_v24 }
 0xc2c   : > { %v4259_v42 = vpop.f32.mrb[92].mxu0 }
 0xc2d   : > { %3882 = vst [vmem:[%s5703_s16 + $0x170] sm:$0xff] %v4259_v42  ;;  %v3507_v26 = vpop.f32.mrb[93].mxu0 }
 0xc2e   : > { %3880 = vst [vmem:[%s5703_s16 + $0x160] sm:$0xff] %v3507_v26  ;;  %v4260_v55 = vpop.f32.mrb[94].mxu0 }
 0xc2f   : > { %3883 = vst [vmem:[%s5703_s16 + $0x178] sm:$0xff] %v4260_v55  ;;  %v3510_v27 = vpop.f32.mrb[95].mxu0 }
 0xc30   : > { %3881 = vst [vmem:[%s5703_s16 + $0x168] sm:$0xff] %v3510_v27 }
 0xc34   : > { %v4263_v20 = vpop.f32.mrb[96].mxu0 }
 0xc35   : > { %3886 = vst [vmem:[%s5703_s16 + $0x190] sm:$0xff] %v4263_v20  ;;  %v3523_v23 = vpop.f32.mrb[97].mxu0 }
 0xc36   : > { %3884 = vst [vmem:[%s5703_s16 + $0x180] sm:$0xff] %v3523_v23  ;;  %v4264_v62 = vpop.f32.mrb[98].mxu0 }
 0xc37   : > { %3887 = vst [vmem:[%s5703_s16 + $0x198] sm:$0xff] %v4264_v62  ;;  %v3526_v29 = vpop.f32.mrb[99].mxu0 }
 0xc38   : > { %3885 = vst [vmem:[%s5703_s16 + $0x188] sm:$0xff] %v3526_v29 }
 0xc3c   : > { %v4267_v15 = vpop.f32.mrb[100].mxu0 }
 0xc3d   : > { %3890 = vst [vmem:[%s5703_s16 + $0x1b0] sm:$0xff] %v4267_v15  ;;  %v3539_v36 = vpop.f32.mrb[101].mxu0 }
 0xc3e   : > { %3888 = vst [vmem:[%s5703_s16 + $0x1a0] sm:$0xff] %v3539_v36  ;;  %v4268_v9 = vpop.f32.mrb[102].mxu0 }
 0xc3f   : > { %3891 = vst [vmem:[%s5703_s16 + $0x1b8] sm:$0xff] %v4268_v9  ;;  %v3542_v57 = vpop.f32.mrb[103].mxu0 }
 0xc40   : > { %3889 = vst [vmem:[%s5703_s16 + $0x1a8] sm:$0xff] %v3542_v57 }
 0xc44   : > { %v4271_v32 = vpop.f32.mrb[104].mxu0 }
 0xc45   : > { %3894 = vst [vmem:[%s5703_s16 + $0x1d0] sm:$0xff] %v4271_v32  ;;  %v3555_v31 = vpop.f32.mrb[105].mxu0 }
 0xc46   : > { %3892 = vst [vmem:[%s5703_s16 + $0x1c0] sm:$0xff] %v3555_v31  ;;  %v4272_v33 = vpop.f32.mrb[106].mxu0 }
 0xc47   : > { %3895 = vst [vmem:[%s5703_s16 + $0x1d8] sm:$0xff] %v4272_v33  ;;  %v3558_v30 = vpop.f32.mrb[107].mxu0 }
 0xc48   : > { %3893 = vst [vmem:[%s5703_s16 + $0x1c8] sm:$0xff] %v3558_v30 }
 0xc4c   : > { %v4275_v11 = vpop.f32.mrb[108].mxu0 }
 0xc4d   : > { %3898 = vst [vmem:[%s5703_s16 + $0x1f0] sm:$0xff] %v4275_v11  ;;  %v3571_v49 = vpop.f32.mrb[109].mxu0 }
 0xc4e   : > { %3896 = vst [vmem:[%s5703_s16 + $0x1e0] sm:$0xff] %v3571_v49  ;;  %v4276_v34 = vpop.f32.mrb[110].mxu0 }
 0xc4f   : > { %3899 = vst [vmem:[%s5703_s16 + $0x1f8] sm:$0xff] %v4276_v34  ;;  %v3574_v3 = vpop.f32.mrb[111].mxu0 }
 0xc50   : > { %3897 = vst [vmem:[%s5703_s16 + $0x1e8] sm:$0xff] %v3574_v3 }
 0xc51   : > { %4493 = shalt.err (!%p4490_p3)
}
 0xc52   : > { %s4494_s20 = scalar_lea.hbm %s5771_s15, 8192  ;;  %s4498_s16 = scalar_lea.hbm %s5835_s13, 16384 }
 0xc53   : > { %p4495_p4 = scmp.ne.s32.totalorder %s5771_s15, %s4494_s20  ;;  %p4499_p9 = scmp.lt.u32.totalorder %s5771_s15, %s5835_s13 }
 0xc54   : > { %p4500_p10 = scmp.lt.u32.totalorder %s4498_s16, %s4494_s20  ;;  %p4502_p12 = scmp.lt.u32.totalorder %s4494_s20, %s5771_s15 }
 0xc55   : > { %p4496_p7 = pnand %p4495_p4, %p4715_p5 }
 0xc56   : > { %p4501_p11 = por %p4500_p10, %p4499_p9 }
 0xc57   : > { %p4497_p8 = pneg %p4496_p7 }
 0xc58   : > { %p4503_p13 = por %p4502_p12, %p4501_p11 }
 0xc5a   : > { %p4504_p0 = pnand %p4503_p13, %p4497_p8 }
 0xc5c   : > { %4507 = shalt.err (!%p4504_p0)
}
 0xc5d   : > { %s4606_s27 = smov 128  }
 0xc5e   : > { %4332 = dma.vmem_to_hbm [thread:$0]  (%p4715_p5), %s5774_s30, 8192, %s5771_s15, %s5780_s29, %s4606_s27, %s4606_s27, %s5921_s21  }
 0xc5f PF: > { %p4338_p1 = scmp.ge.s32.totalorder %s4542_s28, 2  ;;  %s3682_s2 = sand.u32 1, %s4530_s25  }
 0xc60   : > { %s3683_s3 = scalar_lea.sflag [#allocation3], %s3682_s2 }
 0xc61   : > { %p4335_p2 = pnand %p4338_p1, %p4719_p6 }
 0xc63   : > { %4525 = dma.done.wait (!%p4335_p2), %s3683_s3, 8192  }
 0xc64   : > { %4527 = vsyncadd (!%p4335_p2), %s3683_s3, 4294959104  ;;  %s6020_s17 = sld [smem:[#allocation5_spill]]  ;;  %s6021_s27 = sld [smem:[#allocation6_spill]] }
 0xc65   : > { %p23_p3 = scmp.ge.s32.totalorder %s4702_s14, 4   ;;  %s6022_s25 = smov %s4534_s26 }
 0xc66   : > { %s6024_s28 = smov %s4702_s14 }
 0xc67   :  { %25 = sbr.rel (!%p23_p3) target bundleno = 8 (0x8), region = 110 }
 0xc6a   : > { %s6023_s26 = smov %s6020_s17 }
 0xc6e   :  { %3688 = vsyncpa [#allocation3], 1 }
 0xc6f   :  { %3690 = vsyncpa [#allocation3 + $0x1], 1 }

</bundles_post_ra>
